<compile_context>
chip_gen: v6e
topology: v6e:2x2x1
jax: 0.10.0
libtpu: 0.0.40
codegen_flags: <defaults>
</compile_context>

<pallas_src>
import numpy as np
import jax
import jax.numpy as jnp
from jax import lax
from jax.experimental import pallas as pl
from jax.experimental.pallas import tpu as pltpu


# --------------------------------------------------------------------- helpers
def _leaky_relu(x, slope=0.2):
    return jnp.where(x > 0, x, slope * x)


def _lane_masks(H, W):
    """Two [1, H*W] f32 lane masks: mask_l[n]=1 iff pixel n has a left
    neighbour inside the row, mask_r[n]=1 iff it has a right neighbour."""
    hw = H * W
    idx = lax.broadcasted_iota(jnp.int32, (1, hw), 1)
    if (W & (W - 1)) == 0:                 # W is a power of two here (s0=4, doubling)
        col = idx & (W - 1)
    else:
        col = idx % W
    mask_l = (col > 0).astype(jnp.float32)
    mask_r = (col < W - 1).astype(jnp.float32)
    return mask_l, mask_r


def _conv3x3_lane(x, wp, bias, H, W, mask_l, mask_r):
    """3x3 'same' conv of one image in the [Cin, H*W] layout, fully in VMEM.

    x:    [Cin, H*W]   f32 (already activated)
    wp:   [Cout, 9*Cin] bf16 (host-packed: row = out channel, cols = (ky,kx,cin))
    bias: [Cout, 1]    f32
    returns [Cout, H*W] f32
    """
    cin, hw = x.shape
    front = W + 1
    zpad = jnp.zeros((cin, front), jnp.float32)
    xp = jnp.concatenate([zpad, x, zpad], axis=1)          # [Cin, HW + 2W + 2]
    taps = []
    for ky in range(3):
        for kx in range(3):
            dy, dx = ky - 1, kx - 1
            off = front + dy * W + dx
            t = xp[:, off:off + hw]                        # lane shift (XLU)
            if dx == -1:
                t = t * mask_l                             # kill horizontal wrap
            elif dx == 1:
                t = t * mask_r
            taps.append(t)
    # Sublane-stacked im2col slab; Cin is a multiple of 8 -> tile-aligned stack.
    slab = jnp.concatenate(taps, axis=0).astype(jnp.bfloat16)   # [9*Cin, HW]
    out = jnp.dot(wp, slab, preferred_element_type=jnp.float32) # [Cout, HW]
    return out + bias


# ----------------------------------------------------------------- fused kernel
def _make_decoder_kernel(s_dim, nf0, s0, blocks_meta):
    def kernel(*refs):
        it = iter(refs)
        s_ref = next(it)                       # [B, s_dim] in SMEM
        fcw_ref = next(it)                     # [s_dim*nf0, s0*s0] f32
        fcb_ref = next(it)                     # [nf0, s0*s0]       f32
        blk_refs = []
        for meta in blocks_meta:
            r = dict(w0=next(it), b0=next(it), w1=next(it), b1=next(it))
            r["ws"] = next(it) if meta["learned"] else None
            r["up"] = next(it) if meta["upsample"] else None
            blk_refs.append(r)
        wc_ref = next(it)                      # [3, 9*nf] bf16
        bc_ref = next(it)                      # [3, 1]    f32
        out_ref = next(it)                     # [3, size*size] f32

        b = pl.program_id(0)

        mask_cache = {}

        def masks(h, w):
            if (h, w) not in mask_cache:
                mask_cache[(h, w)] = _lane_masks(h, w)
            return mask_cache[(h, w)]

        # ---- fc (fused): x[c, n] = fc_b[c, n] + sum_k s[b, k] * fc_w[k*nf0+c, n]
        H = W = s0
        x = fcb_ref[...]
        for k in range(s_dim):
            sk = s_ref[b, k]                                   # scalar from SMEM
            x = x + sk * fcw_ref[k * nf0:(k + 1) * nf0, :]

        # ---- ResnetBlocks with fused 2x nearest upsample
        for meta, r in zip(blocks_meta, blk_refs):
            mask_l, mask_r = masks(H, W)
            h = _conv3x3_lane(_leaky_relu(x), r["w0"][...], r["b0"][...],
                              H, W, mask_l, mask_r)
            d = _conv3x3_lane(_leaky_relu(h), r["w1"][...], r["b1"][...],
                              H, W, mask_l, mask_r)
            if r["ws"] is not None:
                x_s = jnp.dot(r["ws"][...], x.astype(jnp.bfloat16),
                              preferred_element_type=jnp.float32)
            else:
                x_s = x
            x = x_s + 0.1 * d
            if r["up"] is not None:
                # Nearest 2x upsample as a 0/1 selection matmul on the MXU:
                # exact copy of the bf16-rounded activation (mirrored in ref).
                x = jnp.dot(x.astype(jnp.bfloat16), r["up"][...],
                            preferred_element_type=jnp.float32)
                H, W = 2 * H, 2 * W

        # ---- conv_img(relu(x)) -> [3, H*W]: lane-dense store, NCHW-flat layout
        mask_l, mask_r = masks(H, W)
        out_ref[...] = _conv3x3_lane(jnp.maximum(x, 0.0), wc_ref[...], bc_ref[...],
                                     H, W, mask_l, mask_r)

    return kernel


def decoder_forward(packed, s, cfg):
    B, s_dim = s.shape
    s0, nf0, nf = cfg["s0"], cfg["nf0"], cfg["nf"]
    size = cfg["size"]
    hw_out = size * size

    blocks_meta = [dict(learned=blk["ws"] is not None,
                        upsample=blk["up"] is not None)
                   for blk in packed["blocks"]]
    kernel = _make_decoder_kernel(s_dim, nf0, s0, blocks_meta)

    def const_spec(a):                     # resident weight (all weights are 2D)
        return pl.BlockSpec(a.shape, lambda b: (0, 0))

    inputs = [s, packed["fc_w"], packed["fc_b"]]
    in_specs = [pl.BlockSpec(memory_space=pltpu.MemorySpace.SMEM),
                const_spec(packed["fc_w"]), const_spec(packed["fc_b"])]

    flops = 2 * s_dim * nf0 * s0 * s0
    for blk in packed["blocks"]:
        for name in ("w0", "b0", "w1", "b1"):
            inputs.append(blk[name])
            in_specs.append(const_spec(blk[name]))
        if blk["ws"] is not None:
            inputs.append(blk["ws"])
            in_specs.append(const_spec(blk["ws"]))
        if blk["up"] is not None:
            inputs.append(blk["up"])
            in_specs.append(const_spec(blk["up"]))
        hw = blk["H"] * blk["W"]
        flops += 2 * hw * 9 * (blk["cin"] * blk["chid"] + blk["chid"] * blk["cout"])
        if blk["ws"] is not None:
            flops += 2 * hw * blk["cin"] * blk["cout"]
        if blk["up"] is not None:
            flops += 2 * hw * (4 * hw) * blk["cout"]
    inputs += [packed["conv_w"], packed["conv_b"]]
    in_specs += [const_spec(packed["conv_w"]), const_spec(packed["conv_b"])]
    flops += 2 * hw_out * 9 * nf * 3
    flops *= B
    bytes_accessed = (s.size * 4
                      + sum(int(a.size) * a.dtype.itemsize for a in inputs[1:])
                      + B * 3 * hw_out * 4)

    out = pl.pallas_call(
        kernel,
        grid=(B,),
        out_shape=jax.ShapeDtypeStruct((B, 3, hw_out), jnp.float32),
        in_specs=in_specs,
        out_specs=pl.BlockSpec((None, 3, hw_out), lambda b: (b, 0, 0)),
        compiler_params=pltpu.CompilerParams(dimension_semantics=("parallel",)),
        cost_estimate=pl.CostEstimate(flops=int(flops), transcendentals=0,
                                      bytes_accessed=int(bytes_accessed)),
    )(*inputs)
    return out.reshape(B, 3, size, size)        # already NCHW - no transpose


# ------------------------------------------------------------ host-side packing
def _upsample_matrix(H, W):
    """[H*W, 4*H*W] 0/1 selection matrix for 2x nearest upsample in the
    flattened-spatial (pitch W -> pitch 2W) layout."""
    U = np.zeros((H * W, 4 * H * W), np.float32)
    for I in range(2 * H):
        for J in range(2 * W):
            U[(I // 2) * W + (J // 2), I * 2 * W + J] = 1.0
    return jnp.asarray(U, jnp.bfloat16)


def _pack_conv(w_hwio):
    kh, kw, cin, cout = w_hwio.shape
    return jnp.transpose(w_hwio, (3, 0, 1, 2)).reshape(cout, kh * kw * cin) \
              .astype(jnp.bfloat16)


def pack_decoder_params(params, cfg):
    """Pack weights for the fused kernel: fc in [s_dim*nf0, s0*s0] (f32, VPU),
    convs in [Cout, 9*Cin] bf16 (MXU lhs), biases [Cout,1] f32, upsample
    selection matrices bf16."""
    s0, nf0 = cfg["s0"], cfg["nf0"]
    num_layers = cfg["num_layers"]
    s_dim = params["fc_w"].shape[0]
    fc_w = params["fc_w"].reshape(s_dim * nf0, s0 * s0).astype(jnp.float32)
    fc_b = params["fc_b"].reshape(nf0, s0 * s0).astype(jnp.float32)

    blocks = []
    H = W = s0
    for i, blk in enumerate(params["blocks"]):
        _, _, cin, chid = blk["w0"].shape
        cout = blk["w1"].shape[3]
        blocks.append(dict(
            cin=cin, chid=chid, cout=cout, H=H, W=W,
            w0=_pack_conv(blk["w0"]), b0=blk["b0"].reshape(chid, 1),
            w1=_pack_conv(blk["w1"]), b1=blk["b1"].reshape(cout, 1),
            ws=None if blk["ws"] is None else blk["ws"].T.astype(jnp.bfloat16),
            up=_upsample_matrix(H, W) if i < num_layers else None,
        ))
        if i < num_layers:
            H, W = 2 * H, 2 * W

    return dict(fc_w=fc_w, fc_b=fc_b, blocks=blocks,
                conv_w=_pack_conv(params["conv_img_w"]),
                conv_b=params["conv_img_b"].reshape(3, 1))


# --------------------------------------------------------------------- reference
def _conv_ref(x_nhwc, w_hwio, b):
    out = lax.conv_general_dilated(
        x_nhwc.astype(jnp.bfloat16), w_hwio.astype(jnp.bfloat16),
        window_strides=(1, 1), padding="SAME",
        dimension_numbers=("NHWC", "HWIO", "NHWC"),
        preferred_element_type=jnp.float32)
    return out if b is None else out + b


def decoder_reference(params, s, cfg):
    B = s.shape[0]
    nf0, s0 = cfg["nf0"], cfg["s0"]
    out = (jnp.dot(s, params["fc_w"], precision=lax.Precision.HIGHEST)
           + params["fc_b"])
    out = out.reshape(B, nf0, s0, s0).transpose(0, 2, 3, 1)        # NHWC
    for i, blk in enumerate(params["blocks"]):
        if blk["ws"] is None:
            x_s = out
        else:
            cin, cout = blk["ws"].shape
            x_s = _conv_ref(out, blk["ws"].reshape(1, 1, cin, cout), None)
        d = _conv_ref(_leaky_relu(out), blk["w0"], blk["b0"])
        d = _conv_ref(_leaky_relu(d), blk["w1"], blk["b1"])
        out = x_s + 0.1 * d
        if i < cfg["num_layers"]:
            # mirror the kernel's MXU upsample (exact nearest repeat of bf16(x))
            out = out.astype(jnp.bfloat16).astype(jnp.float32)
            out = jnp.repeat(jnp.repeat(out, 2, axis=1), 2, axis=2)
    out = _conv_ref(jnp.maximum(out, 0.0), params["conv_img_w"],
                    params["conv_img_b"])
    return out.transpose(0, 3, 1, 2)                               # NCHW


# --------------------------------------------------------------------- init glue
def init_decoder_params(key, s_dim, size=16, final_channels=16, max_channels=32):
    s0 = 4
    nf, nf_max = final_channels, max_channels
    num_layers = int(np.log2(size / s0))
    nf0 = min(nf_max, nf * 2 ** num_layers)

    def nxt():
        nonlocal key
        key, sub = jax.random.split(key)
        return sub

    def uniform(shape, fan_in):
        bound = 1.0 / np.sqrt(fan_in)
        return jax.random.uniform(nxt(), shape, jnp.float32, -bound, bound)

    ch = []
    for i in range(num_layers):
        cin = min(nf * 2 ** (num_layers - i), nf_max)
        cout = min(nf * 2 ** (num_layers - i - 1), nf_max)
        ch.append((cin, cout))
    ch.append((nf, nf))                                   # final ResnetBlock(nf, nf)

    params = dict(
        fc_w=uniform((s_dim, nf0 * s0 * s0), s_dim),
        fc_b=uniform((nf0 * s0 * s0,), s_dim),
        blocks=[],
    )
    for cin, cout in ch:
        chid = min(cin, cout)
        params["blocks"].append(dict(
            w0=uniform((3, 3, cin, chid), 9 * cin),
            b0=uniform((chid,), 9 * cin),
            w1=uniform((3, 3, chid, cout), 9 * chid),
            b1=uniform((cout,), 9 * chid),
            ws=uniform((cin, cout), cin) if cin != cout else None,
        ))
    params["conv_img_w"] = uniform((3, 3, nf, 3), 9 * nf)
    params["conv_img_b"] = uniform((3,), 9 * nf)

    cfg = dict(s0=s0, nf=nf, nf_max=nf_max, nf0=nf0,
               num_layers=num_layers, size=size, channels=ch)
    return params, cfg


if __name__ == "__main__":
    B, S_DIM = 2, 8
    SIZE, NF, NF_MAX = 16, 16, 32            # small test config: 4x4 -> 16x16

    key = jax.random.PRNGKey(0)
    kp, ks = jax.random.split(key)
    params, cfg = init_decoder_params(kp, S_DIM, SIZE, NF, NF_MAX)
    s = jax.random.normal(ks, (B, S_DIM), jnp.float32)

    packed = pack_decoder_params(params, cfg)
    img = decoder_forward(packed, s, cfg)
    jax.block_until_ready(img)

    ref = decoder_reference(params, s, cfg)
    np.testing.assert_allclose(np.asarray(img), np.asarray(ref),
                               rtol=2e-3, atol=2e-3)
    assert img.shape == (B, 3, SIZE, SIZE)
    print("KERNEL_OK")
</pallas_src>

<mosaic_0001>
module attributes {stable_mosaic.version = 11 : i64} {
  func.func @kernel(%arg0: i32, %arg1: memref<2x8xf32, #tpu.memory_space<smem>>, %arg2: memref<256x16xf32, #tpu.memory_space<vmem>>, %arg3: memref<32x16xf32, #tpu.memory_space<vmem>>, %arg4: memref<32x288xbf16, #tpu.memory_space<vmem>>, %arg5: memref<32x1xf32, #tpu.memory_space<vmem>>, %arg6: memref<32x288xbf16, #tpu.memory_space<vmem>>, %arg7: memref<32x1xf32, #tpu.memory_space<vmem>>, %arg8: memref<16x64xbf16, #tpu.memory_space<vmem>>, %arg9: memref<16x288xbf16, #tpu.memory_space<vmem>>, %arg10: memref<16x1xf32, #tpu.memory_space<vmem>>, %arg11: memref<16x144xbf16, #tpu.memory_space<vmem>>, %arg12: memref<16x1xf32, #tpu.memory_space<vmem>>, %arg13: memref<16x32xbf16, #tpu.memory_space<vmem>>, %arg14: memref<64x256xbf16, #tpu.memory_space<vmem>>, %arg15: memref<16x144xbf16, #tpu.memory_space<vmem>>, %arg16: memref<16x1xf32, #tpu.memory_space<vmem>>, %arg17: memref<16x144xbf16, #tpu.memory_space<vmem>>, %arg18: memref<16x1xf32, #tpu.memory_space<vmem>>, %arg19: memref<3x144xbf16, #tpu.memory_space<vmem>>, %arg20: memref<3x1xf32, #tpu.memory_space<vmem>>, %arg21: memref<1x3x256xf32, #tpu.memory_space<vmem>>) attributes {dimension_semantics = [#tpu.dimension_semantics<parallel>], iteration_bounds = array<i64: 2>, scalar_prefetch = 0 : i64, scratch_operands = 0 : i64, tpu.core_type = #tpu.core_type<tc>, window_params = [{transform_indices = @transform_0, window_bounds = array<i64: 2, 8>}, {pipeline_mode = #tpu.pipeline_mode<synchronous>, transform_indices = @transform_1, window_bounds = array<i64: 256, 16>}, {pipeline_mode = #tpu.pipeline_mode<synchronous>, transform_indices = @transform_2, window_bounds = array<i64: 32, 16>}, {pipeline_mode = #tpu.pipeline_mode<synchronous>, transform_indices = @transform_3, window_bounds = array<i64: 32, 288>}, {pipeline_mode = #tpu.pipeline_mode<synchronous>, transform_indices = @transform_4, window_bounds = array<i64: 32, 1>}, {pipeline_mode = #tpu.pipeline_mode<synchronous>, transform_indices = @transform_5, window_bounds = array<i64: 32, 288>}, {pipeline_mode = #tpu.pipeline_mode<synchronous>, transform_indices = @transform_6, window_bounds = array<i64: 32, 1>}, {pipeline_mode = #tpu.pipeline_mode<synchronous>, transform_indices = @transform_7, window_bounds = array<i64: 16, 64>}, {pipeline_mode = #tpu.pipeline_mode<synchronous>, transform_indices = @transform_8, window_bounds = array<i64: 16, 288>}, {pipeline_mode = #tpu.pipeline_mode<synchronous>, transform_indices = @transform_9, window_bounds = array<i64: 16, 1>}, {pipeline_mode = #tpu.pipeline_mode<synchronous>, transform_indices = @transform_10, window_bounds = array<i64: 16, 144>}, {pipeline_mode = #tpu.pipeline_mode<synchronous>, transform_indices = @transform_11, window_bounds = array<i64: 16, 1>}, {pipeline_mode = #tpu.pipeline_mode<synchronous>, transform_indices = @transform_12, window_bounds = array<i64: 16, 32>}, {pipeline_mode = #tpu.pipeline_mode<synchronous>, transform_indices = @transform_13, window_bounds = array<i64: 64, 256>}, {pipeline_mode = #tpu.pipeline_mode<synchronous>, transform_indices = @transform_14, window_bounds = array<i64: 16, 144>}, {pipeline_mode = #tpu.pipeline_mode<synchronous>, transform_indices = @transform_15, window_bounds = array<i64: 16, 1>}, {pipeline_mode = #tpu.pipeline_mode<synchronous>, transform_indices = @transform_16, window_bounds = array<i64: 16, 144>}, {pipeline_mode = #tpu.pipeline_mode<synchronous>, transform_indices = @transform_17, window_bounds = array<i64: 16, 1>}, {pipeline_mode = #tpu.pipeline_mode<synchronous>, transform_indices = @transform_18, window_bounds = array<i64: 3, 144>}, {pipeline_mode = #tpu.pipeline_mode<synchronous>, transform_indices = @transform_19, window_bounds = array<i64: 3, 1>}, {transform_indices = @transform_20, window_bounds = array<i64: 1, 3, 256>}]} {
    %c0 = arith.constant 0 : index
    %c0_0 = arith.constant 0 : index
    %0 = vector.load %arg3[%c0, %c0_0] : memref<32x16xf32, #tpu.memory_space<vmem>>, vector<32x16xf32>
    %1 = arith.index_cast %arg0 : i32 to index
    %c0_1 = arith.constant 0 : index
    %2 = memref.load %arg1[%1, %c0_1] : memref<2x8xf32, #tpu.memory_space<smem>>
    %c0_2 = arith.constant 0 : index
    %c0_3 = arith.constant 0 : index
    %3 = vector.load %arg2[%c0_2, %c0_3] : memref<256x16xf32, #tpu.memory_space<vmem>>, vector<32x16xf32>
    %4 = vector.broadcast %2 : f32 to vector<32x16xf32>
    %5 = arith.mulf %4, %3 : vector<32x16xf32>
    %6 = arith.addf %0, %5 : vector<32x16xf32>
    %7 = arith.index_cast %arg0 : i32 to index
    %c1 = arith.constant 1 : index
    %8 = memref.load %arg1[%7, %c1] : memref<2x8xf32, #tpu.memory_space<smem>>
    %c32 = arith.constant 32 : index
    %c0_4 = arith.constant 0 : index
    %9 = vector.load %arg2[%c32, %c0_4] : memref<256x16xf32, #tpu.memory_space<vmem>>, vector<32x16xf32>
    %10 = vector.broadcast %8 : f32 to vector<32x16xf32>
    %11 = arith.mulf %10, %9 : vector<32x16xf32>
    %12 = arith.addf %6, %11 : vector<32x16xf32>
    %13 = arith.index_cast %arg0 : i32 to index
    %c2 = arith.constant 2 : index
    %14 = memref.load %arg1[%13, %c2] : memref<2x8xf32, #tpu.memory_space<smem>>
    %c64 = arith.constant 64 : index
    %c0_5 = arith.constant 0 : index
    %15 = vector.load %arg2[%c64, %c0_5] : memref<256x16xf32, #tpu.memory_space<vmem>>, vector<32x16xf32>
    %16 = vector.broadcast %14 : f32 to vector<32x16xf32>
    %17 = arith.mulf %16, %15 : vector<32x16xf32>
    %18 = arith.addf %12, %17 : vector<32x16xf32>
    %19 = arith.index_cast %arg0 : i32 to index
    %c3 = arith.constant 3 : index
    %20 = memref.load %arg1[%19, %c3] : memref<2x8xf32, #tpu.memory_space<smem>>
    %c96 = arith.constant 96 : index
    %c0_6 = arith.constant 0 : index
    %21 = vector.load %arg2[%c96, %c0_6] : memref<256x16xf32, #tpu.memory_space<vmem>>, vector<32x16xf32>
    %22 = vector.broadcast %20 : f32 to vector<32x16xf32>
    %23 = arith.mulf %22, %21 : vector<32x16xf32>
    %24 = arith.addf %18, %23 : vector<32x16xf32>
    %25 = arith.index_cast %arg0 : i32 to index
    %c4 = arith.constant 4 : index
    %26 = memref.load %arg1[%25, %c4] : memref<2x8xf32, #tpu.memory_space<smem>>
    %c128 = arith.constant 128 : index
    %c0_7 = arith.constant 0 : index
    %27 = vector.load %arg2[%c128, %c0_7] : memref<256x16xf32, #tpu.memory_space<vmem>>, vector<32x16xf32>
    %28 = vector.broadcast %26 : f32 to vector<32x16xf32>
    %29 = arith.mulf %28, %27 : vector<32x16xf32>
    %30 = arith.addf %24, %29 : vector<32x16xf32>
    %31 = arith.index_cast %arg0 : i32 to index
    %c5 = arith.constant 5 : index
    %32 = memref.load %arg1[%31, %c5] : memref<2x8xf32, #tpu.memory_space<smem>>
    %c160 = arith.constant 160 : index
    %c0_8 = arith.constant 0 : index
    %33 = vector.load %arg2[%c160, %c0_8] : memref<256x16xf32, #tpu.memory_space<vmem>>, vector<32x16xf32>
    %34 = vector.broadcast %32 : f32 to vector<32x16xf32>
    %35 = arith.mulf %34, %33 : vector<32x16xf32>
    %36 = arith.addf %30, %35 : vector<32x16xf32>
    %37 = arith.index_cast %arg0 : i32 to index
    %c6 = arith.constant 6 : index
    %38 = memref.load %arg1[%37, %c6] : memref<2x8xf32, #tpu.memory_space<smem>>
    %c192 = arith.constant 192 : index
    %c0_9 = arith.constant 0 : index
    %39 = vector.load %arg2[%c192, %c0_9] : memref<256x16xf32, #tpu.memory_space<vmem>>, vector<32x16xf32>
    %40 = vector.broadcast %38 : f32 to vector<32x16xf32>
    %41 = arith.mulf %40, %39 : vector<32x16xf32>
    %42 = arith.addf %36, %41 : vector<32x16xf32>
    %43 = arith.index_cast %arg0 : i32 to index
    %c7 = arith.constant 7 : index
    %44 = memref.load %arg1[%43, %c7] : memref<2x8xf32, #tpu.memory_space<smem>>
    %c224 = arith.constant 224 : index
    %c0_10 = arith.constant 0 : index
    %45 = vector.load %arg2[%c224, %c0_10] : memref<256x16xf32, #tpu.memory_space<vmem>>, vector<32x16xf32>
    %46 = vector.broadcast %44 : f32 to vector<32x16xf32>
    %47 = arith.mulf %46, %45 : vector<32x16xf32>
    %48 = arith.addf %42, %47 : vector<32x16xf32>
    %49 = tpu.iota {dimensions = array<i32: 1>} : vector<1x16xi32>
    %c3_i32 = arith.constant 3 : i32
    %50 = vector.broadcast %c3_i32 : i32 to vector<1x16xi32>
    %51 = arith.andi %49, %50 : vector<1x16xi32>
    %c0_i32 = arith.constant 0 : i32
    %52 = vector.broadcast %c0_i32 : i32 to vector<1x16xi32>
    %53 = arith.cmpi sgt, %51, %52 : vector<1x16xi32>
    %54 = arith.extui %53 : vector<1x16xi1> to vector<1x16xi32>
    %55 = arith.sitofp %54 : vector<1x16xi32> to vector<1x16xf32>
    %c3_i32_11 = arith.constant 3 : i32
    %56 = vector.broadcast %c3_i32_11 : i32 to vector<1x16xi32>
    %57 = arith.cmpi slt, %51, %56 : vector<1x16xi32>
    %58 = arith.extui %57 : vector<1x16xi1> to vector<1x16xi32>
    %59 = arith.sitofp %58 : vector<1x16xi32> to vector<1x16xf32>
    %cst = arith.constant 0.000000e+00 : f32
    %60 = vector.broadcast %cst : f32 to vector<32x16xf32>
    %61 = arith.cmpf ogt, %48, %60 : vector<32x16xf32>
    %cst_12 = arith.constant 2.000000e-01 : f32
    %62 = vector.broadcast %cst_12 : f32 to vector<32x16xf32>
    %63 = arith.mulf %62, %48 : vector<32x16xf32>
    %64 = arith.select %61, %48, %63 : vector<32x16xi1>, vector<32x16xf32>
    %c0_13 = arith.constant 0 : index
    %c0_14 = arith.constant 0 : index
    %65 = vector.load %arg4[%c0_13, %c0_14] : memref<32x288xbf16, #tpu.memory_space<vmem>>, vector<32x288xbf16>
    %c0_15 = arith.constant 0 : index
    %c0_16 = arith.constant 0 : index
    %66 = vector.load %arg5[%c0_15, %c0_16] : memref<32x1xf32, #tpu.memory_space<vmem>>, vector<32x1xf32>
    %cst_17 = arith.constant 0.000000e+00 : f32
    %67 = vector.broadcast %cst_17 : f32 to vector<32x5xf32>
    %68 = tpu.concatenate %67, %64, %67 in 1 : vector<32x5xf32>, vector<32x16xf32>, vector<32x5xf32> -> vector<32x26xf32>
    %69 = vector.extract_strided_slice %68 {offsets = [0, 0], sizes = [32, 16], strides = [1, 1]} : vector<32x26xf32> to vector<32x16xf32>
    %70 = vector.broadcast %55 : vector<1x16xf32> to vector<32x16xf32>
    %71 = arith.mulf %69, %70 : vector<32x16xf32>
    %72 = vector.extract_strided_slice %68 {offsets = [0, 1], sizes = [32, 16], strides = [1, 1]} : vector<32x26xf32> to vector<32x16xf32>
    %73 = vector.extract_strided_slice %68 {offsets = [0, 2], sizes = [32, 16], strides = [1, 1]} : vector<32x26xf32> to vector<32x16xf32>
    %74 = vector.broadcast %59 : vector<1x16xf32> to vector<32x16xf32>
    %75 = arith.mulf %73, %74 : vector<32x16xf32>
    %76 = vector.extract_strided_slice %68 {offsets = [0, 4], sizes = [32, 16], strides = [1, 1]} : vector<32x26xf32> to vector<32x16xf32>
    %77 = vector.broadcast %55 : vector<1x16xf32> to vector<32x16xf32>
    %78 = arith.mulf %76, %77 : vector<32x16xf32>
    %79 = vector.extract_strided_slice %68 {offsets = [0, 5], sizes = [32, 16], strides = [1, 1]} : vector<32x26xf32> to vector<32x16xf32>
    %80 = vector.extract_strided_slice %68 {offsets = [0, 6], sizes = [32, 16], strides = [1, 1]} : vector<32x26xf32> to vector<32x16xf32>
    %81 = vector.broadcast %59 : vector<1x16xf32> to vector<32x16xf32>
    %82 = arith.mulf %80, %81 : vector<32x16xf32>
    %83 = vector.extract_strided_slice %68 {offsets = [0, 8], sizes = [32, 16], strides = [1, 1]} : vector<32x26xf32> to vector<32x16xf32>
    %84 = vector.broadcast %55 : vector<1x16xf32> to vector<32x16xf32>
    %85 = arith.mulf %83, %84 : vector<32x16xf32>
    %86 = vector.extract_strided_slice %68 {offsets = [0, 9], sizes = [32, 16], strides = [1, 1]} : vector<32x26xf32> to vector<32x16xf32>
    %87 = vector.extract_strided_slice %68 {offsets = [0, 10], sizes = [32, 16], strides = [1, 1]} : vector<32x26xf32> to vector<32x16xf32>
    %88 = vector.broadcast %59 : vector<1x16xf32> to vector<32x16xf32>
    %89 = arith.mulf %87, %88 : vector<32x16xf32>
    %90 = tpu.concatenate %71, %72, %75, %78, %79, %82, %85, %86, %89 in 0 : vector<32x16xf32>, vector<32x16xf32>, vector<32x16xf32>, vector<32x16xf32>, vector<32x16xf32>, vector<32x16xf32>, vector<32x16xf32>, vector<32x16xf32>, vector<32x16xf32> -> vector<288x16xf32>
    %91 = arith.truncf %90 : vector<288x16xf32> to vector<288x16xbf16>
    %cst_18 = arith.constant dense<0.000000e+00> : vector<32x16xf32>
    %92 = tpu.matmul %65, %91, %cst_18 {dimension_numbers = #tpu.dot_dimension_numbers<[1], [0], [0], [1], [0, 0, 1, 1], [], []>} : vector<32x288xbf16>, vector<288x16xbf16>, vector<32x16xf32> -> vector<32x16xf32>
    %93 = vector.broadcast %66 : vector<32x1xf32> to vector<32x16xf32>
    %94 = arith.addf %92, %93 : vector<32x16xf32>
    %cst_19 = arith.constant 0.000000e+00 : f32
    %95 = vector.broadcast %cst_19 : f32 to vector<32x16xf32>
    %96 = arith.cmpf ogt, %94, %95 : vector<32x16xf32>
    %cst_20 = arith.constant 2.000000e-01 : f32
    %97 = vector.broadcast %cst_20 : f32 to vector<32x16xf32>
    %98 = arith.mulf %97, %94 : vector<32x16xf32>
    %99 = arith.select %96, %94, %98 : vector<32x16xi1>, vector<32x16xf32>
    %c0_21 = arith.constant 0 : index
    %c0_22 = arith.constant 0 : index
    %100 = vector.load %arg6[%c0_21, %c0_22] : memref<32x288xbf16, #tpu.memory_space<vmem>>, vector<32x288xbf16>
    %c0_23 = arith.constant 0 : index
    %c0_24 = arith.constant 0 : index
    %101 = vector.load %arg7[%c0_23, %c0_24] : memref<32x1xf32, #tpu.memory_space<vmem>>, vector<32x1xf32>
    %cst_25 = arith.constant 0.000000e+00 : f32
    %102 = vector.broadcast %cst_25 : f32 to vector<32x5xf32>
    %103 = tpu.concatenate %102, %99, %102 in 1 : vector<32x5xf32>, vector<32x16xf32>, vector<32x5xf32> -> vector<32x26xf32>
    %104 = vector.extract_strided_slice %103 {offsets = [0, 0], sizes = [32, 16], strides = [1, 1]} : vector<32x26xf32> to vector<32x16xf32>
    %105 = vector.broadcast %55 : vector<1x16xf32> to vector<32x16xf32>
    %106 = arith.mulf %104, %105 : vector<32x16xf32>
    %107 = vector.extract_strided_slice %103 {offsets = [0, 1], sizes = [32, 16], strides = [1, 1]} : vector<32x26xf32> to vector<32x16xf32>
    %108 = vector.extract_strided_slice %103 {offsets = [0, 2], sizes = [32, 16], strides = [1, 1]} : vector<32x26xf32> to vector<32x16xf32>
    %109 = vector.broadcast %59 : vector<1x16xf32> to vector<32x16xf32>
    %110 = arith.mulf %108, %109 : vector<32x16xf32>
    %111 = vector.extract_strided_slice %103 {offsets = [0, 4], sizes = [32, 16], strides = [1, 1]} : vector<32x26xf32> to vector<32x16xf32>
    %112 = vector.broadcast %55 : vector<1x16xf32> to vector<32x16xf32>
    %113 = arith.mulf %111, %112 : vector<32x16xf32>
    %114 = vector.extract_strided_slice %103 {offsets = [0, 5], sizes = [32, 16], strides = [1, 1]} : vector<32x26xf32> to vector<32x16xf32>
    %115 = vector.extract_strided_slice %103 {offsets = [0, 6], sizes = [32, 16], strides = [1, 1]} : vector<32x26xf32> to vector<32x16xf32>
    %116 = vector.broadcast %59 : vector<1x16xf32> to vector<32x16xf32>
    %117 = arith.mulf %115, %116 : vector<32x16xf32>
    %118 = vector.extract_strided_slice %103 {offsets = [0, 8], sizes = [32, 16], strides = [1, 1]} : vector<32x26xf32> to vector<32x16xf32>
    %119 = vector.broadcast %55 : vector<1x16xf32> to vector<32x16xf32>
    %120 = arith.mulf %118, %119 : vector<32x16xf32>
    %121 = vector.extract_strided_slice %103 {offsets = [0, 9], sizes = [32, 16], strides = [1, 1]} : vector<32x26xf32> to vector<32x16xf32>
    %122 = vector.extract_strided_slice %103 {offsets = [0, 10], sizes = [32, 16], strides = [1, 1]} : vector<32x26xf32> to vector<32x16xf32>
    %123 = vector.broadcast %59 : vector<1x16xf32> to vector<32x16xf32>
    %124 = arith.mulf %122, %123 : vector<32x16xf32>
    %125 = tpu.concatenate %106, %107, %110, %113, %114, %117, %120, %121, %124 in 0 : vector<32x16xf32>, vector<32x16xf32>, vector<32x16xf32>, vector<32x16xf32>, vector<32x16xf32>, vector<32x16xf32>, vector<32x16xf32>, vector<32x16xf32>, vector<32x16xf32> -> vector<288x16xf32>
    %126 = arith.truncf %125 : vector<288x16xf32> to vector<288x16xbf16>
    %cst_26 = arith.constant dense<0.000000e+00> : vector<32x16xf32>
    %127 = tpu.matmul %100, %126, %cst_26 {dimension_numbers = #tpu.dot_dimension_numbers<[1], [0], [0], [1], [0, 0, 1, 1], [], []>} : vector<32x288xbf16>, vector<288x16xbf16>, vector<32x16xf32> -> vector<32x16xf32>
    %128 = vector.broadcast %101 : vector<32x1xf32> to vector<32x16xf32>
    %129 = arith.addf %127, %128 : vector<32x16xf32>
    %cst_27 = arith.constant 1.000000e-01 : f32
    %130 = vector.broadcast %cst_27 : f32 to vector<32x16xf32>
    %131 = arith.mulf %130, %129 : vector<32x16xf32>
    %132 = arith.addf %48, %131 : vector<32x16xf32>
    %133 = arith.truncf %132 : vector<32x16xf32> to vector<32x16xbf16>
    %c0_28 = arith.constant 0 : index
    %c0_29 = arith.constant 0 : index
    %134 = vector.load %arg8[%c0_28, %c0_29] : memref<16x64xbf16, #tpu.memory_space<vmem>>, vector<16x64xbf16>
    %cst_30 = arith.constant dense<0.000000e+00> : vector<32x64xf32>
    %135 = tpu.matmul %133, %134, %cst_30 {dimension_numbers = #tpu.dot_dimension_numbers<[1], [0], [0], [1], [0, 0, 1, 1], [], []>} : vector<32x16xbf16>, vector<16x64xbf16>, vector<32x64xf32> -> vector<32x64xf32>
    %136 = tpu.iota {dimensions = array<i32: 1>} : vector<1x64xi32>
    %c7_i32 = arith.constant 7 : i32
    %137 = vector.broadcast %c7_i32 : i32 to vector<1x64xi32>
    %138 = arith.andi %136, %137 : vector<1x64xi32>
    %c0_i32_31 = arith.constant 0 : i32
    %139 = vector.broadcast %c0_i32_31 : i32 to vector<1x64xi32>
    %140 = arith.cmpi sgt, %138, %139 : vector<1x64xi32>
    %141 = arith.extui %140 : vector<1x64xi1> to vector<1x64xi32>
    %142 = arith.sitofp %141 : vector<1x64xi32> to vector<1x64xf32>
    %c7_i32_32 = arith.constant 7 : i32
    %143 = vector.broadcast %c7_i32_32 : i32 to vector<1x64xi32>
    %144 = arith.cmpi slt, %138, %143 : vector<1x64xi32>
    %145 = arith.extui %144 : vector<1x64xi1> to vector<1x64xi32>
    %146 = arith.sitofp %145 : vector<1x64xi32> to vector<1x64xf32>
    %cst_33 = arith.constant 0.000000e+00 : f32
    %147 = vector.broadcast %cst_33 : f32 to vector<32x64xf32>
    %148 = arith.cmpf ogt, %135, %147 : vector<32x64xf32>
    %cst_34 = arith.constant 2.000000e-01 : f32
    %149 = vector.broadcast %cst_34 : f32 to vector<32x64xf32>
    %150 = arith.mulf %149, %135 : vector<32x64xf32>
    %151 = arith.select %148, %135, %150 : vector<32x64xi1>, vector<32x64xf32>
    %c0_35 = arith.constant 0 : index
    %c0_36 = arith.constant 0 : index
    %152 = vector.load %arg9[%c0_35, %c0_36] : memref<16x288xbf16, #tpu.memory_space<vmem>>, vector<16x288xbf16>
    %c0_37 = arith.constant 0 : index
    %c0_38 = arith.constant 0 : index
    %153 = vector.load %arg10[%c0_37, %c0_38] : memref<16x1xf32, #tpu.memory_space<vmem>>, vector<16x1xf32>
    %cst_39 = arith.constant 0.000000e+00 : f32
    %154 = vector.broadcast %cst_39 : f32 to vector<32x9xf32>
    %155 = tpu.concatenate %154, %151, %154 in 1 : vector<32x9xf32>, vector<32x64xf32>, vector<32x9xf32> -> vector<32x82xf32>
    %156 = vector.extract_strided_slice %155 {offsets = [0, 0], sizes = [32, 64], strides = [1, 1]} : vector<32x82xf32> to vector<32x64xf32>
    %157 = vector.broadcast %142 : vector<1x64xf32> to vector<32x64xf32>
    %158 = arith.mulf %156, %157 : vector<32x64xf32>
    %159 = vector.extract_strided_slice %155 {offsets = [0, 1], sizes = [32, 64], strides = [1, 1]} : vector<32x82xf32> to vector<32x64xf32>
    %160 = vector.extract_strided_slice %155 {offsets = [0, 2], sizes = [32, 64], strides = [1, 1]} : vector<32x82xf32> to vector<32x64xf32>
    %161 = vector.broadcast %146 : vector<1x64xf32> to vector<32x64xf32>
    %162 = arith.mulf %160, %161 : vector<32x64xf32>
    %163 = vector.extract_strided_slice %155 {offsets = [0, 8], sizes = [32, 64], strides = [1, 1]} : vector<32x82xf32> to vector<32x64xf32>
    %164 = vector.broadcast %142 : vector<1x64xf32> to vector<32x64xf32>
    %165 = arith.mulf %163, %164 : vector<32x64xf32>
    %166 = vector.extract_strided_slice %155 {offsets = [0, 9], sizes = [32, 64], strides = [1, 1]} : vector<32x82xf32> to vector<32x64xf32>
    %167 = vector.extract_strided_slice %155 {offsets = [0, 10], sizes = [32, 64], strides = [1, 1]} : vector<32x82xf32> to vector<32x64xf32>
    %168 = vector.broadcast %146 : vector<1x64xf32> to vector<32x64xf32>
    %169 = arith.mulf %167, %168 : vector<32x64xf32>
    %170 = vector.extract_strided_slice %155 {offsets = [0, 16], sizes = [32, 64], strides = [1, 1]} : vector<32x82xf32> to vector<32x64xf32>
    %171 = vector.broadcast %142 : vector<1x64xf32> to vector<32x64xf32>
    %172 = arith.mulf %170, %171 : vector<32x64xf32>
    %173 = vector.extract_strided_slice %155 {offsets = [0, 17], sizes = [32, 64], strides = [1, 1]} : vector<32x82xf32> to vector<32x64xf32>
    %174 = vector.extract_strided_slice %155 {offsets = [0, 18], sizes = [32, 64], strides = [1, 1]} : vector<32x82xf32> to vector<32x64xf32>
    %175 = vector.broadcast %146 : vector<1x64xf32> to vector<32x64xf32>
    %176 = arith.mulf %174, %175 : vector<32x64xf32>
    %177 = tpu.concatenate %158, %159, %162, %165, %166, %169, %172, %173, %176 in 0 : vector<32x64xf32>, vector<32x64xf32>, vector<32x64xf32>, vector<32x64xf32>, vector<32x64xf32>, vector<32x64xf32>, vector<32x64xf32>, vector<32x64xf32>, vector<32x64xf32> -> vector<288x64xf32>
    %178 = arith.truncf %177 : vector<288x64xf32> to vector<288x64xbf16>
    %cst_40 = arith.constant dense<0.000000e+00> : vector<16x64xf32>
    %179 = tpu.matmul %152, %178, %cst_40 {dimension_numbers = #tpu.dot_dimension_numbers<[1], [0], [0], [1], [0, 0, 1, 1], [], []>} : vector<16x288xbf16>, vector<288x64xbf16>, vector<16x64xf32> -> vector<16x64xf32>
    %180 = vector.broadcast %153 : vector<16x1xf32> to vector<16x64xf32>
    %181 = arith.addf %179, %180 : vector<16x64xf32>
    %cst_41 = arith.constant 0.000000e+00 : f32
    %182 = vector.broadcast %cst_41 : f32 to vector<16x64xf32>
    %183 = arith.cmpf ogt, %181, %182 : vector<16x64xf32>
    %cst_42 = arith.constant 2.000000e-01 : f32
    %184 = vector.broadcast %cst_42 : f32 to vector<16x64xf32>
    %185 = arith.mulf %184, %181 : vector<16x64xf32>
    %186 = arith.select %183, %181, %185 : vector<16x64xi1>, vector<16x64xf32>
    %c0_43 = arith.constant 0 : index
    %c0_44 = arith.constant 0 : index
    %187 = vector.load %arg11[%c0_43, %c0_44] : memref<16x144xbf16, #tpu.memory_space<vmem>>, vector<16x144xbf16>
    %c0_45 = arith.constant 0 : index
    %c0_46 = arith.constant 0 : index
    %188 = vector.load %arg12[%c0_45, %c0_46] : memref<16x1xf32, #tpu.memory_space<vmem>>, vector<16x1xf32>
    %cst_47 = arith.constant 0.000000e+00 : f32
    %189 = vector.broadcast %cst_47 : f32 to vector<16x9xf32>
    %190 = tpu.concatenate %189, %186, %189 in 1 : vector<16x9xf32>, vector<16x64xf32>, vector<16x9xf32> -> vector<16x82xf32>
    %191 = vector.extract_strided_slice %190 {offsets = [0, 0], sizes = [16, 64], strides = [1, 1]} : vector<16x82xf32> to vector<16x64xf32>
    %192 = vector.broadcast %142 : vector<1x64xf32> to vector<16x64xf32>
    %193 = arith.mulf %191, %192 : vector<16x64xf32>
    %194 = vector.extract_strided_slice %190 {offsets = [0, 1], sizes = [16, 64], strides = [1, 1]} : vector<16x82xf32> to vector<16x64xf32>
    %195 = vector.extract_strided_slice %190 {offsets = [0, 2], sizes = [16, 64], strides = [1, 1]} : vector<16x82xf32> to vector<16x64xf32>
    %196 = vector.broadcast %146 : vector<1x64xf32> to vector<16x64xf32>
    %197 = arith.mulf %195, %196 : vector<16x64xf32>
    %198 = vector.extract_strided_slice %190 {offsets = [0, 8], sizes = [16, 64], strides = [1, 1]} : vector<16x82xf32> to vector<16x64xf32>
    %199 = vector.broadcast %142 : vector<1x64xf32> to vector<16x64xf32>
    %200 = arith.mulf %198, %199 : vector<16x64xf32>
    %201 = vector.extract_strided_slice %190 {offsets = [0, 9], sizes = [16, 64], strides = [1, 1]} : vector<16x82xf32> to vector<16x64xf32>
    %202 = vector.extract_strided_slice %190 {offsets = [0, 10], sizes = [16, 64], strides = [1, 1]} : vector<16x82xf32> to vector<16x64xf32>
    %203 = vector.broadcast %146 : vector<1x64xf32> to vector<16x64xf32>
    %204 = arith.mulf %202, %203 : vector<16x64xf32>
    %205 = vector.extract_strided_slice %190 {offsets = [0, 16], sizes = [16, 64], strides = [1, 1]} : vector<16x82xf32> to vector<16x64xf32>
    %206 = vector.broadcast %142 : vector<1x64xf32> to vector<16x64xf32>
    %207 = arith.mulf %205, %206 : vector<16x64xf32>
    %208 = vector.extract_strided_slice %190 {offsets = [0, 17], sizes = [16, 64], strides = [1, 1]} : vector<16x82xf32> to vector<16x64xf32>
    %209 = vector.extract_strided_slice %190 {offsets = [0, 18], sizes = [16, 64], strides = [1, 1]} : vector<16x82xf32> to vector<16x64xf32>
    %210 = vector.broadcast %146 : vector<1x64xf32> to vector<16x64xf32>
    %211 = arith.mulf %209, %210 : vector<16x64xf32>
    %212 = tpu.concatenate %193, %194, %197, %200, %201, %204, %207, %208, %211 in 0 : vector<16x64xf32>, vector<16x64xf32>, vector<16x64xf32>, vector<16x64xf32>, vector<16x64xf32>, vector<16x64xf32>, vector<16x64xf32>, vector<16x64xf32>, vector<16x64xf32> -> vector<144x64xf32>
    %213 = arith.truncf %212 : vector<144x64xf32> to vector<144x64xbf16>
    %cst_48 = arith.constant dense<0.000000e+00> : vector<16x64xf32>
    %214 = tpu.matmul %187, %213, %cst_48 {dimension_numbers = #tpu.dot_dimension_numbers<[1], [0], [0], [1], [0, 0, 1, 1], [], []>} : vector<16x144xbf16>, vector<144x64xbf16>, vector<16x64xf32> -> vector<16x64xf32>
    %215 = vector.broadcast %188 : vector<16x1xf32> to vector<16x64xf32>
    %216 = arith.addf %214, %215 : vector<16x64xf32>
    %c0_49 = arith.constant 0 : index
    %c0_50 = arith.constant 0 : index
    %217 = vector.load %arg13[%c0_49, %c0_50] : memref<16x32xbf16, #tpu.memory_space<vmem>>, vector<16x32xbf16>
    %218 = arith.truncf %135 : vector<32x64xf32> to vector<32x64xbf16>
    %cst_51 = arith.constant dense<0.000000e+00> : vector<16x64xf32>
    %219 = tpu.matmul %217, %218, %cst_51 {dimension_numbers = #tpu.dot_dimension_numbers<[1], [0], [0], [1], [0, 0, 1, 1], [], []>} : vector<16x32xbf16>, vector<32x64xbf16>, vector<16x64xf32> -> vector<16x64xf32>
    %cst_52 = arith.constant 1.000000e-01 : f32
    %220 = vector.broadcast %cst_52 : f32 to vector<16x64xf32>
    %221 = arith.mulf %220, %216 : vector<16x64xf32>
    %222 = arith.addf %219, %221 : vector<16x64xf32>
    %223 = arith.truncf %222 : vector<16x64xf32> to vector<16x64xbf16>
    %c0_53 = arith.constant 0 : index
    %c0_54 = arith.constant 0 : index
    %224 = vector.load %arg14[%c0_53, %c0_54] : memref<64x256xbf16, #tpu.memory_space<vmem>>, vector<64x256xbf16>
    %cst_55 = arith.constant dense<0.000000e+00> : vector<16x256xf32>
    %225 = tpu.matmul %223, %224, %cst_55 {dimension_numbers = #tpu.dot_dimension_numbers<[1], [0], [0], [1], [0, 0, 1, 1], [], []>} : vector<16x64xbf16>, vector<64x256xbf16>, vector<16x256xf32> -> vector<16x256xf32>
    %226 = tpu.iota {dimensions = array<i32: 1>} : vector<1x256xi32>
    %c15_i32 = arith.constant 15 : i32
    %227 = vector.broadcast %c15_i32 : i32 to vector<1x256xi32>
    %228 = arith.andi %226, %227 : vector<1x256xi32>
    %c0_i32_56 = arith.constant 0 : i32
    %229 = vector.broadcast %c0_i32_56 : i32 to vector<1x256xi32>
    %230 = arith.cmpi sgt, %228, %229 : vector<1x256xi32>
    %231 = arith.extui %230 : vector<1x256xi1> to vector<1x256xi32>
    %232 = arith.sitofp %231 : vector<1x256xi32> to vector<1x256xf32>
    %c15_i32_57 = arith.constant 15 : i32
    %233 = vector.broadcast %c15_i32_57 : i32 to vector<1x256xi32>
    %234 = arith.cmpi slt, %228, %233 : vector<1x256xi32>
    %235 = arith.extui %234 : vector<1x256xi1> to vector<1x256xi32>
    %236 = arith.sitofp %235 : vector<1x256xi32> to vector<1x256xf32>
    %cst_58 = arith.constant 0.000000e+00 : f32
    %237 = vector.broadcast %cst_58 : f32 to vector<16x256xf32>
    %238 = arith.cmpf ogt, %225, %237 : vector<16x256xf32>
    %cst_59 = arith.constant 2.000000e-01 : f32
    %239 = vector.broadcast %cst_59 : f32 to vector<16x256xf32>
    %240 = arith.mulf %239, %225 : vector<16x256xf32>
    %241 = arith.select %238, %225, %240 : vector<16x256xi1>, vector<16x256xf32>
    %c0_60 = arith.constant 0 : index
    %c0_61 = arith.constant 0 : index
    %242 = vector.load %arg15[%c0_60, %c0_61] : memref<16x144xbf16, #tpu.memory_space<vmem>>, vector<16x144xbf16>
    %c0_62 = arith.constant 0 : index
    %c0_63 = arith.constant 0 : index
    %243 = vector.load %arg16[%c0_62, %c0_63] : memref<16x1xf32, #tpu.memory_space<vmem>>, vector<16x1xf32>
    %cst_64 = arith.constant 0.000000e+00 : f32
    %244 = vector.broadcast %cst_64 : f32 to vector<16x17xf32>
    %245 = tpu.concatenate %244, %241, %244 in 1 : vector<16x17xf32>, vector<16x256xf32>, vector<16x17xf32> -> vector<16x290xf32>
    %246 = vector.extract_strided_slice %245 {offsets = [0, 0], sizes = [16, 256], strides = [1, 1]} : vector<16x290xf32> to vector<16x256xf32>
    %247 = vector.broadcast %232 : vector<1x256xf32> to vector<16x256xf32>
    %248 = arith.mulf %246, %247 : vector<16x256xf32>
    %249 = vector.extract_strided_slice %245 {offsets = [0, 1], sizes = [16, 256], strides = [1, 1]} : vector<16x290xf32> to vector<16x256xf32>
    %250 = vector.extract_strided_slice %245 {offsets = [0, 2], sizes = [16, 256], strides = [1, 1]} : vector<16x290xf32> to vector<16x256xf32>
    %251 = vector.broadcast %236 : vector<1x256xf32> to vector<16x256xf32>
    %252 = arith.mulf %250, %251 : vector<16x256xf32>
    %253 = vector.extract_strided_slice %245 {offsets = [0, 16], sizes = [16, 256], strides = [1, 1]} : vector<16x290xf32> to vector<16x256xf32>
    %254 = vector.broadcast %232 : vector<1x256xf32> to vector<16x256xf32>
    %255 = arith.mulf %253, %254 : vector<16x256xf32>
    %256 = vector.extract_strided_slice %245 {offsets = [0, 17], sizes = [16, 256], strides = [1, 1]} : vector<16x290xf32> to vector<16x256xf32>
    %257 = vector.extract_strided_slice %245 {offsets = [0, 18], sizes = [16, 256], strides = [1, 1]} : vector<16x290xf32> to vector<16x256xf32>
    %258 = vector.broadcast %236 : vector<1x256xf32> to vector<16x256xf32>
    %259 = arith.mulf %257, %258 : vector<16x256xf32>
    %260 = vector.extract_strided_slice %245 {offsets = [0, 32], sizes = [16, 256], strides = [1, 1]} : vector<16x290xf32> to vector<16x256xf32>
    %261 = vector.broadcast %232 : vector<1x256xf32> to vector<16x256xf32>
    %262 = arith.mulf %260, %261 : vector<16x256xf32>
    %263 = vector.extract_strided_slice %245 {offsets = [0, 33], sizes = [16, 256], strides = [1, 1]} : vector<16x290xf32> to vector<16x256xf32>
    %264 = vector.extract_strided_slice %245 {offsets = [0, 34], sizes = [16, 256], strides = [1, 1]} : vector<16x290xf32> to vector<16x256xf32>
    %265 = vector.broadcast %236 : vector<1x256xf32> to vector<16x256xf32>
    %266 = arith.mulf %264, %265 : vector<16x256xf32>
    %267 = tpu.concatenate %248, %249, %252, %255, %256, %259, %262, %263, %266 in 0 : vector<16x256xf32>, vector<16x256xf32>, vector<16x256xf32>, vector<16x256xf32>, vector<16x256xf32>, vector<16x256xf32>, vector<16x256xf32>, vector<16x256xf32>, vector<16x256xf32> -> vector<144x256xf32>
    %268 = arith.truncf %267 : vector<144x256xf32> to vector<144x256xbf16>
    %cst_65 = arith.constant dense<0.000000e+00> : vector<16x256xf32>
    %269 = tpu.matmul %242, %268, %cst_65 {dimension_numbers = #tpu.dot_dimension_numbers<[1], [0], [0], [1], [0, 0, 1, 1], [], []>} : vector<16x144xbf16>, vector<144x256xbf16>, vector<16x256xf32> -> vector<16x256xf32>
    %270 = vector.broadcast %243 : vector<16x1xf32> to vector<16x256xf32>
    %271 = arith.addf %269, %270 : vector<16x256xf32>
    %cst_66 = arith.constant 0.000000e+00 : f32
    %272 = vector.broadcast %cst_66 : f32 to vector<16x256xf32>
    %273 = arith.cmpf ogt, %271, %272 : vector<16x256xf32>
    %cst_67 = arith.constant 2.000000e-01 : f32
    %274 = vector.broadcast %cst_67 : f32 to vector<16x256xf32>
    %275 = arith.mulf %274, %271 : vector<16x256xf32>
    %276 = arith.select %273, %271, %275 : vector<16x256xi1>, vector<16x256xf32>
    %c0_68 = arith.constant 0 : index
    %c0_69 = arith.constant 0 : index
    %277 = vector.load %arg17[%c0_68, %c0_69] : memref<16x144xbf16, #tpu.memory_space<vmem>>, vector<16x144xbf16>
    %c0_70 = arith.constant 0 : index
    %c0_71 = arith.constant 0 : index
    %278 = vector.load %arg18[%c0_70, %c0_71] : memref<16x1xf32, #tpu.memory_space<vmem>>, vector<16x1xf32>
    %cst_72 = arith.constant 0.000000e+00 : f32
    %279 = vector.broadcast %cst_72 : f32 to vector<16x17xf32>
    %280 = tpu.concatenate %279, %276, %279 in 1 : vector<16x17xf32>, vector<16x256xf32>, vector<16x17xf32> -> vector<16x290xf32>
    %281 = vector.extract_strided_slice %280 {offsets = [0, 0], sizes = [16, 256], strides = [1, 1]} : vector<16x290xf32> to vector<16x256xf32>
    %282 = vector.broadcast %232 : vector<1x256xf32> to vector<16x256xf32>
    %283 = arith.mulf %281, %282 : vector<16x256xf32>
    %284 = vector.extract_strided_slice %280 {offsets = [0, 1], sizes = [16, 256], strides = [1, 1]} : vector<16x290xf32> to vector<16x256xf32>
    %285 = vector.extract_strided_slice %280 {offsets = [0, 2], sizes = [16, 256], strides = [1, 1]} : vector<16x290xf32> to vector<16x256xf32>
    %286 = vector.broadcast %236 : vector<1x256xf32> to vector<16x256xf32>
    %287 = arith.mulf %285, %286 : vector<16x256xf32>
    %288 = vector.extract_strided_slice %280 {offsets = [0, 16], sizes = [16, 256], strides = [1, 1]} : vector<16x290xf32> to vector<16x256xf32>
    %289 = vector.broadcast %232 : vector<1x256xf32> to vector<16x256xf32>
    %290 = arith.mulf %288, %289 : vector<16x256xf32>
    %291 = vector.extract_strided_slice %280 {offsets = [0, 17], sizes = [16, 256], strides = [1, 1]} : vector<16x290xf32> to vector<16x256xf32>
    %292 = vector.extract_strided_slice %280 {offsets = [0, 18], sizes = [16, 256], strides = [1, 1]} : vector<16x290xf32> to vector<16x256xf32>
    %293 = vector.broadcast %236 : vector<1x256xf32> to vector<16x256xf32>
    %294 = arith.mulf %292, %293 : vector<16x256xf32>
    %295 = vector.extract_strided_slice %280 {offsets = [0, 32], sizes = [16, 256], strides = [1, 1]} : vector<16x290xf32> to vector<16x256xf32>
    %296 = vector.broadcast %232 : vector<1x256xf32> to vector<16x256xf32>
    %297 = arith.mulf %295, %296 : vector<16x256xf32>
    %298 = vector.extract_strided_slice %280 {offsets = [0, 33], sizes = [16, 256], strides = [1, 1]} : vector<16x290xf32> to vector<16x256xf32>
    %299 = vector.extract_strided_slice %280 {offsets = [0, 34], sizes = [16, 256], strides = [1, 1]} : vector<16x290xf32> to vector<16x256xf32>
    %300 = vector.broadcast %236 : vector<1x256xf32> to vector<16x256xf32>
    %301 = arith.mulf %299, %300 : vector<16x256xf32>
    %302 = tpu.concatenate %283, %284, %287, %290, %291, %294, %297, %298, %301 in 0 : vector<16x256xf32>, vector<16x256xf32>, vector<16x256xf32>, vector<16x256xf32>, vector<16x256xf32>, vector<16x256xf32>, vector<16x256xf32>, vector<16x256xf32>, vector<16x256xf32> -> vector<144x256xf32>
    %303 = arith.truncf %302 : vector<144x256xf32> to vector<144x256xbf16>
    %cst_73 = arith.constant dense<0.000000e+00> : vector<16x256xf32>
    %304 = tpu.matmul %277, %303, %cst_73 {dimension_numbers = #tpu.dot_dimension_numbers<[1], [0], [0], [1], [0, 0, 1, 1], [], []>} : vector<16x144xbf16>, vector<144x256xbf16>, vector<16x256xf32> -> vector<16x256xf32>
    %305 = vector.broadcast %278 : vector<16x1xf32> to vector<16x256xf32>
    %306 = arith.addf %304, %305 : vector<16x256xf32>
    %cst_74 = arith.constant 1.000000e-01 : f32
    %307 = vector.broadcast %cst_74 : f32 to vector<16x256xf32>
    %308 = arith.mulf %307, %306 : vector<16x256xf32>
    %309 = arith.addf %225, %308 : vector<16x256xf32>
    %cst_75 = arith.constant 0.000000e+00 : f32
    %310 = vector.broadcast %cst_75 : f32 to vector<16x256xf32>
    %311 = arith.maximumf %309, %310 : vector<16x256xf32>
    %c0_76 = arith.constant 0 : index
    %c0_77 = arith.constant 0 : index
    %312 = vector.load %arg19[%c0_76, %c0_77] : memref<3x144xbf16, #tpu.memory_space<vmem>>, vector<3x144xbf16>
    %c0_78 = arith.constant 0 : index
    %c0_79 = arith.constant 0 : index
    %313 = vector.load %arg20[%c0_78, %c0_79] : memref<3x1xf32, #tpu.memory_space<vmem>>, vector<3x1xf32>
    %cst_80 = arith.constant 0.000000e+00 : f32
    %314 = vector.broadcast %cst_80 : f32 to vector<16x17xf32>
    %315 = tpu.concatenate %314, %311, %314 in 1 : vector<16x17xf32>, vector<16x256xf32>, vector<16x17xf32> -> vector<16x290xf32>
    %316 = vector.extract_strided_slice %315 {offsets = [0, 0], sizes = [16, 256], strides = [1, 1]} : vector<16x290xf32> to vector<16x256xf32>
    %317 = vector.broadcast %232 : vector<1x256xf32> to vector<16x256xf32>
    %318 = arith.mulf %316, %317 : vector<16x256xf32>
    %319 = vector.extract_strided_slice %315 {offsets = [0, 1], sizes = [16, 256], strides = [1, 1]} : vector<16x290xf32> to vector<16x256xf32>
    %320 = vector.extract_strided_slice %315 {offsets = [0, 2], sizes = [16, 256], strides = [1, 1]} : vector<16x290xf32> to vector<16x256xf32>
    %321 = vector.broadcast %236 : vector<1x256xf32> to vector<16x256xf32>
    %322 = arith.mulf %320, %321 : vector<16x256xf32>
    %323 = vector.extract_strided_slice %315 {offsets = [0, 16], sizes = [16, 256], strides = [1, 1]} : vector<16x290xf32> to vector<16x256xf32>
    %324 = vector.broadcast %232 : vector<1x256xf32> to vector<16x256xf32>
    %325 = arith.mulf %323, %324 : vector<16x256xf32>
    %326 = vector.extract_strided_slice %315 {offsets = [0, 17], sizes = [16, 256], strides = [1, 1]} : vector<16x290xf32> to vector<16x256xf32>
    %327 = vector.extract_strided_slice %315 {offsets = [0, 18], sizes = [16, 256], strides = [1, 1]} : vector<16x290xf32> to vector<16x256xf32>
    %328 = vector.broadcast %236 : vector<1x256xf32> to vector<16x256xf32>
    %329 = arith.mulf %327, %328 : vector<16x256xf32>
    %330 = vector.extract_strided_slice %315 {offsets = [0, 32], sizes = [16, 256], strides = [1, 1]} : vector<16x290xf32> to vector<16x256xf32>
    %331 = vector.broadcast %232 : vector<1x256xf32> to vector<16x256xf32>
    %332 = arith.mulf %330, %331 : vector<16x256xf32>
    %333 = vector.extract_strided_slice %315 {offsets = [0, 33], sizes = [16, 256], strides = [1, 1]} : vector<16x290xf32> to vector<16x256xf32>
    %334 = vector.extract_strided_slice %315 {offsets = [0, 34], sizes = [16, 256], strides = [1, 1]} : vector<16x290xf32> to vector<16x256xf32>
    %335 = vector.broadcast %236 : vector<1x256xf32> to vector<16x256xf32>
    %336 = arith.mulf %334, %335 : vector<16x256xf32>
    %337 = tpu.concatenate %318, %319, %322, %325, %326, %329, %332, %333, %336 in 0 : vector<16x256xf32>, vector<16x256xf32>, vector<16x256xf32>, vector<16x256xf32>, vector<16x256xf32>, vector<16x256xf32>, vector<16x256xf32>, vector<16x256xf32>, vector<16x256xf32> -> vector<144x256xf32>
    %338 = arith.truncf %337 : vector<144x256xf32> to vector<144x256xbf16>
    %cst_81 = arith.constant dense<0.000000e+00> : vector<3x256xf32>
    %339 = tpu.matmul %312, %338, %cst_81 {dimension_numbers = #tpu.dot_dimension_numbers<[1], [0], [0], [1], [0, 0, 1, 1], [], []>} : vector<3x144xbf16>, vector<144x256xbf16>, vector<3x256xf32> -> vector<3x256xf32>
    %340 = vector.broadcast %313 : vector<3x1xf32> to vector<3x256xf32>
    %341 = arith.addf %339, %340 : vector<3x256xf32>
    %c0_82 = arith.constant 0 : index
    %c0_83 = arith.constant 0 : index
    %c0_84 = arith.constant 0 : index
    %342 = vector.load %arg21[%c0_82, %c0_83, %c0_84] : memref<1x3x256xf32, #tpu.memory_space<vmem>>, vector<1x3x256xf32>
    %343 = vector.shape_cast %342 : vector<1x3x256xf32> to vector<3x256xf32>
    %344 = vector.shape_cast %341 : vector<3x256xf32> to vector<1x3x256xf32>
    tpu.vector_store %arg21[%c0_82, %c0_83, %c0_84], %344 {strides = array<i32>} : memref<1x3x256xf32, #tpu.memory_space<vmem>>, vector<1x3x256xf32>,
    return
  }
  func.func @transform_0(%arg0: i32) -> (i32, i32) {
    %c0_i32 = arith.constant 0 : i32
    %c0_i32_0 = arith.constant 0 : i32
    %c0_i32_1 = arith.constant 0 : i32
    return %c0_i32, %c0_i32_0 : i32, i32
  }
  func.func @transform_1(%arg0: i32) -> (i32, i32) {
    %c0_i32 = arith.constant 0 : i32
    %c0_i32_0 = arith.constant 0 : i32
    %c0_i32_1 = arith.constant 0 : i32
    return %c0_i32, %c0_i32_0 : i32, i32
  }
  func.func @transform_2(%arg0: i32) -> (i32, i32) {
    %c0_i32 = arith.constant 0 : i32
    %c0_i32_0 = arith.constant 0 : i32
    %c0_i32_1 = arith.constant 0 : i32
    return %c0_i32, %c0_i32_0 : i32, i32
  }
  func.func @transform_3(%arg0: i32) -> (i32, i32) {
    %c0_i32 = arith.constant 0 : i32
    %c0_i32_0 = arith.constant 0 : i32
    %c0_i32_1 = arith.constant 0 : i32
    return %c0_i32, %c0_i32_0 : i32, i32
  }
  func.func @transform_4(%arg0: i32) -> (i32, i32) {
    %c0_i32 = arith.constant 0 : i32
    %c0_i32_0 = arith.constant 0 : i32
    %c0_i32_1 = arith.constant 0 : i32
    return %c0_i32, %c0_i32_0 : i32, i32
  }
  func.func @transform_5(%arg0: i32) -> (i32, i32) {
    %c0_i32 = arith.constant 0 : i32
    %c0_i32_0 = arith.constant 0 : i32
    %c0_i32_1 = arith.constant 0 : i32
    return %c0_i32, %c0_i32_0 : i32, i32
  }
  func.func @transform_6(%arg0: i32) -> (i32, i32) {
    %c0_i32 = arith.constant 0 : i32
    %c0_i32_0 = arith.constant 0 : i32
    %c0_i32_1 = arith.constant 0 : i32
    return %c0_i32, %c0_i32_0 : i32, i32
  }
  func.func @transform_7(%arg0: i32) -> (i32, i32) {
    %c0_i32 = arith.constant 0 : i32
    %c0_i32_0 = arith.constant 0 : i32
    %c0_i32_1 = arith.constant 0 : i32
    return %c0_i32, %c0_i32_0 : i32, i32
  }
  func.func @transform_8(%arg0: i32) -> (i32, i32) {
    %c0_i32 = arith.constant 0 : i32
    %c0_i32_0 = arith.constant 0 : i32
    %c0_i32_1 = arith.constant 0 : i32
    return %c0_i32, %c0_i32_0 : i32, i32
  }
  func.func @transform_9(%arg0: i32) -> (i32, i32) {
    %c0_i32 = arith.constant 0 : i32
    %c0_i32_0 = arith.constant 0 : i32
    %c0_i32_1 = arith.constant 0 : i32
    return %c0_i32, %c0_i32_0 : i32, i32
  }
  func.func @transform_10(%arg0: i32) -> (i32, i32) {
    %c0_i32 = arith.constant 0 : i32
    %c0_i32_0 = arith.constant 0 : i32
    %c0_i32_1 = arith.constant 0 : i32
    return %c0_i32, %c0_i32_0 : i32, i32
  }
  func.func @transform_11(%arg0: i32) -> (i32, i32) {
    %c0_i32 = arith.constant 0 : i32
    %c0_i32_0 = arith.constant 0 : i32
    %c0_i32_1 = arith.constant 0 : i32
    return %c0_i32, %c0_i32_0 : i32, i32
  }
  func.func @transform_12(%arg0: i32) -> (i32, i32) {
    %c0_i32 = arith.constant 0 : i32
    %c0_i32_0 = arith.constant 0 : i32
    %c0_i32_1 = arith.constant 0 : i32
    return %c0_i32, %c0_i32_0 : i32, i32
  }
  func.func @transform_13(%arg0: i32) -> (i32, i32) {
    %c0_i32 = arith.constant 0 : i32
    %c0_i32_0 = arith.constant 0 : i32
    %c0_i32_1 = arith.constant 0 : i32
    return %c0_i32, %c0_i32_0 : i32, i32
  }
  func.func @transform_14(%arg0: i32) -> (i32, i32) {
    %c0_i32 = arith.constant 0 : i32
    %c0_i32_0 = arith.constant 0 : i32
    %c0_i32_1 = arith.constant 0 : i32
    return %c0_i32, %c0_i32_0 : i32, i32
  }
  func.func @transform_15(%arg0: i32) -> (i32, i32) {
    %c0_i32 = arith.constant 0 : i32
    %c0_i32_0 = arith.constant 0 : i32
    %c0_i32_1 = arith.constant 0 : i32
    return %c0_i32, %c0_i32_0 : i32, i32
  }
  func.func @transform_16(%arg0: i32) -> (i32, i32) {
    %c0_i32 = arith.constant 0 : i32
    %c0_i32_0 = arith.constant 0 : i32
    %c0_i32_1 = arith.constant 0 : i32
    return %c0_i32, %c0_i32_0 : i32, i32
  }
  func.func @transform_17(%arg0: i32) -> (i32, i32) {
    %c0_i32 = arith.constant 0 : i32
    %c0_i32_0 = arith.constant 0 : i32
    %c0_i32_1 = arith.constant 0 : i32
    return %c0_i32, %c0_i32_0 : i32, i32
  }
  func.func @transform_18(%arg0: i32) -> (i32, i32) {
    %c0_i32 = arith.constant 0 : i32
    %c0_i32_0 = arith.constant 0 : i32
    %c0_i32_1 = arith.constant 0 : i32
    return %c0_i32, %c0_i32_0 : i32, i32
  }
  func.func @transform_19(%arg0: i32) -> (i32, i32) {
    %c0_i32 = arith.constant 0 : i32
    %c0_i32_0 = arith.constant 0 : i32
    %c0_i32_1 = arith.constant 0 : i32
    return %c0_i32, %c0_i32_0 : i32, i32
  }
  func.func @transform_20(%arg0: i32) -> (i32, i32, i32) {
    %c0_i32 = arith.constant 0 : i32
    %c0_i32_0 = arith.constant 0 : i32
    %c0_i32_1 = arith.constant 0 : i32
    return %arg0, %c0_i32, %c0_i32_0 : i32, i32, i32
  }
}

</mosaic_0001>

<bundles_post_ra>
// kernel: tpu_custom_call.1
= control target key start
LH: loop header
LB: loop body
LE: loop exit
PB: predicated region body
PF: predicated region fallthrough
CT: control target
= control target key end

     0   :  { %s5892_s0 = inlined_call_operand.vmem [shape: f32[2,8], index: 0, kind: input, shape index: {}]   ;;  %s5893_s1 = inlined_call_operand.vmem [shape: f32[256,16], index: 1, kind: input, shape index: {}]   ;;  %s5894_s2 = inlined_call_operand.vmem [shape: f32[32,16], index: 2, kind: input, shape index: {}]   ;;  %s5895_s3 = inlined_call_operand.vmem [shape: bf16[32,288], index: 3, kind: input, shape index: {}]   ;;  %s5896_s4 = inlined_call_operand.vmem [shape: f32[32,1], index: 4, kind: input, shape index: {}]   ;;  %s5897_s5 = inlined_call_operand.vmem [shape: bf16[32,288], index: 5, kind: input, shape index: {}]   ;;  %s5898_s6 = inlined_call_operand.vmem [shape: f32[32,1], index: 6, kind: input, shape index: {}]   ;;  %s5899_s7 = inlined_call_operand.vmem [shape: bf16[16,64], index: 7, kind: input, shape index: {}]   ;;  %s5900_s8 = inlined_call_operand.vmem [shape: bf16[16,288], index: 8, kind: input, shape index: {}]   ;;  %s5901_s9 = inlined_call_operand.vmem [shape: f32[16,1], index: 9, kind: input, shape index: {}]   ;;  %s5902_s10 = inlined_call_operand.vmem [shape: bf16[16,144], index: 10, kind: input, shape index: {}]   ;;  %s5903_s11 = inlined_call_operand.vmem [shape: f32[16,1], index: 11, kind: input, shape index: {}]   ;;  %s5904_s12 = inlined_call_operand.vmem [shape: bf16[16,32], index: 12, kind: input, shape index: {}]   ;;  %s5905_s13 = inlined_call_operand.vmem [shape: bf16[64,256], index: 13, kind: input, shape index: {}]   ;;  %s5906_s14 = inlined_call_operand.vmem [shape: bf16[16,144], index: 14, kind: input, shape index: {}]   ;;  %s5907_s15 = inlined_call_operand.vmem [shape: f32[16,1], index: 15, kind: input, shape index: {}]   ;;  %s5908_s16 = inlined_call_operand.vmem [shape: bf16[16,144], index: 16, kind: input, shape index: {}]   ;;  %s5909_s17 = inlined_call_operand.vmem [shape: f32[16,1], index: 17, kind: input, shape index: {}]   ;;  %s5910_s18 = inlined_call_operand.vmem [shape: bf16[3,144], index: 18, kind: input, shape index: {}]   ;;  %s5911_s19 = inlined_call_operand.vmem [shape: f32[3,1], index: 19, kind: input, shape index: {}]   ;;  %s5912_s20 = inlined_call_operand.vmem [shape: f32[2,3,256], index: 20, kind: output, shape index: {}]  }
   0x1   :  { %5936 = sst [smem:[#allocation7_spill]] %s5892_s0 }
   0x2   :  { %5937 = sst [smem:[#allocation8_spill]] %s5893_s1 }
   0x3   :  { %5938 = sst [smem:[#allocation9_spill]] %s5894_s2 }
   0x4   :  { %5939 = sst [smem:[#allocation10_spill]] %s5895_s3 }
   0x5   :  { %5940 = sst [smem:[#allocation11_spill]] %s5896_s4 }
   0x6   :  { %5941 = sst [smem:[#allocation12_spill]] %s5909_s17 }
   0x7   :  { %5942 = sst [smem:[#allocation13_spill]] %s5910_s18 }
   0x8   :  { %5943 = sst [smem:[#allocation14_spill]] %s5911_s19 }
   0x9   :  { %5944 = sst [smem:[#allocation15_spill]] %s5912_s20 }
   0xa   :  { %25 = vsyncpa [#allocation3], 0  ;;  %s4531_s1 = smov 0  }
   0xb LB: > { %5945 = sst [smem:[#allocation5_spill]] %s4394_s1  ;;  %s4537_s22 = sadd.s32 4294967295, %s4394_s1   ;;  %s4394_s1 = sphi %s4531_s1, %s31_s1  }
   0xc   : > { %5946 = sst [smem:[#allocation6_spill]] %s4537_s22  ;;  %p3415_p0 = scmp.ge.s32.totalorder %s4394_s1, 1 }
   0xd   : > { %p482_p1 = scmp.lt.s32.totalorder %s4394_s1, 3  ;;  %s5947_s2 = sld [smem:[#allocation7_spill]] }
   0xe   : > { %p3619_p3 = scmp.eq.s32.totalorder %s4537_s22, 0 }
   0xf   : > { %p4544_p2 = pnand %p3415_p0, %p482_p1 }
  0x11   : > { %p3615_p4 = pneg %p4544_p2 }
  0x13   : > { %s495_s25 = sshll.u32 %s5947_s2, 4  ;;  %p3616_p5 = pnand %p3619_p3, %p3615_p4  ;;  %s496_s25 = int_to_ptr.vmem [resolvable:$true] %s495_s25 }
  0x14   : > { %s4369_s26 = scalar_lea.vmem %s496_s25, 32  ;;  %p4377_p10 = scmp.lt.s32.totalorder %s496_s25, %s496_s25 }
  0x15   : > { %p4370_p6 = scmp.ne.s32.totalorder %s496_s25, %s4369_s26  ;;  %p4371_p7 = pneg %p3616_p5 }
  0x16   : > { %p4378_p11 = scmp.lt.s32.totalorder %s4369_s26, %s4369_s26 }
  0x17   : > { %p4372_p8 = pnand %p4371_p7, %p4370_p6 }
  0x18   : > { %p4379_p12 = por %p4378_p11, %p4377_p10 }
  0x19   : > { %p4373_p9 = pneg %p4372_p8 }
  0x1b   : > { %p4380_p13 = pnand %p4379_p12, %p4373_p9 }
  0x1d   : > { %4383 = shalt.err (!%p4380_p13)
}
  0x1e   : > { %s4396_s27 = smov [#allocation2]   ;;  %565 = sbr.rel (%p4544_p2) target bundleno = 3880 (0xf28), region = 100 }
  0x1f   : > { %3618 = dma.vmem_to_smem (!%p3616_p5), %s496_s25, 32, %s4396_s27, [#allocation3]  }
  0x23   : > { %4389 = dma.done.wait (%p3619_p3), [#allocation3], 32  }
  0x24   : > { %4391 = vsyncadd (%p3619_p3), [#allocation3], 4294967264 }
  0x25   : > { %571 = sfence }
  0x26   : > { %v749_v0 = vlaneseq  ;;  %s4560_s28 = sshll.u32 %s4537_s22, 7  ;;  %s5949_s26 = sld [smem:[#allocation8_spill]]  ;;  %v4397_v8 = vmov 0.0   ;;  %vm798_vm6 = vcmask 39936   ;;  %vm803_vm7 = vcmask 171008  }
  0x27   : > { %s630_s4 = sld [smem:[#allocation2 + %s4560_s28]]  ;;  %s644_s29 = sadd.s32 1, %s4560_s28  ;;  %vm1037_vm8 = vcmask 261120   ;;  %vm1524_vm14 = vcmask 130048  }
  0x28   : > { %v4564_v1 = vand.u32 127, %v749_v0  ;;  %s645_s30 = sld [smem:[#allocation2 + %s644_s29]]  ;;  %s659_s0 = sadd.s32 2, %s4560_s28 }
  0x29   : > { %s4567_s21 = sld [smem:[#allocation2 + %s659_s0]]  ;;  %s674_s23 = sadd.s32 3, %s4560_s28 }
  0x2a   : > { %v751_v2 = vand.u32 3, %v4564_v1  ;;  %s4571_s24 = sld [smem:[#allocation2 + %s674_s23]]  ;;  %s689_s2 = sadd.s32 4, %s4560_s28 }
  0x2b   : > { %s4577_s27 = sld [smem:[#allocation2 + %s689_s2]]  ;;  %s704_s1 = sadd.s32 5, %s4560_s28 }
  0x2c   : > { %v633_v3 = vld [vmem:[%s5949_s26 + $0x10] sm:$0xff]  ;;  %v631_v4 = vld [vmem:[%s5949_s26] sm:$0xff]  ;;  %vm752_vm0 = vcmp.gt.s32.totalorder %v751_v2, 0  ;;  %s5950_s23 = sld [smem:[#allocation9_spill]]  ;;  %s719_s2 = sadd.s32 6, %s4560_s28  ;;  %v634_v18 = vld [vmem:[%s5949_s26 + $0x18] sm:$0xff] }
  0x2d   : > { %v648_v6 = vld [vmem:[%s5949_s26 + $0x30] sm:$0xff]  ;;  %s4591_s25 = sld [smem:[#allocation2 + %s704_s1]]  ;;  %v646_v7 = vld [vmem:[%s5949_s26 + $0x20] sm:$0xff]  ;;  %v4598_v9 = vsel %vm752_vm0, 1.0, %v4397_v8  ;;  %v4600_v10 = vstv %s630_s4  ;;  %s734_s29 = sadd.s32 7, %s4560_s28  ;;  %v649_v30 = vld [vmem:[%s5949_s26 + $0x38] sm:$0xff] }
  0x2e   : > { %v663_v11 = vld [vmem:[%s5949_s26 + $0x50] sm:$0xff]  ;;  %s4608_s1 = sld [smem:[#allocation2 + %s719_s2]]  ;;  %s4398_s3 = smov 4   ;;  %v638_v14 = vmul.f32 %v4600_v10, %v633_v3  ;;  %v4616_v15 = vstv %s645_s30  ;;  %v636_v16 = vmul.f32 %v4600_v10, %v631_v4  ;;  %v661_v17 = vld [vmem:[%s5949_s26 + $0x40] sm:$0xff]  ;;  %v639_v36 = vmul.f32 %v4600_v10, %v634_v18  ;;  %v664_v37 = vld [vmem:[%s5949_s26 + $0x58] sm:$0xff] }
  0x2f   : > { %v678_v12 = vld [vmem:[%s5949_s26 + $0x70] sm:$0xff]  ;;  %821 = vrot.lane.b32.xlu1 %v4598_v9, %s4398_s3  ;;  %s4618_s4 = sld [smem:[#allocation2 + %s734_s29]]  ;;  %v653_v19 = vmul.f32 %v4616_v15, %v648_v6  ;;  %v4629_v20 = vstv %s4567_s21  ;;  %v651_v22 = vmul.f32 %v4616_v15, %v646_v7  ;;  %v676_v23 = vld [vmem:[%s5949_s26 + $0x60] sm:$0xff]  ;;  %v654_v48 = vmul.f32 %v4616_v15, %v649_v30  ;;  %s4399_s17 = smov 5  }
  0x30   : > { %v693_v21 = vld [vmem:[%s5949_s26 + $0x90] sm:$0xff]  ;;  %v668_v25 = vmul.f32 %v4629_v20, %v663_v11  ;;  %v4640_v26 = vstv %s4571_s24  ;;  %v691_v29 = vld [vmem:[%s5949_s26 + $0x80] sm:$0xff]  ;;  %v666_v33 = vmul.f32 %v4629_v20, %v661_v17  ;;  %v679_v44 = vld [vmem:[%s5949_s26 + $0x78] sm:$0xff]  ;;  %v669_v0 = vmul.f32 %v4629_v20, %v664_v37  ;;  %s5924_s0 = smov 8   ;;  %s4401_s21 = smov 6  }
  0x31   : > { %v708_v27 = vld [vmem:[%s5949_s26 + $0xb0] sm:$0xff]  ;;  %v683_v31 = vmul.f32 %v4640_v26, %v678_v12  ;;  %v4653_v32 = vstv %s4577_s27  ;;  %v706_v34 = vld [vmem:[%s5949_s26 + $0xa0] sm:$0xff]  ;;  %v681_v43 = vmul.f32 %v4640_v26, %v676_v23  ;;  %v632_v49 = vld [vmem:[%s5949_s26 + $0x8] sm:$0xff]  ;;  %v684_v7 = vmul.f32 %v4640_v26, %v679_v44  ;;  %s5922_s3 = smov 2   ;;  %s4404_s20 = smov 119  }
  0x32   : > { %v627_v5 = vld [vmem:[%s5950_s23 + $0x10] sm:$0xff]  ;;  %v625_v13 = vld [vmem:[%s5950_s23] sm:$0xff]  ;;  %v628_v35 = vld [vmem:[%s5950_s23 + $0x18] sm:$0xff]  ;;  %v698_v45 = vmul.f32 %v4653_v32, %v693_v21  ;;  %v696_v53 = vmul.f32 %v4653_v32, %v691_v29  ;;  %vm755_vm4 = vcmp.lt.s32.totalorder %v751_v2, 3  ;;  %s4405_s2 = smov 124   ;;  %s4406_s24 = smov 120  }
  0x33   : > { %v642_v24 = vadd.f32 %v638_v14, %v627_v5  ;;  %v640_v28 = vadd.f32 %v636_v16, %v625_v13  ;;  %v4667_v39 = vstv %s4591_s25  ;;  %v723_v40 = vld [vmem:[%s5949_s26 + $0xd0] sm:$0xff]  ;;  %v721_v47 = vld [vmem:[%s5949_s26 + $0xc0] sm:$0xff]  ;;  %v694_v55 = vld [vmem:[%s5949_s26 + $0x98] sm:$0xff]  ;;  %v643_v58 = vadd.f32 %v639_v36, %v628_v35  ;;  %s5921_s25 = smov 10   ;;  %s5932_s28 = smov 126  }
  0x34   : > { %v738_v41 = vld [vmem:[%s5949_s26 + $0xf0] sm:$0xff]  ;;  %v4681_v46 = vstv %s4608_s1  ;;  %v736_v54 = vld [vmem:[%s5949_s26 + $0xe0] sm:$0xff]  ;;  %v647_v56 = vld [vmem:[%s5949_s26 + $0x28] sm:$0xff]  ;;  %v713_v57 = vmul.f32 %v4667_v39, %v708_v27  ;;  %v711_v63 = vmul.f32 %v4667_v39, %v706_v34  ;;  %v637_v16 = vmul.f32 %v4600_v10, %v632_v49  ;;  %s4408_s22 = smov 122   ;;  %s5930_s1 = smov 127  }
  0x35   : > { %v657_v38 = vadd.f32 %v653_v19, %v642_v24  ;;  %v655_v42 = vadd.f32 %v651_v22, %v640_v28  ;;  %v4691_v51 = vstv %s4618_s4  ;;  %v626_v59 = vld [vmem:[%s5950_s23 + $0x8] sm:$0xff]  ;;  %v709_v3 = vld [vmem:[%s5949_s26 + $0xb8] sm:$0xff]  ;;  %v728_v4 = vmul.f32 %v4681_v46, %v723_v40  ;;  %s5951_s19 = sld [smem:[#allocation10_spill]]  ;;  %s5927_s4 = smov 123  }
  0x36   : > { %v662_v60 = vld [vmem:[%s5949_s26 + $0x48] sm:$0xff]  ;;  %v743_v5 = vmul.f32 %v4691_v51, %v738_v41  ;;  %v658_v6 = vadd.f32 %v654_v48, %v643_v58  ;;  %v726_v13 = vmul.f32 %v4681_v46, %v721_v47  ;;  %v724_v14 = vld [vmem:[%s5949_s26 + $0xd8] sm:$0xff]  ;;  %v741_v18 = vmul.f32 %v4691_v51, %v736_v54  ;;  %s5929_s18 = smov 16   ;;  %s4415_s30 = smov 18  }
  0x37   : > { %v672_v50 = vadd.f32 %v668_v25, %v657_v38  ;;  %v670_v52 = vadd.f32 %v666_v33, %v655_v42  ;;  %v677_v17 = vld [vmem:[%s5949_s26 + $0x68] sm:$0xff]  ;;  %v699_v21 = vmul.f32 %v4653_v32, %v694_v55  ;;  %v652_v22 = vmul.f32 %v4616_v15, %v647_v56  ;;  %v739_v25 = vld [vmem:[%s5949_s26 + $0xf8] sm:$0xff]  ;;  %s5957_s27 = smov 10   ;;  %s4416_s29 = smov 111  }
  0x38   : > { %v673_v19 = vadd.f32 %v669_v0, %v658_v6  ;;  %v641_v27 = vadd.f32 %v637_v16, %v626_v59  ;;  %v667_v10 = vmul.f32 %v4629_v20, %v662_v60  ;;  %v692_v28 = vld [vmem:[%s5949_s26 + $0x88] sm:$0xff]  ;;  %v714_v30 = vmul.f32 %v4667_v39, %v709_v3 }
  0x39   : > { %v687_v61 = vadd.f32 %v683_v31, %v672_v50  ;;  %v685_v62 = vadd.f32 %v681_v43, %v670_v52  ;;  %v707_v15 = vld [vmem:[%s5949_s26 + $0xa8] sm:$0xff]  ;;  %v729_v36 = vmul.f32 %v4681_v46, %v724_v14  ;;  %v682_v37 = vmul.f32 %v4640_v26, %v677_v17 }
  0x3a   : > { %v688_v29 = vadd.f32 %v684_v7, %v673_v19  ;;  %v656_v34 = vadd.f32 %v652_v22, %v641_v27  ;;  %v744_v42 = vmul.f32 %v4691_v51, %v739_v25  ;;  %v697_v43 = vmul.f32 %v4653_v32, %v692_v28  ;;  %v722_v44 = vld [vmem:[%s5949_s26 + $0xc8] sm:$0xff] }
  0x3b   : > { %v702_v11 = vadd.f32 %v698_v45, %v687_v61  ;;  %v700_v12 = vadd.f32 %v696_v53, %v685_v62  ;;  %v712_v49 = vmul.f32 %v4667_v39, %v707_v15  ;;  %v737_v32 = vld [vmem:[%s5949_s26 + $0xe8] sm:$0xff]  ;;  %v727_v55 = vmul.f32 %v4681_v46, %v722_v44 }
  0x3c   : > { %v703_v35 = vadd.f32 %v699_v21, %v688_v29  ;;  %v671_v40 = vadd.f32 %v667_v10, %v656_v34  ;;  %v742_v39 = vmul.f32 %v4691_v51, %v737_v32  ;;  %v3423_v46 = vsel %vm755_vm4, 1.0, %v4397_v8 }
  0x3d   : > { %v717_v23 = vadd.f32 %v713_v57, %v702_v11  ;;  %v715_v24 = vadd.f32 %v711_v63, %v700_v12  ;;  %vm1621_vm4 = vcmask 72704  }
  0x3e   : > { %v718_v41 = vadd.f32 %v714_v30, %v703_v35  ;;  %v686_v48 = vadd.f32 %v682_v37, %v671_v40 }
  0x3f   : > { %v732_v31 = vadd.f32 %v728_v4, %v717_v23  ;;  %v730_v33 = vadd.f32 %v726_v13, %v715_v24 }
  0x40   : > { %v733_v47 = vadd.f32 %v729_v36, %v718_v41  ;;  %v701_v54 = vadd.f32 %v697_v43, %v686_v48 }
  0x41   : > { %v4742_v20 = vadd.f32 %v743_v5, %v732_v31  ;;  %v4744_v38 = vadd.f32 %v741_v18, %v730_v33 }
  0x42   : > { %v4763_v53 = vadd.f32 %v744_v42, %v733_v47  ;;  %v716_v57 = vadd.f32 %v712_v49, %v701_v54 }
  0x43   : > { %vm760_vm1 = vcmp.gt.f32.partialorder %v4742_v20, 0.0  ;;  %v764_v45 = vmul.f32 0.2, %v4742_v20  ;;  %vm758_vm2 = vcmp.gt.f32.partialorder %v4744_v38, 0.0  ;;  %v762_v26 = vmul.f32 0.2, %v4744_v38 }
  0x44   : > { %vm761_vm3 = vcmp.gt.f32.partialorder %v4763_v53, 0.0  ;;  %v765_v56 = vmul.f32 0.2, %v4763_v53  ;;  %v731_v59 = vadd.f32 %v727_v55, %v716_v57 }
  0x45   : > { %v768_v50 = vsel %vm760_vm1, %v4742_v20, %v764_v45  ;;  %v766_v52 = vsel %vm758_vm2, %v4744_v38, %v762_v26 }
  0x46   : > { %790 = vrot.lane.b32.xlu0 %v768_v50, %s4399_s17  ;;  %786 = vrot.lane.b32.xlu1 %v766_v52, %s4399_s17  ;;  %v769_v58 = vsel %vm761_vm3, %v4763_v53, %v765_v56  ;;  %v4776_v51 = vadd.f32 %v742_v39, %v731_v59  ;;  %v4328_v39 = vld [vmem:[%s5951_s19 + $0x4] ss:$12 sps:$4 sm:$0xff]  }
  0x47   : > { %1076 = vmatprep.mubr.bf16.mxu0 %v4328_v39 }
  0x48   : > { %vm759_vm5 = vcmp.gt.f32.partialorder %v4776_v51, 0.0  ;;  %v763_v60 = vmul.f32 0.2, %v4776_v51 }
  0x4a   : > { %835 = vrot.lane.b32.xlu1 %v4598_v9, %s5924_s0  ;;  %792 = vrot.lane.b32.xlu0 %v769_v58, %s4399_s17  ;;  %v767_v2 = vsel %vm759_vm5, %v4776_v51, %v763_v60  ;;  %s5953_s0 = smov 123   ;;  %vm1626_vm5 = vcmask 596992  }
  0x4e   : > { %828 = vrot.lane.b32.xlu1 %v3423_v46, %s4401_s21  ;;  %788 = vrot.lane.b32.xlu0 %v767_v2, %s4399_s17  ;;  %s5925_s21 = smov 118  }
  0x52   : > { %813 = vrot.lane.b32.xlu0 %v3423_v46, %s5922_s3  ;;  %s5955_s3 = smov 8  }
  0x56   : > { %842 = vrot.lane.b32.xlu0 %v3423_v46, %s5921_s25  ;;  %v4329_v46 = vld [vmem:[%s5951_s19 + $0x8] ss:$12 sps:$4 sm:$0xff]   ;;  %s5952_s25 = sld [smem:[#allocation11_spill]] }
  0x57   : > { %3577 = vmatprep.mubr.msk.bf16.mxu1 %vm1037_vm8, %v4329_v46 }
  0xa1   : > { %v4784_v62 = vpop.permute.xlu1 %821 }
  0xb8   : > { %v791_v61 = vpop.permute.xlu0 %790  ;;  %v787_v5 = vpop.permute.xlu1 %786 }
  0xb9   : > { %v801_v63 = vsel %vm798_vm6, 0.0, %v791_v61  ;;  %v799_v7 = vsel %vm798_vm6, 0.0, %v787_v5  ;;  %v780_v61 = vld [vmem:[%s5952_s25 + $0x10] sm:$0xff] }
  0xba   : > { %v4788_v0 = vsel %vm803_vm7, %v801_v63, 0.0  ;;  %v804_v18 = vsel %vm803_vm7, %v799_v7, 0.0  ;;  %v4412_v63 = vmov 0  }
  0xbb   : > { %v826_v12 = vmul.f32 %v4784_v62, %v4788_v0  ;;  %v4800_v16 = vmul.f32 %v4598_v9, %v4788_v0  ;;  %v4814_v25 = vmul.f32 %v4598_v9, %v804_v18  ;;  %v824_v10 = vmul.f32 %v4784_v62, %v804_v18  ;;  %3739 = vset.pattern.permute.xlu1 %v4412_v63 }
  0xbc   : > { %v793_v3 = vpop.permute.xlu0 %792  ;;  %v4810_v23 = vpop.permute.xlu1 %835  ;;  %3740 = vset.pattern.permute.xlu0 %v4412_v63 }
  0xbd   : > { %v802_v4 = vsel %vm798_vm6, 0.0, %v793_v3  ;;  %v840_v34 = vmul.f32 %v4810_v23, %v4788_v0  ;;  %v838_v40 = vmul.f32 %v4810_v23, %v804_v18  ;;  %v778_v3 = vld [vmem:[%s5952_s25] sm:$0xff] }
  0xbe   : > { %v807_v6 = vsel %vm803_vm7, %v802_v4, 0.0  ;;  %v779_v4 = vld [vmem:[%s5952_s25 + $0x8] sm:$0xff] }
  0xbf   : > { %v3659_v11 = vpack.i.bf16 %v807_v6, %v4788_v0  ;;  %v827_v13 = vmul.f32 %v4784_v62, %v807_v6  ;;  %v4803_v17 = vmul.f32 %v4598_v9, %v807_v6  ;;  %v841_v29 = vmul.f32 %v4810_v23, %v807_v6 }
  0xc0   : > { %v789_v19 = vpop.permute.xlu0 %788  ;;  %v4835_v42 = vpop.permute.xlu1 %828 }
  0xc1   : > { %3660 = vrot.lane.b32.xlu1 %v3659_v11, %s4404_s20  ;;  %v3669_v14 = vpack.i.bf16 %v827_v13, %v826_v12  ;;  %v800_v21 = vsel %vm798_vm6, 0.0, %v789_v19  ;;  %v970_v22 = vpack.c.bf16 %v4803_v17, %v4800_v16  ;;  %v3679_v37 = vpack.i.bf16 %v841_v29, %v840_v34  ;;  %v4330_v16 = vld [vmem:[%s5951_s19 + $0x20] ss:$12 sps:$4 sm:$0xff]   ;;  %v4333_v17 = vld [vmem:[%s5951_s19 + $0x18] ss:$12 sps:$4 sm:$0xff]  }
  0xc2   : > { %v805_v24 = vsel %vm803_vm7, %v800_v21, 0.0  ;;  %v833_v47 = vmul.f32 %v4835_v42, %v4788_v0  ;;  %v834_v48 = vmul.f32 %v4835_v42, %v807_v6  ;;  %v831_v50 = vmul.f32 %v4835_v42, %v804_v18 }
  0xc3   : > { %3670 = vrot.lane.b32.xlu0 %v3669_v14, %s4405_s2  ;;  %v3664_v27 = vpack.i.bf16 %v805_v24, %v804_v18  ;;  %v825_v28 = vmul.f32 %v4784_v62, %v805_v24  ;;  %v4822_v31 = vmul.f32 %v4598_v9, %v805_v24  ;;  %v839_v41 = vmul.f32 %v4810_v23, %v805_v24 }
  0xc4   : > { %v4819_v30 = vpop.permute.xlu0 %813  ;;  %v3709_v32 = vpack.i.bf16 %v834_v48, %v833_v47  ;;  %v832_v52 = vmul.f32 %v4835_v42, %v805_v24 }
  0xc5   : > { %3665 = vrot.lane.b32.xlu1 %v3664_v27, %s4404_s20  ;;  %v3674_v33 = vpack.i.bf16 %v825_v28, %v824_v10  ;;  %v818_v15 = vmul.f32 %v4819_v30, %v4788_v0  ;;  %v819_v35 = vmul.f32 %v4819_v30, %v807_v6  ;;  %v969_v36 = vpack.c.bf16 %v4822_v31, %v4814_v25 }
  0xc6   : > { %v816_v44 = vmul.f32 %v4819_v30, %v804_v18  ;;  %v817_v45 = vmul.f32 %v4819_v30, %v805_v24  ;;  %v3689_v26 = vpack.i.bf16 %v839_v41, %v838_v40  ;;  %v3714_v54 = vpack.i.bf16 %v832_v52, %v831_v50 }
  0xc7   : > { %3675 = vrot.lane.b32.xlu0 %v3674_v33, %s4405_s2  ;;  %v3684_v43 = vpack.i.bf16 %v819_v35, %v818_v15 }
  0xc8   : > { %v3694_v49 = vpack.i.bf16 %v817_v45, %v816_v44  ;;  %v4850_v55 = vpop.permute.xlu0 %842 }
  0xc9   : > { %3680 = vrot.lane.b32.xlu1 %v3679_v37, %s4406_s24  ;;  %v847_v56 = vmul.f32 %v4850_v55, %v4788_v0  ;;  %v848_v57 = vmul.f32 %v4850_v55, %v807_v6  ;;  %v845_v58 = vmul.f32 %v4850_v55, %v804_v18  ;;  %v846_v59 = vmul.f32 %v4850_v55, %v805_v24  ;;  %v781_v0 = vld [vmem:[%s5952_s25 + $0x18] sm:$0xff] }
  0xcb   : > { %3685 = vrot.lane.b32.xlu0 %v3684_v43, %s5932_s28  ;;  %v3729_v60 = vpack.i.bf16 %v848_v57, %v847_v56  ;;  %v3734_v2 = vpack.i.bf16 %v846_v59, %v845_v58 }
  0xcd   : > { %3690 = vrot.lane.b32.xlu1 %v3689_v26, %s4406_s24 }
  0xcf   : > { %3695 = vrot.lane.b32.xlu0 %v3694_v49, %s5932_s28 }
  0xd1   : > { %3710 = vrot.lane.b32.xlu1 %v3709_v32, %s4408_s22 }
  0xd3   : > { %3700 = vrot.lane.b32.xlu0 %v3659_v11, %s5930_s1 }
  0xd5   : > { %3715 = vrot.lane.b32.xlu1 %v3714_v54, %s4408_s22 }
  0xd7   : > { %3705 = vrot.lane.b32.xlu0 %v3664_v27, %s5930_s1 }
  0xd9   : > { %3720 = vrot.lane.b32.xlu1 %v3659_v11, %s5927_s4 }
  0xdb   : > { %3725 = vrot.lane.b32.xlu0 %v3664_v27, %s5927_s4  ;;  %s4413_s4 = smov 9  }
  0xdd   : > { %3730 = vrot.lane.b32.xlu1 %v3729_v60, %s5925_s21 }
  0xdf   : > { %3735 = vrot.lane.b32.xlu0 %v3734_v2, %s5925_s21  ;;  %s5956_s21 = smov 2  }
  0xe1   : > { %999 = vperm.xlu1 %3739, %v780_v61  }
  0xe3   : > { %1004 = vperm.xlu0 %3740, %v781_v0  }
  0xe5   : > { %989 = vperm.xlu1 %3739, %v778_v3  }
  0xe9   : > { %994 = vperm.xlu1 %3739, %v779_v4  }
 0x133   : > { %v3661_v5 = vpop.permute.xlu1 %3660 }
 0x134   : > { %v3663_v6 = vunpack.i.h.bf16 %v3661_v5  ;;  %v3662_v7 = vunpack.i.l.bf16 %v3661_v5 }
 0x135   : > { %v3671_v11 = vpop.permute.xlu0 %3670 }
 0x136   : > { %v984_v12 = vpack.c.bf16 %v3663_v6, %v3662_v7  ;;  %v3673_v13 = vunpack.i.h.bf16 %v3671_v11  ;;  %v3672_v14 = vunpack.i.l.bf16 %v3671_v11 }
 0x137   : > { %v3666_v19 = vpop.permute.xlu1 %3665 }
 0x138   : > { %3478 = vmatprep.subr.bf16.mxu0 %v984_v12  ;;  %v976_v18 = vpack.c.bf16 %v3673_v13, %v3672_v14  ;;  %v3668_v21 = vunpack.i.h.bf16 %v3666_v19  ;;  %v3667_v24 = vunpack.i.l.bf16 %v3666_v19 }
 0x139   : > { %v3676_v27 = vpop.permute.xlu0 %3675 }
 0x13a   : > { %3479 = vmatpush3.bf16.msra.mxu0 %v976_v18  ;;  %v3678_v10 = vunpack.i.h.bf16 %v3676_v27  ;;  %v3677_v28 = vunpack.i.l.bf16 %v3676_v27  ;;  %v983_v29 = vpack.c.bf16 %v3668_v21, %v3667_v24 }
 0x13b   : > { %v3681_v33 = vpop.permute.xlu1 %3680 }
 0x13c   : > { %v3683_v34 = vunpack.i.h.bf16 %v3681_v33  ;;  %v3682_v15 = vunpack.i.l.bf16 %v3681_v33  ;;  %3480 = vmatprep.subr.bf16.mxu0 %v983_v29  ;;  %v975_v35 = vpack.c.bf16 %v3678_v10, %v3677_v28 }
 0x13d   : > { %v3686_v37 = vpop.permute.xlu0 %3685 }
 0x13e   : > { %v3688_v40 = vunpack.i.h.bf16 %v3686_v37  ;;  %v3687_v41 = vunpack.i.l.bf16 %v3686_v37  ;;  %3481 = vmatpush3.bf16.msra.mxu0 %v975_v35  ;;  %v982_v43 = vpack.c.bf16 %v3683_v34, %v3682_v15  ;;  %v4326_v37 = vld [vmem:[%s5951_s19] ss:$12 sps:$4 sm:$0xff]  }
 0x13f   : > { %v3691_v44 = vpop.permute.xlu1 %3690 }
 0x140   : > { %v3693_v45 = vunpack.i.h.bf16 %v3691_v44  ;;  %v3692_v26 = vunpack.i.l.bf16 %v3691_v44  ;;  %3482 = vmatprep.subr.bf16.mxu0 %v982_v43  ;;  %v974_v47 = vpack.c.bf16 %v3688_v40, %v3687_v41  ;;  %v4331_v40 = vld [vmem:[%s5951_s19 + $0x1c] ss:$12 sps:$4 sm:$0xff]  }
 0x141   : > { %v3696_v48 = vpop.permute.xlu0 %3695 }
 0x142   : > { %v3698_v49 = vunpack.i.h.bf16 %v3696_v48  ;;  %v3697_v32 = vunpack.i.l.bf16 %v3696_v48  ;;  %3483 = vmatpush3.bf16.msra.mxu0 %v974_v47  ;;  %v981_v50 = vpack.c.bf16 %v3693_v45, %v3692_v26 }
 0x143   : > { %v3711_v52 = vpop.permute.xlu1 %3710 }
 0x144   : > { %v3713_v54 = vunpack.i.h.bf16 %v3711_v52  ;;  %v3712_v39 = vunpack.i.l.bf16 %v3711_v52  ;;  %3484 = vmatprep.subr.bf16.mxu0 %v981_v50  ;;  %v973_v56 = vpack.c.bf16 %v3698_v49, %v3697_v32 }
 0x145   : > { %v3701_v57 = vpop.permute.xlu0 %3700 }
 0x146   : > { %v3703_v58 = vunpack.i.h.bf16 %v3701_v57  ;;  %v3702_v59 = vunpack.i.l.bf16 %v3701_v57  ;;  %3485 = vmatpush3.bf16.msra.mxu0 %v973_v56  ;;  %v980_v46 = vpack.c.bf16 %v3713_v54, %v3712_v39 }
 0x147   : > { %v3716_v60 = vpop.permute.xlu1 %3715 }
 0x148   : > { %v3718_v2 = vunpack.i.h.bf16 %v3716_v60  ;;  %v3717_v61 = vunpack.i.l.bf16 %v3716_v60  ;;  %3486 = vmatprep.subr.bf16.mxu0 %v980_v46  ;;  %v972_v0 = vpack.c.bf16 %v3703_v58, %v3702_v59 }
 0x149   : > { %v3706_v3 = vpop.permute.xlu0 %3705 }
 0x14a   : > { %v3708_v4 = vunpack.i.h.bf16 %v3706_v3  ;;  %v3707_v5 = vunpack.i.l.bf16 %v3706_v3  ;;  %3487 = vmatpush3.bf16.msra.mxu0 %v972_v0  ;;  %v979_v6 = vpack.c.bf16 %v3718_v2, %v3717_v61 }
 0x14b   : > { %v3721_v7 = vpop.permute.xlu1 %3720 }
 0x14c   : > { %v3723_v11 = vunpack.i.h.bf16 %v3721_v7  ;;  %v3722_v12 = vunpack.i.l.bf16 %v3721_v7  ;;  %3488 = vmatprep.subr.bf16.mxu0 %v979_v6  ;;  %v971_v13 = vpack.c.bf16 %v3708_v4, %v3707_v5 }
 0x14d   : > { %v3726_v14 = vpop.permute.xlu0 %3725 }
 0x14e   : > { %v3728_v18 = vunpack.i.h.bf16 %v3726_v14  ;;  %v3727_v19 = vunpack.i.l.bf16 %v3726_v14  ;;  %3489 = vmatpush3.bf16.msra.mxu0 %v971_v13  ;;  %v978_v21 = vpack.c.bf16 %v3723_v11, %v3722_v12 }
 0x14f   : > { %v3731_v24 = vpop.permute.xlu1 %3730 }
 0x150   : > { %3490 = vmatprep.subr.bf16.mxu0 %v978_v21  ;;  %v977_v27 = vpack.c.bf16 %v3728_v18, %v3727_v19  ;;  %v3733_v10 = vunpack.i.h.bf16 %v3731_v24  ;;  %v3732_v28 = vunpack.i.l.bf16 %v3731_v24 }
 0x151   : > { %v3736_v29 = vpop.permute.xlu0 %3735 }
 0x152   : > { %v3738_v33 = vunpack.i.h.bf16 %v3736_v29  ;;  %v3737_v34 = vunpack.i.l.bf16 %v3736_v29  ;;  %3491 = vmatpush3.bf16.msra.mxu0 %v970_v22  ;;  %v986_v15 = vpack.c.bf16 %v3733_v10, %v3732_v28 }
 0x153   : > { %3492 = vmatprep.subr.bf16.mxu0 %v977_v27 }
 0x154   : > { %3573 = vmatprep.subr.bf16.mxu1 %v986_v15  ;;  %v985_v35 = vpack.c.bf16 %v3738_v33, %v3737_v34 }
 0x155   : > { %3574 = vmatpush3.bf16.msra.mxu1 %v986_v15 }
 0x156   : > { %3493 = vmatpush3.bf16.msra.mxu0 %v969_v36  ;;  %3575 = vmatprep.subr.bf16.mxu1 %v985_v35 }
 0x159   : > { %1077 = vmatmul.mubr.bf16.vlgmr.msra.gmra.mxu0 %v4326_v37  ;;  %3576 = vmatpush3.bf16.msra.mxu1 %v985_v35 }
 0x15a   : > { %1084 = vmatprep.mubr.bf16.mxu0 %v4331_v40 }
 0x15c   : > { %3578 = vmatmul.mubr.msk.bf16.vlgmr.msra.gmra.mxu1 %vm1037_vm8, %v4330_v16  ;;  %v1000_v22 = vpop.permute.xlu1 %999 }
 0x15e   : > { %v1005_v58 = vpop.permute.xlu0 %1004 }
 0x160   : > { %v990_v43 = vpop.permute.xlu1 %989 }
 0x161   : > { %1085 = vmatmul.mubr.bf16.gmra.mxu0 %v4333_v17 }
 0x164   : > { %v995_v50 = vpop.permute.xlu1 %994 }
 0x219   : > { %v3494_v25 = vpop.f32.mrf.mxu0 }
 0x21b   : > { %v3495_v31 = vpop.f32.mrf.mxu0 }
 0x21c   : > { %v3579_v41 = vpop.f32.mrf.mxu1  ;;  %v3496_v45 = vadd.f32 %v3495_v31, %v3494_v25 }
 0x21d   : > { %v3497_v36 = vpop.f32.mrf.mxu0 }
 0x21e   : > { %v1127_v26 = vpop.f32.mrf.mxu1  ;;  %v1079_v49 = vadd.f32 %v3496_v45, %v990_v43 }
 0x21f   : > { %v3498_v44 = vpop.f32.mrf.mxu0 }
 0x220   : > { %v3499_v32 = vadd.f32 %v3498_v44, %v3497_v36  ;;  %v3580_v54 = vpop.f32.mrf.mxu1  ;;  %v1128_v59 = vadd.f32 %v1127_v26, %v1079_v49 }
 0x221   : > { %v3500_v47 = vpop.f32.mrf.mxu0 }
 0x222   : > { %v1082_v46 = vadd.f32 %v3499_v32, %v995_v50  ;;  %v1130_v61 = vpop.f32.mrf.mxu1  ;;  %v1146_v4 = vmul.f32 0.2, %v1128_v59  ;;  %vm1142_vm10 = vcmp.gt.f32.partialorder %v1128_v59, 0.0 }
 0x223   : > { %v3501_v48 = vpop.f32.mrf.mxu0 }
 0x224   : > { %v3502_v52 = vadd.f32 %v3501_v48, %v3500_v47  ;;  %v1131_v5 = vadd.f32 %v1130_v61, %v1082_v46  ;;  %v1150_v14 = vsel %vm1142_vm10, %v1128_v59, %v1146_v4  ;;  %vm2190_vm10 = vcmask 523264  }
 0x225   : > { %v3503_v39 = vpop.f32.mrf.mxu0 }
 0x226   : > { %v1087_v56 = vadd.f32 %v3502_v52, %v1000_v22  ;;  %v1147_v12 = vmul.f32 0.2, %v1131_v5  ;;  %vm1143_vm12 = vcmp.gt.f32.partialorder %v1131_v5, 0.0 }
 0x227   : > { %v3504_v57 = vpop.f32.mrf.mxu0 }
 0x228   : > { %v1136_v60 = vadd.f32 %v3579_v41, %v1087_v56  ;;  %v3505_v2 = vadd.f32 %v3504_v57, %v3503_v39  ;;  %v1151_v18 = vsel %vm1143_vm12, %v1131_v5, %v1147_v12  ;;  %v4337_v5 = vld [vmem:[%s5897_s5 + $0x8] ss:$12 sps:$4 sm:$0xff]   ;;  %v1162_v12 = vld [vmem:[%s5898_s6] sm:$0xff] }
 0x229   : > { %3585 = vmatprep.mubr.msk.bf16.mxu0 %vm1037_vm8, %v4337_v5 }
 0x22a   : > { %v1090_v0 = vadd.f32 %v3505_v2, %v1005_v58  ;;  %vm1144_vm9 = vcmp.gt.f32.partialorder %v1136_v60, 0.0  ;;  %v1148_v3 = vmul.f32 0.2, %v1136_v60 }
 0x22c   : > { %v1139_v6 = vadd.f32 %v3580_v54, %v1090_v0  ;;  %v1152_v7 = vsel %vm1144_vm9, %v1136_v60, %v1148_v3 }
 0x22d   : > { %1174 = vrot.lane.b32.xlu0 %v1152_v7, %s4399_s17 }
 0x22e   : > { %vm1145_vm11 = vcmp.gt.f32.partialorder %v1139_v6, 0.0  ;;  %v1149_v11 = vmul.f32 0.2, %v1139_v6 }
 0x230   : > { %v1153_v13 = vsel %vm1145_vm11, %v1139_v6, %v1149_v11 }
 0x231   : > { %1176 = vrot.lane.b32.xlu1 %v1153_v13, %s4399_s17  ;;  %1170 = vrot.lane.b32.xlu0 %v1150_v14, %s4399_s17  ;;  %v1163_v13 = vld [vmem:[%s5898_s6 + $0x8] sm:$0xff]  ;;  %v1165_v14 = vld [vmem:[%s5898_s6 + $0x18] sm:$0xff] }
 0x235   : > { %1172 = vrot.lane.b32.xlu1 %v1151_v18, %s4399_s17  ;;  %s5934_s17 = smov 112  }
 0x29f   : > { %v1175_v19 = vpop.permute.xlu0 %1174 }
 0x2a0   : > { %v1184_v21 = vsel %vm798_vm6, 0.0, %v1175_v19 }
 0x2a1   : > { %v1188_v24 = vsel %vm803_vm7, %v1184_v21, 0.0 }
 0x2a2   : > { %v1200_v15 = vmul.f32 %v1188_v24, %v4784_v62  ;;  %v1208_v44 = vmul.f32 %v1188_v24, %v4810_v23  ;;  %v1196_v26 = vmul.f32 %v1188_v24, %v4819_v30  ;;  %v4927_v47 = vmul.f32 %v4598_v9, %v1188_v24 }
 0x2a3   : > { %v1177_v27 = vpop.permute.xlu1 %1176  ;;  %v1171_v10 = vpop.permute.xlu0 %1170  ;;  %v1204_v60 = vmul.f32 %v1188_v24, %v4835_v42  ;;  %v1212_v4 = vmul.f32 %v1188_v24, %v4850_v55 }
 0x2a4   : > { %v1185_v28 = vsel %vm798_vm6, 0.0, %v1177_v27  ;;  %v1182_v29 = vsel %vm798_vm6, 0.0, %v1171_v10 }
 0x2a5   : > { %v1189_v33 = vsel %vm803_vm7, %v1185_v28, 0.0  ;;  %v1186_v37 = vsel %vm803_vm7, %v1182_v29, 0.0 }
 0x2a6   : > { %v3741_v34 = vpack.i.bf16 %v1189_v33, %v1188_v24  ;;  %v1201_v35 = vmul.f32 %v1189_v33, %v4784_v62  ;;  %v1198_v31 = vmul.f32 %v1186_v37, %v4784_v62  ;;  %v1209_v41 = vmul.f32 %v1189_v33, %v4810_v23 }
 0x2a7   : > { %v1173_v40 = vpop.permute.xlu1 %1172  ;;  %v1197_v45 = vmul.f32 %v1189_v33, %v4819_v30  ;;  %v4930_v48 = vmul.f32 %v4598_v9, %v1189_v33  ;;  %v4935_v32 = vmul.f32 %v4598_v9, %v1186_v37  ;;  %v1206_v39 = vmul.f32 %v1186_v37, %v4810_v23 }
 0x2a8   : > { %v1183_v16 = vsel %vm798_vm6, 0.0, %v1173_v40  ;;  %3742 = vrot.lane.b32.xlu0 %v3741_v34, %s4404_s20  ;;  %v3751_v17 = vpack.i.bf16 %v1201_v35, %v1200_v15  ;;  %v1194_v59 = vmul.f32 %v1186_v37, %v4819_v30  ;;  %v1202_v61 = vmul.f32 %v1186_v37, %v4835_v42 }
 0x2a9   : > { %v1187_v22 = vsel %vm803_vm7, %v1183_v16, 0.0  ;;  %v1335_v52 = vpack.c.bf16 %v4930_v48, %v4927_v47  ;;  %v3771_v54 = vpack.i.bf16 %v1197_v45, %v1196_v26  ;;  %v1213_v3 = vmul.f32 %v1189_v33, %v4850_v55  ;;  %v4338_v47 = vld [vmem:[%s5897_s5 + $0x20] ss:$12 sps:$4 sm:$0xff]   ;;  %v4341_v48 = vld [vmem:[%s5897_s5 + $0x18] ss:$12 sps:$4 sm:$0xff]  }
 0x2aa   : > { %3752 = vrot.lane.b32.xlu1 %v3751_v17, %s4405_s2  ;;  %v3746_v25 = vpack.i.bf16 %v1187_v22, %v1186_v37  ;;  %v1199_v36 = vmul.f32 %v1187_v22, %v4784_v62  ;;  %v3761_v62 = vpack.i.bf16 %v1209_v41, %v1208_v44  ;;  %v1207_v49 = vmul.f32 %v1187_v22, %v4810_v23 }
 0x2ab   : > { %v4938_v50 = vmul.f32 %v4598_v9, %v1187_v22  ;;  %v1195_v56 = vmul.f32 %v1187_v22, %v4819_v30  ;;  %v1205_v9 = vmul.f32 %v1189_v33, %v4835_v42  ;;  %v1203_v2 = vmul.f32 %v1187_v22, %v4835_v42  ;;  %v4336_v30 = vld [vmem:[%s5897_s5 + $0x4] ss:$12 sps:$4 sm:$0xff]  }
 0x2ac   : > { %3747 = vrot.lane.b32.xlu0 %v3746_v25, %s4404_s20  ;;  %v3756_v43 = vpack.i.bf16 %v1199_v36, %v1198_v31  ;;  %v3766_v58 = vpack.i.bf16 %v1207_v49, %v1206_v39  ;;  %1440 = vmatprep.mubr.bf16.mxu1 %v4336_v30  ;;  %v1211_v42 = vmul.f32 %v1187_v22, %v4850_v55  ;;  %vm4418_vm6 = vmmov 0  }
 0x2ad   : > { %v1334_v57 = vpack.c.bf16 %v4938_v50, %v4935_v32  ;;  %v3776_v46 = vpack.i.bf16 %v1195_v56, %v1194_v59  ;;  %v3786_v23 = vpack.i.bf16 %v1205_v9, %v1204_v60  ;;  %v3791_v0 = vpack.i.bf16 %v1203_v2, %v1202_v61  ;;  %v4342_v32 = vld [vmem:[%s5899_s7] sm:$0xff]  }
 0x2ae   : > { %3757 = vrot.lane.b32.xlu1 %v3756_v43, %s4405_s2  ;;  %v3811_v6 = vpack.i.bf16 %v1213_v3, %v1212_v4  ;;  %v1210_v7 = vmul.f32 %v1186_v37, %v4850_v55  ;;  %v1164_v55 = vld [vmem:[%s5898_s6 + $0x10] sm:$0xff]  ;;  %v1580_v50 = vand.u32 7, %v4564_v1  ;;  %s4425_s2 = smov 94  }
 0x2b0   : > { %3762 = vrot.lane.b32.xlu0 %v3761_v62, %s4406_s24  ;;  %v3816_v11 = vpack.i.bf16 %v1211_v42, %v1210_v7  ;;  %vm1581_vm13 = vcmp.gt.s32.totalorder %v1580_v50, 0  ;;  %vm1584_vm3 = vcmp.lt.s32.totalorder %v1580_v50, 7 }
 0x2b2   : > { %3772 = vrot.lane.b32.xlu1 %v3771_v54, %s5932_s28 }
 0x2b4   : > { %3767 = vrot.lane.b32.xlu0 %v3766_v58, %s4406_s24 }
 0x2b6   : > { %3777 = vrot.lane.b32.xlu1 %v3776_v46, %s5932_s28 }
 0x2b8   : > { %3787 = vrot.lane.b32.xlu0 %v3786_v23, %s4408_s22 }
 0x2ba   : > { %3782 = vrot.lane.b32.xlu1 %v3741_v34, %s5930_s1 }
 0x2bc   : > { %3792 = vrot.lane.b32.xlu0 %v3791_v0, %s4408_s22  ;;  %s5954_s22 = smov 118  }
 0x2be   : > { %3797 = vrot.lane.b32.xlu1 %v3746_v25, %s5930_s1 }
 0x2c0   : > { %3802 = vrot.lane.b32.xlu0 %v3741_v34, %s5953_s0 }
 0x2c2   : > { %3807 = vrot.lane.b32.xlu1 %v3746_v25, %s5953_s0 }
 0x2c4   : > { %3812 = vrot.lane.b32.xlu0 %v3811_v6, %s5954_s22 }
 0x2c6   : > { %3817 = vrot.lane.b32.xlu1 %v3816_v11, %s5954_s22 }
 0x2c8   : > { %1354 = vperm.xlu0 %3740, %v1162_v12  }
 0x2ca   : > { %1359 = vperm.xlu1 %3739, %v1163_v13  }
 0x2cc   : > { %1364 = vperm.xlu0 %3740, %v1164_v55  }
 0x2ce   : > { %1369 = vperm.xlu1 %3739, %v1165_v14  }
 0x31a   : > { %v3743_v18 = vpop.permute.xlu0 %3742 }
 0x31b   : > { %v3745_v19 = vunpack.i.h.bf16 %v3743_v18  ;;  %v3744_v21 = vunpack.i.l.bf16 %v3743_v18 }
 0x31c   : > { %v3753_v24 = vpop.permute.xlu1 %3752 }
 0x31d   : > { %v3755_v27 = vunpack.i.h.bf16 %v3753_v24  ;;  %v3754_v10 = vunpack.i.l.bf16 %v3753_v24  ;;  %v1349_v28 = vpack.c.bf16 %v3745_v19, %v3744_v21 }
 0x31e   : > { %v3748_v29 = vpop.permute.xlu0 %3747 }
 0x31f   : > { %v1341_v33 = vpack.c.bf16 %v3755_v27, %v3754_v10  ;;  %v3750_v34 = vunpack.i.h.bf16 %v3748_v29  ;;  %v3749_v15 = vunpack.i.l.bf16 %v3748_v29  ;;  %3510 = vmatprep.subr.bf16.mxu1 %v1349_v28 }
 0x320   : > { %v3758_v35 = vpop.permute.xlu1 %3757 }
 0x321   : > { %v3760_v37 = vunpack.i.h.bf16 %v3758_v35  ;;  %v3759_v40 = vunpack.i.l.bf16 %v3758_v35  ;;  %3511 = vmatpush3.bf16.msra.mxu1 %v1341_v33  ;;  %v1348_v16 = vpack.c.bf16 %v3750_v34, %v3749_v15 }
 0x322   : > { %v3763_v17 = vpop.permute.xlu0 %3762 }
 0x323   : > { %v1340_v22 = vpack.c.bf16 %v3760_v37, %v3759_v40  ;;  %v3765_v25 = vunpack.i.h.bf16 %v3763_v17  ;;  %v3764_v31 = vunpack.i.l.bf16 %v3763_v17  ;;  %3512 = vmatprep.subr.bf16.mxu1 %v1348_v16  ;;  %v4334_v40 = vld [vmem:[%s5897_s5] ss:$12 sps:$4 sm:$0xff]   ;;  %v4339_v16 = vld [vmem:[%s5897_s5 + $0x1c] ss:$12 sps:$4 sm:$0xff]  }
 0x324   : > { %v3773_v36 = vpop.permute.xlu1 %3772 }
 0x325   : > { %v3775_v41 = vunpack.i.h.bf16 %v3773_v36  ;;  %v3774_v43 = vunpack.i.l.bf16 %v3773_v36  ;;  %3513 = vmatpush3.bf16.msra.mxu1 %v1340_v22  ;;  %v1347_v44 = vpack.c.bf16 %v3765_v25, %v3764_v31 }
 0x326   : > { %v3768_v45 = vpop.permute.xlu0 %3767 }
 0x327   : > { %v1339_v26 = vpack.c.bf16 %v3775_v41, %v3774_v43  ;;  %v3770_v62 = vunpack.i.h.bf16 %v3768_v45  ;;  %v3769_v49 = vunpack.i.l.bf16 %v3768_v45  ;;  %3514 = vmatprep.subr.bf16.mxu1 %v1347_v44 }
 0x328   : > { %v3778_v54 = vpop.permute.xlu1 %3777 }
 0x329   : > { %v3780_v39 = vunpack.i.h.bf16 %v3778_v54  ;;  %v3779_v56 = vunpack.i.l.bf16 %v3778_v54  ;;  %3515 = vmatpush3.bf16.msra.mxu1 %v1339_v26  ;;  %v1346_v58 = vpack.c.bf16 %v3770_v62, %v3769_v49 }
 0x32a   : > { %v3788_v59 = vpop.permute.xlu0 %3787 }
 0x32b   : > { %v1338_v9 = vpack.c.bf16 %v3780_v39, %v3779_v56  ;;  %v3790_v46 = vunpack.i.h.bf16 %v3788_v59  ;;  %v3789_v60 = vunpack.i.l.bf16 %v3788_v59  ;;  %3516 = vmatprep.subr.bf16.mxu1 %v1346_v58 }
 0x32c   : > { %v3783_v23 = vpop.permute.xlu1 %3782 }
 0x32d   : > { %v3785_v2 = vunpack.i.h.bf16 %v3783_v23  ;;  %v3784_v61 = vunpack.i.l.bf16 %v3783_v23  ;;  %3517 = vmatpush3.bf16.msra.mxu1 %v1338_v9  ;;  %v1345_v0 = vpack.c.bf16 %v3790_v46, %v3789_v60 }
 0x32e   : > { %v3793_v30 = vpop.permute.xlu0 %3792 }
 0x32f   : > { %v1337_v3 = vpack.c.bf16 %v3785_v2, %v3784_v61  ;;  %v3795_v4 = vunpack.i.h.bf16 %v3793_v30  ;;  %v3794_v42 = vunpack.i.l.bf16 %v3793_v30  ;;  %3518 = vmatprep.subr.bf16.mxu1 %v1345_v0 }
 0x330   : > { %v3798_v5 = vpop.permute.xlu1 %3797 }
 0x331   : > { %v3800_v6 = vunpack.i.h.bf16 %v3798_v5  ;;  %v3799_v7 = vunpack.i.l.bf16 %v3798_v5  ;;  %3519 = vmatpush3.bf16.msra.mxu1 %v1337_v3  ;;  %v1344_v11 = vpack.c.bf16 %v3795_v4, %v3794_v42 }
 0x332   : > { %v3803_v12 = vpop.permute.xlu0 %3802 }
 0x333   : > { %v1336_v13 = vpack.c.bf16 %v3800_v6, %v3799_v7  ;;  %v3805_v55 = vunpack.i.h.bf16 %v3803_v12  ;;  %v3804_v14 = vunpack.i.l.bf16 %v3803_v12  ;;  %3520 = vmatprep.subr.bf16.mxu1 %v1344_v11 }
 0x334   : > { %v3808_v18 = vpop.permute.xlu1 %3807 }
 0x335   : > { %v3810_v19 = vunpack.i.h.bf16 %v3808_v18  ;;  %v3809_v21 = vunpack.i.l.bf16 %v3808_v18  ;;  %3521 = vmatpush3.bf16.msra.mxu1 %v1336_v13  ;;  %v1343_v24 = vpack.c.bf16 %v3805_v55, %v3804_v14 }
 0x336   : > { %v3813_v27 = vpop.permute.xlu0 %3812 }
 0x337   : > { %v3815_v10 = vunpack.i.h.bf16 %v3813_v27  ;;  %v3814_v28 = vunpack.i.l.bf16 %v3813_v27  ;;  %3522 = vmatprep.subr.bf16.mxu1 %v1343_v24  ;;  %v1342_v29 = vpack.c.bf16 %v3810_v19, %v3809_v21 }
 0x338   : > { %v3818_v33 = vpop.permute.xlu1 %3817 }
 0x339   : > { %v3820_v34 = vunpack.i.h.bf16 %v3818_v33  ;;  %v3819_v15 = vunpack.i.l.bf16 %v3818_v33  ;;  %3523 = vmatpush3.bf16.msra.mxu1 %v1335_v52  ;;  %v1351_v35 = vpack.c.bf16 %v3815_v10, %v3814_v28  ;;  %v5013_v52 = vsel %vm1581_vm13, 1.0, %v4397_v8 }
 0x33a   : > { %3524 = vmatprep.subr.bf16.mxu1 %v1342_v29  ;;  %1644 = vrot.lane.b32.xlu0 %v5013_v52, %s5955_s3  ;;  %s4419_s3 = smov 110  }
 0x33b   : > { %3581 = vmatprep.subr.bf16.mxu0 %v1351_v35  ;;  %v1350_v37 = vpack.c.bf16 %v3820_v34, %v3819_v15  ;;  %v3444_v15 = vsel %vm1584_vm3, 1.0, %v4397_v8 }
 0x33c   : > { %3582 = vmatpush3.bf16.msra.mxu0 %v1351_v35 }
 0x33d   : > { %3525 = vmatpush3.bf16.msra.mxu1 %v1334_v57  ;;  %3583 = vmatprep.subr.bf16.mxu0 %v1350_v37 }
 0x340   : > { %1441 = vmatmul.mubr.bf16.vlgmr.msra.gmra.mxu1 %v4334_v40  ;;  %3584 = vmatpush3.bf16.msra.mxu0 %v1350_v37 }
 0x341   : > { %1448 = vmatprep.mubr.bf16.mxu1 %v4339_v16  ;;  %3589 = vmatprep.subr.bf16.mxu0 %v4342_v32 }
 0x343   : > { %3586 = vmatmul.mubr.msk.bf16.vlgmr.msra.gmra.mxu0 %vm1037_vm8, %v4338_v47  ;;  %v1355_v31 = vpop.permute.xlu0 %1354 }
 0x344   : > { %3590 = vmatpush3.bf16.msra.mxu0 %v4342_v32 }
 0x345   : > { %3595 = vmatprep.subr.bf16.mxu0 %v4397_v8  ;;  %v1360_v49 = vpop.permute.xlu1 %1359 }
 0x347   : > { %v1365_v60 = vpop.permute.xlu0 %1364 }
 0x348   : > { %1449 = vmatmul.mubr.bf16.gmra.mxu1 %v4341_v48 }
 0x349   : > { %v1370_v5 = vpop.permute.xlu1 %1369 }
 0x3ac   : > { %v5057_v35 = vpop.permute.xlu0 %1644 }
 0x400   : > { %v3526_v57 = vpop.f32.mrf.mxu1 }
 0x402   : > { %v3527_v17 = vpop.f32.mrf.mxu1 }
 0x403   : > { %v3528_v22 = vadd.f32 %v3527_v17, %v3526_v57  ;;  %v3587_v25 = vpop.f32.mrf.mxu0 }
 0x404   : > { %v3529_v36 = vpop.f32.mrf.mxu1 }
 0x405   : > { %v1443_v41 = vadd.f32 %v3528_v22, %v1355_v31  ;;  %v1491_v43 = vpop.f32.mrf.mxu0 }
 0x406   : > { %v3530_v44 = vpop.f32.mrf.mxu1 }
 0x407   : > { %v3531_v45 = vadd.f32 %v3530_v44, %v3529_v36  ;;  %v1492_v26 = vadd.f32 %v1491_v43, %v1443_v41  ;;  %v3588_v62 = vpop.f32.mrf.mxu0 }
 0x408   : > { %v3532_v54 = vpop.f32.mrf.mxu1 }
 0x409   : > { %v1446_v39 = vadd.f32 %v3531_v45, %v1360_v49  ;;  %v1494_v56 = vpop.f32.mrf.mxu0  ;;  %v1506_v59 = vmul.f32 0.1, %v1492_v26 }
 0x40a   : > { %v3533_v58 = vpop.f32.mrf.mxu1 }
 0x40b   : > { %v3534_v9 = vadd.f32 %v3533_v58, %v3532_v54  ;;  %v1495_v46 = vadd.f32 %v1494_v56, %v1446_v39  ;;  %v1510_v30 = vadd.f32 %v1506_v59, %v4744_v38 }
 0x40c   : > { %v3535_v23 = vpop.f32.mrf.mxu1 }
 0x40d   : > { %v1451_v2 = vadd.f32 %v3534_v9, %v1365_v60  ;;  %v1507_v61 = vmul.f32 0.1, %v1495_v46 }
 0x40e   : > { %v3536_v0 = vpop.f32.mrf.mxu1 }
 0x40f   : > { %v1500_v3 = vadd.f32 %v3587_v25, %v1451_v2  ;;  %v1511_v4 = vadd.f32 %v1507_v61, %v4776_v51  ;;  %v3537_v42 = vadd.f32 %v3536_v0, %v3535_v23 }
 0x411   : > { %v1514_v6 = vpack.c.bf16 %v1511_v4, %v1510_v30  ;;  %v1454_v7 = vadd.f32 %v3537_v42, %v1370_v5  ;;  %v1508_v11 = vmul.f32 0.1, %v1500_v3 }
 0x413   : > { %v1503_v12 = vadd.f32 %v3588_v62, %v1454_v7  ;;  %3591 = vmatprep.mubr.msk.bf16.mxu0 %vm1524_vm14, %v1514_v6  ;;  %v1512_v55 = vadd.f32 %v1508_v11, %v4742_v20 }
 0x415   : > { %v1509_v13 = vmul.f32 0.1, %v1503_v12 }
 0x417   : > { %v1513_v14 = vadd.f32 %v1509_v13, %v4763_v53 }
 0x419   : > { %v1515_v18 = vpack.c.bf16 %v1513_v14, %v1512_v55 }
 0x41b   : > { %3592 = vmatmul.mubr.msk.bf16.vlgmr.msra.gmra.mxu0 %vm1524_vm14, %v1515_v18 }
 0x41c   : > { %3599 = vmatprep.mubr.msk.bf16.mxu0 %vm4418_vm6, %v4397_v8 }
 0x4db   : > { %v5023_v38 = vpop.f32.mrf.mxu0 }
 0x4dc   : > { %v1593_v51 = vmul.f32 0.2, %v5023_v38  ;;  %vm1589_vm15 = vcmp.gt.f32.partialorder %v5023_v38, 0.0 }
 0x4dd   : > { %v5027_v19 = vpop.f32.mrf.mxu0 }
 0x4de   : > { %v1597_v21 = vsel %vm1589_vm15, %v5023_v38, %v1593_v51  ;;  %v1591_v10 = vmul.f32 0.2, %v5027_v19  ;;  %vm1587_vm2 = vcmp.gt.f32.partialorder %v5027_v19, 0.0 }
 0x4df   : > { %1613 = vrot.lane.b32.xlu0 %v1597_v21, %s4413_s4  ;;  %v5031_v24 = vpop.f32.mrf.mxu0 }
 0x4e0   : > { %v1594_v20 = vmul.f32 0.2, %v5031_v24  ;;  %v2089_v53 = vpack.c.bf16 %v5031_v24, %v5023_v38  ;;  %vm1590_vm0 = vcmp.gt.f32.partialorder %v5031_v24, 0.0  ;;  %v1595_v34 = vsel %vm1587_vm2, %v5027_v19, %v1591_v10  ;;  %v4345_v10 = vld [vmem:[%s5900_s8 + $0x4] ss:$12 sps:$4 sm:$0xff]  }
 0x4e1   : > { %v5037_v27 = vpop.f32.mrf.mxu0  ;;  %1870 = vmatprep.mubr.bf16.mxu1 %v4345_v10 }
 0x4e2   : > { %v1592_v28 = vmul.f32 0.2, %v5037_v27  ;;  %v1598_v29 = vsel %vm1590_vm0, %v5031_v24, %v1594_v20  ;;  %vm1588_vm1 = vcmp.gt.f32.partialorder %v5037_v27, 0.0 }
 0x4e3   : > { %1615 = vrot.lane.b32.xlu1 %v1598_v29, %s4413_s4 }
 0x4e4   : > { %v1596_v33 = vsel %vm1588_vm1, %v5037_v27, %v1592_v28 }
 0x4e5   : > { %1611 = vrot.lane.b32.xlu0 %v1596_v33, %s4413_s4 }
 0x4e7   : > { %1609 = vrot.lane.b32.xlu1 %v1595_v34, %s4413_s4 }
 0x4e9   : > { %1636 = vrot.lane.b32.xlu0 %v3444_v15, %s5956_s21 }
 0x4eb   : > { %1658 = vrot.lane.b32.xlu1 %v5013_v52, %s5929_s18  ;;  %s5960_s18 = smov 127  }
 0x4ed   : > { %1665 = vrot.lane.b32.xlu0 %v3444_v15, %s4415_s30 }
 0x4ef   : > { %1651 = vrot.lane.b32.xlu1 %v3444_v15, %s5957_s27  ;;  %s5966_s27 = sld [smem:[#allocation15_spill]] }
 0x551   : > { %v1614_v37 = vpop.permute.xlu0 %1613 }
 0x552   : > { %v1624_v40 = vsel %vm1621_vm4, 0.0, %v1614_v37 }
 0x553   : > { %v1629_v16 = vsel %vm1626_vm5, %v1624_v40, 0.0  ;;  %v1603_v40 = vld [vmem:[%s5901_s9] sm:$0xff] }
 0x554   : > { %v1649_v22 = vmul.f32 %v5057_v35, %v1629_v16  ;;  %v5068_v41 = vmul.f32 %v5013_v52, %v1629_v16 }
 0x555   : > { %v1616_v47 = vpop.permute.xlu1 %1615 }
 0x556   : > { %v1625_v48 = vsel %vm1621_vm4, 0.0, %v1616_v47 }
 0x557   : > { %v1630_v32 = vsel %vm1626_vm5, %v1625_v48, 0.0  ;;  %v1612_v50 = vpop.permute.xlu0 %1611 }
 0x558   : > { %v1623_v57 = vsel %vm1621_vm4, 0.0, %v1612_v50  ;;  %v3821_v17 = vpack.i.bf16 %v1630_v32, %v1629_v16  ;;  %v1650_v25 = vmul.f32 %v5057_v35, %v1630_v32  ;;  %v5071_v43 = vmul.f32 %v5013_v52, %v1630_v32 }
 0x559   : > { %v1628_v31 = vsel %vm1626_vm5, %v1623_v57, 0.0  ;;  %v1610_v36 = vpop.permute.xlu1 %1609 }
 0x55a   : > { %v1622_v44 = vsel %vm1621_vm4, 0.0, %v1610_v36  ;;  %3822 = vrot.lane.b32.xlu1 %v3821_v17, %s4416_s29  ;;  %v3826_v45 = vpack.i.bf16 %v1650_v25, %v1649_v22  ;;  %v1793_v49 = vpack.c.bf16 %v5071_v43, %v5068_v41  ;;  %v1648_v56 = vmul.f32 %v5057_v35, %v1628_v31  ;;  %v4346_v41 = vld [vmem:[%s5900_s8 + $0x8] ss:$12 sps:$4 sm:$0xff]  }
 0x55b   : > { %v1627_v26 = vsel %vm1626_vm5, %v1622_v44, 0.0  ;;  %v5076_v62 = vpop.permute.xlu0 %1636  ;;  %v5094_v61 = vmul.f32 %v5013_v52, %v1628_v31  ;;  %v2088_v43 = vpack.c.bf16 %v5037_v27, %v5027_v19 }
 0x55c   : > { %3827 = vrot.lane.b32.xlu0 %v3826_v45, %s4406_s24  ;;  %v3831_v54 = vpack.i.bf16 %v1628_v31, %v1627_v26  ;;  %v1647_v39 = vmul.f32 %v5057_v35, %v1627_v26  ;;  %v1641_v59 = vmul.f32 %v5076_v62, %v1629_v16  ;;  %v1642_v23 = vmul.f32 %v5076_v62, %v1630_v32 }
 0x55d   : > { %v5083_v58 = vpop.permute.xlu1 %1658  ;;  %v5091_v2 = vmul.f32 %v5013_v52, %v1627_v26  ;;  %v1639_v6 = vmul.f32 %v5076_v62, %v1627_v26  ;;  %v1640_v7 = vmul.f32 %v5076_v62, %v1628_v31 }
 0x55e   : > { %3832 = vrot.lane.b32.xlu1 %v3831_v54, %s4416_s29  ;;  %v3841_v9 = vpack.i.bf16 %v1648_v56, %v1647_v39  ;;  %v1663_v46 = vmul.f32 %v5083_v58, %v1629_v16  ;;  %v1664_v60 = vmul.f32 %v5083_v58, %v1630_v32  ;;  %v1661_v30 = vmul.f32 %v5083_v58, %v1627_v26 }
 0x55f   : > { %v1662_v3 = vmul.f32 %v5083_v58, %v1628_v31  ;;  %v1792_v42 = vpack.c.bf16 %v5094_v61, %v5091_v2  ;;  %v3846_v5 = vpack.i.bf16 %v1642_v23, %v1641_v59  ;;  %v3861_v55 = vpack.i.bf16 %v1640_v7, %v1639_v6  ;;  %v5115_v20 = vpop.permute.xlu0 %1665 }
 0x560   : > { %3842 = vrot.lane.b32.xlu0 %v3841_v9, %s4406_s24  ;;  %v3836_v0 = vpack.i.bf16 %v1664_v60, %v1663_v46  ;;  %v1670_v28 = vmul.f32 %v5115_v20, %v1629_v16  ;;  %v1671_v29 = vmul.f32 %v5115_v20, %v1630_v32  ;;  %v1668_v33 = vmul.f32 %v5115_v20, %v1627_v26 }
 0x561   : > { %v5099_v4 = vpop.permute.xlu1 %1651  ;;  %v3851_v11 = vpack.i.bf16 %v1662_v3, %v1661_v30  ;;  %v1669_v34 = vmul.f32 %v5115_v20, %v1628_v31 }
 0x562   : > { %3837 = vrot.lane.b32.xlu1 %v3836_v0, %s5934_s17  ;;  %v1656_v12 = vmul.f32 %v5099_v4, %v1629_v16  ;;  %v1657_v13 = vmul.f32 %v5099_v4, %v1630_v32  ;;  %v1654_v18 = vmul.f32 %v5099_v4, %v1627_v26  ;;  %v1655_v51 = vmul.f32 %v5099_v4, %v1628_v31  ;;  %v1604_v16 = vld [vmem:[%s5901_s9 + $0x8] sm:$0xff] }
 0x563   : > { %v3891_v15 = vpack.i.bf16 %v1671_v29, %v1670_v28  ;;  %v3896_v37 = vpack.i.bf16 %v1669_v34, %v1668_v33 }
 0x564   : > { %3847 = vrot.lane.b32.xlu0 %v3846_v5, %s5932_s28  ;;  %v3856_v14 = vpack.i.bf16 %v1657_v13, %v1656_v12  ;;  %v3876_v21 = vpack.i.bf16 %v1655_v51, %v1654_v18 }
 0x566   : > { %3852 = vrot.lane.b32.xlu1 %v3851_v11, %s5934_s17 }
 0x568   : > { %3862 = vrot.lane.b32.xlu0 %v3861_v55, %s5932_s28 }
 0x56a   : > { %3857 = vrot.lane.b32.xlu1 %v3856_v14, %s5954_s22 }
 0x56c   : > { %3867 = vrot.lane.b32.xlu0 %v3821_v17, %s5930_s1 }
 0x56e   : > { %3877 = vrot.lane.b32.xlu1 %v3876_v21, %s5954_s22 }
 0x570   : > { %3872 = vrot.lane.b32.xlu0 %v3831_v54, %s5930_s1 }
 0x572   : > { %3882 = vrot.lane.b32.xlu1 %v3821_v17, %s4404_s20 }
 0x574   : > { %3887 = vrot.lane.b32.xlu0 %v3831_v54, %s4404_s20 }
 0x576   : > { %3892 = vrot.lane.b32.xlu1 %v3891_v15, %s4419_s3 }
 0x578   : > { %3897 = vrot.lane.b32.xlu0 %v3896_v37, %s4419_s3 }
 0x57a   : > { %1812 = vperm.xlu1 %3739, %v1603_v40  }
 0x57c   : > { %1817 = vperm.xlu0 %3740, %v1604_v16  }
 0x5cc   : > { %v3823_v47 = vpop.permute.xlu1 %3822 }
 0x5cd   : > { %v3825_v48 = vunpack.i.h.bf16 %v3823_v47  ;;  %v3824_v32 = vunpack.i.l.bf16 %v3823_v47 }
 0x5ce   : > { %v3828_v50 = vpop.permute.xlu0 %3827 }
 0x5cf   : > { %v3830_v57 = vunpack.i.h.bf16 %v3828_v50  ;;  %v3829_v17 = vunpack.i.l.bf16 %v3828_v50  ;;  %v1807_v22 = vpack.c.bf16 %v3825_v48, %v3824_v32 }
 0x5d0   : > { %v3833_v25 = vpop.permute.xlu1 %3832 }
 0x5d1   : > { %v1799_v31 = vpack.c.bf16 %v3830_v57, %v3829_v17  ;;  %v3835_v36 = vunpack.i.h.bf16 %v3833_v25  ;;  %v3834_v44 = vunpack.i.l.bf16 %v3833_v25  ;;  %3545 = vmatprep.subr.bf16.mxu1 %v1807_v22 }
 0x5d2   : > { %v3843_v45 = vpop.permute.xlu0 %3842 }
 0x5d3   : > { %v3845_v26 = vunpack.i.h.bf16 %v3843_v45  ;;  %v3844_v54 = vunpack.i.l.bf16 %v3843_v45  ;;  %3546 = vmatpush3.bf16.msra.mxu1 %v1799_v31  ;;  %v1806_v39 = vpack.c.bf16 %v3835_v36, %v3834_v44 }
 0x5d4   : > { %v3838_v56 = vpop.permute.xlu1 %3837 }
 0x5d5   : > { %v1798_v59 = vpack.c.bf16 %v3845_v26, %v3844_v54  ;;  %v3840_v9 = vunpack.i.h.bf16 %v3838_v56  ;;  %v3839_v46 = vunpack.i.l.bf16 %v3838_v56  ;;  %3547 = vmatprep.subr.bf16.mxu1 %v1806_v39 }
 0x5d6   : > { %v3848_v60 = vpop.permute.xlu0 %3847 }
 0x5d7   : > { %v3850_v23 = vunpack.i.h.bf16 %v3848_v60  ;;  %v3849_v0 = vunpack.i.l.bf16 %v3848_v60  ;;  %3548 = vmatpush3.bf16.msra.mxu1 %v1798_v59  ;;  %v1805_v30 = vpack.c.bf16 %v3840_v9, %v3839_v46  ;;  %v4343_v60 = vld [vmem:[%s5900_s8] ss:$12 sps:$4 sm:$0xff]  }
 0x5d8   : > { %v3853_v3 = vpop.permute.xlu1 %3852 }
 0x5d9   : > { %v1797_v5 = vpack.c.bf16 %v3850_v23, %v3849_v0  ;;  %v3855_v6 = vunpack.i.h.bf16 %v3853_v3  ;;  %v3854_v7 = vunpack.i.l.bf16 %v3853_v3  ;;  %3549 = vmatprep.subr.bf16.mxu1 %v1805_v30 }
 0x5da   : > { %v3863_v11 = vpop.permute.xlu0 %3862 }
 0x5db   : > { %v3865_v12 = vunpack.i.h.bf16 %v3863_v11  ;;  %v3864_v13 = vunpack.i.l.bf16 %v3863_v11  ;;  %3550 = vmatpush3.bf16.msra.mxu1 %v1797_v5  ;;  %v1804_v55 = vpack.c.bf16 %v3855_v6, %v3854_v7 }
 0x5dc   : > { %v3858_v14 = vpop.permute.xlu1 %3857 }
 0x5dd   : > { %v1796_v18 = vpack.c.bf16 %v3865_v12, %v3864_v13  ;;  %v3860_v51 = vunpack.i.h.bf16 %v3858_v14  ;;  %v3859_v21 = vunpack.i.l.bf16 %v3858_v14  ;;  %3551 = vmatprep.subr.bf16.mxu1 %v1804_v55 }
 0x5de   : > { %v3868_v10 = vpop.permute.xlu0 %3867 }
 0x5df   : > { %v3870_v28 = vunpack.i.h.bf16 %v3868_v10  ;;  %v3869_v29 = vunpack.i.l.bf16 %v3868_v10  ;;  %3552 = vmatpush3.bf16.msra.mxu1 %v1796_v18  ;;  %v1803_v33 = vpack.c.bf16 %v3860_v51, %v3859_v21 }
 0x5e0   : > { %v3878_v34 = vpop.permute.xlu1 %3877 }
 0x5e1   : > { %v1795_v15 = vpack.c.bf16 %v3870_v28, %v3869_v29  ;;  %v3880_v37 = vunpack.i.h.bf16 %v3878_v34  ;;  %v3879_v40 = vunpack.i.l.bf16 %v3878_v34  ;;  %3553 = vmatprep.subr.bf16.mxu1 %v1803_v33 }
 0x5e2   : > { %v3873_v16 = vpop.permute.xlu0 %3872 }
 0x5e3   : > { %v3875_v47 = vunpack.i.h.bf16 %v3873_v16  ;;  %v3874_v48 = vunpack.i.l.bf16 %v3873_v16  ;;  %3554 = vmatpush3.bf16.msra.mxu1 %v1795_v15  ;;  %v1802_v32 = vpack.c.bf16 %v3880_v37, %v3879_v40 }
 0x5e4   : > { %v3883_v50 = vpop.permute.xlu1 %3882 }
 0x5e5   : > { %v1794_v57 = vpack.c.bf16 %v3875_v47, %v3874_v48  ;;  %v3885_v17 = vunpack.i.h.bf16 %v3883_v50  ;;  %v3884_v22 = vunpack.i.l.bf16 %v3883_v50  ;;  %3555 = vmatprep.subr.bf16.mxu1 %v1802_v32 }
 0x5e6   : > { %v3888_v25 = vpop.permute.xlu0 %3887 }
 0x5e7   : > { %v3890_v31 = vunpack.i.h.bf16 %v3888_v25  ;;  %v3889_v36 = vunpack.i.l.bf16 %v3888_v25  ;;  %3556 = vmatpush3.bf16.msra.mxu1 %v1794_v57  ;;  %v1801_v44 = vpack.c.bf16 %v3885_v17, %v3884_v22 }
 0x5e8   : > { %v3893_v45 = vpop.permute.xlu1 %3892 }
 0x5e9   : > { %v3895_v26 = vunpack.i.h.bf16 %v3893_v45  ;;  %v3894_v54 = vunpack.i.l.bf16 %v3893_v45  ;;  %3557 = vmatprep.subr.bf16.mxu1 %v1801_v44  ;;  %v1800_v39 = vpack.c.bf16 %v3890_v31, %v3889_v36  ;;  %v4347_v44 = vld [vmem:[%s5902_s10 + $0x4] ss:$8 sps:$4 sm:$0xff]  }
 0x5ea   : > { %v3898_v56 = vpop.permute.xlu0 %3897 }
 0x5eb   : > { %v1809_v59 = vpack.c.bf16 %v3895_v26, %v3894_v54  ;;  %v3900_v9 = vunpack.i.h.bf16 %v3898_v56  ;;  %v3899_v46 = vunpack.i.l.bf16 %v3898_v56  ;;  %3558 = vmatpush3.bf16.msra.mxu1 %v1793_v49 }
 0x5ec   : > { %3559 = vmatprep.subr.bf16.mxu1 %v1800_v39 }
 0x5ed   : > { %3596 = vmatpush3.bf16.msra.mxu0 %v1809_v59  ;;  %v1808_v23 = vpack.c.bf16 %v3900_v9, %v3899_v46 }
 0x5ee   : > { %3597 = vmatprep.subr.bf16.mxu0 %v4397_v8 }
 0x5ef   : > { %3560 = vmatpush3.bf16.msra.mxu1 %v1792_v42 }
 0x5f0   : > { %3603 = vmatprep.subr.bf16.mxu1 %v4397_v8 }
 0x5f1   : > { %3598 = vmatpush3.bf16.msra.mxu0 %v1808_v23 }
 0x5f2   : > { %1871 = vmatmul.mubr.bf16.vlgmr.msra.gmra.mxu1 %v4343_v60  ;;  %2045 = vmatprep.subr.bf16.mxu0 %v4412_v63 }
 0x5f3   : > { %3604 = vmatpush3.bf16.msra.mxu1 %v2089_v53  ;;  %3607 = vmatprep.mubr.msk.bf16.mxu1 %vm4418_vm6, %v4397_v8  ;;  %vm2363_vm6 = vcmask 277504  }
 0x5f4   : > { %3600 = vmatmul.mubr.msk.bf16.vlgmr.msra.gmra.mxu0 %vm1037_vm8, %v4346_v41  ;;  %3605 = vmatprep.subr.bf16.mxu1 %v4397_v8 }
 0x5f5   : > { %v1813_v42 = vpop.permute.xlu1 %1812  ;;  %3451 = vmatprep.mubr.msk.bf16.mxu0 %vm1524_vm14, %v4347_v44 }
 0x5f7   : > { %3606 = vmatpush3.bf16.msra.mxu1 %v2088_v43  ;;  %v1818_v7 = vpop.permute.xlu0 %1817 }
 0x6b2   : > { %v3561_v49 = vpop.f32.mrf.mxu1 }
 0x6b4   : > { %v3562_v2 = vpop.f32.mrf.mxu1  ;;  %v1913_v61 = vpop.f32.mrf.mxu0 }
 0x6b5   : > { %v3563_v0 = vadd.f32 %v3562_v2, %v3561_v49 }
 0x6b6   : > { %v3564_v30 = vpop.f32.mrf.mxu1  ;;  %v3601_v3 = vpop.f32.mrf.mxu0 }
 0x6b7   : > { %v1873_v38 = vadd.f32 %v3563_v0, %v1813_v42 }
 0x6b8   : > { %v3565_v24 = vpop.f32.mrf.mxu1  ;;  %v1916_v53 = vpop.f32.mrf.mxu0 }
 0x6b9   : > { %v1914_v5 = vadd.f32 %v1913_v61, %v1873_v38  ;;  %v3566_v6 = vadd.f32 %v3565_v24, %v3564_v30 }
 0x6ba   : > { %v3602_v11 = vpop.f32.mrf.mxu0 }
 0x6bb   : > { %v1922_v12 = vmul.f32 0.2, %v1914_v5  ;;  %v1876_v13 = vadd.f32 %v3566_v6, %v1818_v7  ;;  %vm1920_vm7 = vcmp.gt.f32.partialorder %v1914_v5, 0.0 }
 0x6bd   : > { %v1917_v55 = vadd.f32 %v1916_v53, %v1876_v13  ;;  %v1924_v19 = vsel %vm1920_vm7, %v1914_v5, %v1922_v12  ;;  %vm2540_vm7 = vcmask 777216  }
 0x6be   : > { %1932 = vrot.lane.b32.xlu1 %v1924_v19, %s4413_s4 }
 0x6bf   : > { %v1923_v27 = vmul.f32 0.2, %v1917_v55  ;;  %vm1921_vm9 = vcmp.gt.f32.partialorder %v1917_v55, 0.0 }
 0x6c1   : > { %v1925_v14 = vsel %vm1921_vm9, %v1917_v55, %v1923_v27  ;;  %vm2519_vm9 = vcmask 785408  }
 0x6c2   : > { %1934 = vrot.lane.b32.xlu0 %v1925_v14, %s4413_s4  ;;  %v4353_v14 = vld [vmem:[%s5905_s13 + $0x34] ss:$8 sps:$4 sm:$0xff]   ;;  %s4422_s4 = smov 34  }
 0x730   : > { %v1933_v18 = vpop.permute.xlu1 %1932 }
 0x731   : > { %v1938_v51 = vsel %vm1621_vm4, 0.0, %v1933_v18 }
 0x732   : > { %v1940_v21 = vsel %vm1626_vm5, %v1938_v51, 0.0  ;;  %v4350_v51 = vld [vmem:[%s5902_s10] ss:$8 sps:$4 sm:$0xff]  }
 0x733   : > { %v1950_v34 = vmul.f32 %v1940_v21, %v5083_v58  ;;  %v1948_v16 = vmul.f32 %v1940_v21, %v5099_v4  ;;  %v5174_v47 = vmul.f32 %v5013_v52, %v1940_v21  ;;  %v1946_v57 = vmul.f32 %v1940_v21, %v5057_v35 }
 0x734   : > { %v1935_v10 = vpop.permute.xlu0 %1934  ;;  %v1952_v31 = vmul.f32 %v1940_v21, %v5115_v20 }
 0x735   : > { %v1939_v28 = vsel %vm1621_vm4, 0.0, %v1935_v10  ;;  %vm2280_vm4 = vcmask 138240  }
 0x736   : > { %v1941_v29 = vsel %vm1626_vm5, %v1939_v28, 0.0  ;;  %vm2334_vm5 = vcmask 146432  }
 0x737   : > { %v3901_v33 = vpack.i.bf16 %v1941_v29, %v1940_v21  ;;  %v1951_v15 = vmul.f32 %v1941_v29, %v5083_v58  ;;  %v1949_v37 = vmul.f32 %v1941_v29, %v5099_v4  ;;  %v5177_v48 = vmul.f32 %v5013_v52, %v1941_v29 }
 0x738   : > { %v1947_v50 = vmul.f32 %v1941_v29, %v5057_v35  ;;  %v1945_v4 = vmul.f32 %v1941_v29, %v5076_v62  ;;  %v1944_v52 = vmul.f32 %v1940_v21, %v5076_v62  ;;  %v1953_v25 = vmul.f32 %v1941_v29, %v5115_v20  ;;  %v1928_v35 = vld [vmem:[%s5903_s11] sm:$0xff]  ;;  %v1929_v62 = vld [vmem:[%s5903_s11 + $0x8] sm:$0xff]  ;;  %v4351_v21 = vld [vmem:[%s5905_s13 + $0x30] ss:$8 sps:$4 sm:$0xff]  }
 0x739   : > { %3902 = vrot.lane.b32.xlu1 %v3901_v33, %s4416_s29  ;;  %v3906_v40 = vpack.i.bf16 %v1951_v15, %v1950_v34  ;;  %v3911_v32 = vpack.i.bf16 %v1949_v37, %v1948_v16  ;;  %v2014_v58 = vpack.c.bf16 %v5177_v48, %v5174_v47  ;;  %v4349_v20 = vld [vmem:[%s5904_s12] sm:$0xff]   ;;  %v4357_v37 = vld [vmem:[%s5905_s13 + $0x10] ss:$8 sps:$4 sm:$0xff]  }
 0x73a   : > { %v3921_v17 = vpack.i.bf16 %v1947_v50, %v1946_v57  ;;  %v3926_v22 = vpack.i.bf16 %v1945_v4, %v1944_v52  ;;  %v3936_v36 = vpack.i.bf16 %v1953_v25, %v1952_v31  ;;  %3608 = vmatmul.mubr.msk.bf16.vlgmr.msra.gmra.mxu1 %vm1037_vm8, %v4349_v20  ;;  %v4354_v29 = vld [vmem:[%s5905_s13 + $0x20] ss:$8 sps:$4 sm:$0xff]  }
 0x73b   : > { %3907 = vrot.lane.b32.xlu0 %v3906_v40, %s5934_s17  ;;  %v4362_v40 = vld [vmem:[%s5905_s13 + $0x4] ss:$8 sps:$4 sm:$0xff]   ;;  %v4360_v16 = vld [vmem:[%s5905_s13] ss:$8 sps:$4 sm:$0xff]  }
 0x73d   : > { %3912 = vrot.lane.b32.xlu1 %v3911_v32, %s5954_s22  ;;  %s5958_s22 = smov 16  }
 0x73f   : > { %3917 = vrot.lane.b32.xlu0 %v3901_v33, %s4404_s20  ;;  %s5959_s20 = smov 126  }
 0x741   : > { %3922 = vrot.lane.b32.xlu1 %v3921_v17, %s4406_s24  ;;  %s5961_s24 = sld [smem:[#allocation12_spill]] }
 0x743   : > { %3927 = vrot.lane.b32.xlu0 %v3926_v22, %s5932_s28  ;;  %s4420_s28 = smov 17  }
 0x745   : > { %3932 = vrot.lane.b32.xlu1 %v3901_v33, %s5930_s1  ;;  %v4356_v33 = vld [vmem:[%s5905_s13 + $0x24] ss:$8 sps:$4 sm:$0xff]   ;;  %s4421_s1 = smov 32  }
 0x747   : > { %3937 = vrot.lane.b32.xlu0 %v3936_v36, %s4419_s3 }
 0x749   : > { %2025 = vperm.xlu1 %3739, %v1928_v35   ;;  %v2237_v35 = vadd.s32 128, %v4564_v1 }
 0x74b   : > { %2030 = vperm.xlu0 %3740, %v1929_v62   ;;  %v2238_v62 = vand.u32 15, %v4564_v1  ;;  %v2239_v44 = vand.u32 15, %v2237_v35 }
 0x74d   : > { %vm2240_vm12 = vcmp.gt.s32.totalorder %v2238_v62, 0  ;;  %vm2241_vm13 = vcmp.gt.s32.totalorder %v2239_v44, 0  ;;  %vm2246_vm0 = vcmp.lt.s32.totalorder %v2238_v62, 15  ;;  %vm2247_vm1 = vcmp.lt.s32.totalorder %v2239_v44, 15 }
 0x7ab   : > { %v3903_v45 = vpop.permute.xlu1 %3902 }
 0x7ac   : > { %v3905_v26 = vunpack.i.h.bf16 %v3903_v45  ;;  %v3904_v54 = vunpack.i.l.bf16 %v3903_v45 }
 0x7ad   : > { %v3908_v39 = vpop.permute.xlu0 %3907 }
 0x7ae   : > { %v2021_v56 = vpack.c.bf16 %v3905_v26, %v3904_v54  ;;  %v3910_v59 = vunpack.i.h.bf16 %v3908_v39  ;;  %v3909_v9 = vunpack.i.l.bf16 %v3908_v39 }
 0x7af   : > { %v3913_v46 = vpop.permute.xlu1 %3912 }
 0x7b0   : > { %2046 = vmatpush1.bf16.msra.mxu0 %v2021_v56  ;;  %v2020_v60 = vpack.c.bf16 %v3910_v59, %v3909_v9  ;;  %v3915_v23 = vunpack.i.h.bf16 %v3913_v46  ;;  %v3914_v41 = vunpack.i.l.bf16 %v3913_v46  ;;  %v5262_v56 = vsel %vm2240_vm12, 1.0, %v4397_v8 }
 0x7b1   : > { %2047 = vmatprep.subr.bf16.mxu0 %v4412_v63  ;;  %v3918_v43 = vpop.permute.xlu0 %3917  ;;  %v5268_v46 = vsel %vm2241_vm13, 1.0, %v4397_v8  ;;  %vm2444_vm12 = vcmask 916480   ;;  %vm2417_vm13 = vcmask 1031168  }
 0x7b2   : > { %v2019_v49 = vpack.c.bf16 %v3915_v23, %v3914_v41  ;;  %v3920_v2 = vunpack.i.h.bf16 %v3918_v43  ;;  %v3919_v61 = vunpack.i.l.bf16 %v3918_v43  ;;  %v3465_v23 = vsel %vm2246_vm0, 1.0, %v4397_v8 }
 0x7b3   : > { %v3923_v42 = vpop.permute.xlu1 %3922  ;;  %vm2567_vm0 = vcmask 769024  }
 0x7b4   : > { %2048 = vmatpush1.bf16.msra.mxu0 %v2020_v60  ;;  %v2018_v0 = vpack.c.bf16 %v3920_v2, %v3919_v61  ;;  %v3925_v30 = vunpack.i.h.bf16 %v3923_v42  ;;  %v3924_v3 = vunpack.i.l.bf16 %v3923_v42  ;;  %v3941_v2 = vpack.i.bf16 %v5268_v46, %v5262_v56 }
 0x7b5   : > { %2049 = vmatprep.subr.bf16.mxu0 %v4412_v63  ;;  %v3928_v38 = vpop.permute.xlu0 %3927 }
 0x7b6   : > { %v2017_v24 = vpack.c.bf16 %v3925_v30, %v3924_v3  ;;  %v3930_v53 = vunpack.i.h.bf16 %v3928_v38  ;;  %v3929_v5 = vunpack.i.l.bf16 %v3928_v38 }
 0x7b7   : > { %v3933_v6 = vpop.permute.xlu1 %3932 }
 0x7b8   : > { %2050 = vmatpush1.bf16.msra.mxu0 %v2019_v49  ;;  %v2016_v7 = vpack.c.bf16 %v3930_v53, %v3929_v5  ;;  %v3935_v11 = vunpack.i.h.bf16 %v3933_v6  ;;  %v3934_v12 = vunpack.i.l.bf16 %v3933_v6  ;;  %v3466_v49 = vsel %vm2247_vm1, 1.0, %v4397_v8 }
 0x7b9   : > { %2051 = vmatprep.subr.bf16.mxu0 %v4412_v63  ;;  %v3938_v55 = vpop.permute.xlu0 %3937  ;;  %v3946_v42 = vpack.i.bf16 %v3466_v49, %v3465_v23 }
 0x7ba   : > { %v2015_v13 = vpack.c.bf16 %v3935_v11, %v3934_v12  ;;  %v3940_v19 = vunpack.i.h.bf16 %v3938_v55  ;;  %v3939_v27 = vunpack.i.l.bf16 %v3938_v55 }
 0x7bc   : > { %2052 = vmatpush1.bf16.msra.mxu0 %v2018_v0  ;;  %v2022_v18 = vpack.c.bf16 %v3940_v19, %v3939_v27 }
 0x7bd   : > { %2053 = vmatprep.subr.bf16.mxu0 %v4412_v63 }
 0x7c0   : > { %2054 = vmatpush1.bf16.msra.mxu0 %v2017_v24 }
 0x7c1   : > { %2055 = vmatprep.subr.bf16.mxu0 %v4412_v63 }
 0x7c4   : > { %2056 = vmatpush1.bf16.msra.mxu0 %v2016_v7  ;;  %v2026_v47 = vpop.permute.xlu1 %2025 }
 0x7c5   : > { %2057 = vmatprep.subr.bf16.mxu0 %v4412_v63 }
 0x7c8   : > { %2058 = vmatpush1.bf16.msra.mxu0 %v2015_v13 }
 0x7c9   : > { %2059 = vmatprep.subr.bf16.mxu0 %v4412_v63 }
 0x7cc   : > { %2060 = vmatpush1.bf16.msra.mxu0 %v2014_v58  ;;  %v2031_v58 = vpop.permute.xlu0 %2030 }
 0x7cd   : > { %2075 = vmatprep.subr.bf16.mxu0 %v4412_v63 }
 0x7d0   : > { %2076 = vmatpush2.bf16.msra.mxu0 %v2022_v18 }
 0x7d1   : > { %2202 = vmatprep.subr.bf16.mxu0 %v4353_v14 }
 0x7d3   : > { %2078 = vmatmul.mubr.bf16.vlgmr.msra.gmra.mxu0 %v4350_v51 }
 0x7d4   : > { %2203 = vmatpush1.bf16.msra.mxu0 %v4351_v21  ;;  %2226 = vmatprep.mubr.bf16.mxu0 %v4412_v63  ;;  %v4359_v63 = vld [vmem:[%s5905_s13 + $0x14] ss:$8 sps:$4 sm:$0xff]  }
 0x7d5   : > { %2204 = vmatprep.subr.bf16.mxu0 %v4356_v33 }
 0x7d8   : > { %2205 = vmatpush1.bf16.msra.mxu0 %v4354_v29 }
 0x7d9   : > { %2206 = vmatprep.subr.bf16.mxu0 %v4359_v63 }
 0x7dc   : > { %2207 = vmatpush1.bf16.msra.mxu0 %v4357_v37 }
 0x7dd   : > { %2208 = vmatprep.subr.bf16.mxu0 %v4362_v40 }
 0x7e0   : > { %2209 = vmatpush1.bf16.msra.mxu0 %v4360_v16 }
 0x7fa   : > { %v2134_v10 = vpop.f32.mrf.mxu1 }
 0x7fc   : > { %v3609_v28 = vpop.f32.mrf.mxu1 }
 0x7fe   : > { %v2137_v34 = vpop.f32.mrf.mxu1 }
 0x800   : > { %v3610_v15 = vpop.f32.mrf.mxu1 }
 0x893   : > { %v2079_v48 = vpop.f32.mrf.mxu0 }
 0x894   : > { %v2080_v32 = vadd.f32 %v2079_v48, %v2026_v47 }
 0x895   : > { %v2081_v50 = vpop.f32.mrf.mxu0 }
 0x896   : > { %v2090_v4 = vmul.f32 0.1, %v2080_v32 }
 0x897   : > { %v2082_v57 = vpop.f32.mrf.mxu0 }
 0x898   : > { %v2083_v17 = vadd.f32 %v2082_v57, %v2031_v58  ;;  %v2135_v25 = vadd.f32 %v2134_v10, %v2090_v4 }
 0x899   : > { %v2084_v52 = vpop.f32.mrf.mxu0 }
 0x89a   : > { %v2091_v22 = vmul.f32 0.1, %v2083_v17 }
 0x89c   : > { %v2138_v31 = vadd.f32 %v2137_v34, %v2091_v22 }
 0x89e   : > { %v2141_v36 = vpack.c.bf16 %v2138_v31, %v2135_v25 }
 0x8a0   : > { %3462 = vmatmul.mubr.msk.bf16.vlgmr.msra.gmra.mxu0 %vm2190_vm10, %v2141_v36  ;;  %vm2492_vm10 = vcmask 900096  }
 0x960   : > { %v5249_v20 = vpop.f32.mrf.mxu0 }
 0x961   : > { %v2256_v45 = vmul.f32 0.2, %v5249_v20  ;;  %vm2252_vm11 = vcmp.gt.f32.partialorder %v5249_v20, 0.0 }
 0x962   : > { %v5253_v26 = vpop.f32.mrf.mxu0 }
 0x963   : > { %v2257_v54 = vmul.f32 0.2, %v5253_v26  ;;  %v2260_v39 = vsel %vm2252_vm11, %v5249_v20, %v2256_v45  ;;  %vm2253_vm15 = vcmp.gt.f32.partialorder %v5253_v26, 0.0  ;;  %vm2465_vm11 = vcmask 908288  }
 0x964   : > { %2272 = vrot.lane.b32.xlu1 %v2260_v39, %s4420_s28  ;;  %v5259_v1 = vpop.f32.mrf.mxu0 }
 0x965   : > { %v2258_v59 = vmul.f32 0.2, %v5259_v1  ;;  %v2261_v9 = vsel %vm2253_vm15, %v5253_v26, %v2257_v54  ;;  %vm2254_vm2 = vcmp.gt.f32.partialorder %v5259_v1, 0.0  ;;  %vm2390_vm15 = vcmask 1039360  }
 0x966   : > { %2274 = vrot.lane.b32.xlu0 %v2261_v9, %s4420_s28  ;;  %v5271_v60 = vpop.f32.mrf.mxu0 }
 0x967   : > { %v2259_v41 = vmul.f32 0.2, %v5271_v60  ;;  %v2262_v43 = vsel %vm2254_vm2, %v5259_v1, %v2258_v59  ;;  %vm2255_vm3 = vcmp.gt.f32.partialorder %v5271_v60, 0.0 }
 0x968   : > { %2276 = vrot.lane.b32.xlu1 %v2262_v43, %s4420_s28 }
 0x969   : > { %v2263_v61 = vsel %vm2255_vm3, %v5271_v60, %v2259_v41 }
 0x96a   : > { %2278 = vrot.lane.b32.xlu0 %v2263_v61, %s4420_s28 }
 0x96c   : > { %3942 = vrot.lane.b32.xlu1 %v3941_v2, %s4421_s1 }
 0x96e   : > { %3947 = vrot.lane.b32.xlu0 %v3946_v42, %s4415_s30  ;;  %s4424_s30 = smov 96  }
 0x970   : > { %3952 = vrot.lane.b32.xlu1 %v3941_v2, %s5958_s22 }
 0x972   : > { %3957 = vrot.lane.b32.xlu0 %v3946_v42, %s5956_s21  ;;  %s4423_s21 = smov 95  }
 0x974   : > { %3962 = vrot.lane.b32.xlu1 %v3946_v42, %s4422_s4 }
 0x9d6   : > { %v2273_v8 = vpop.permute.xlu1 %2272 }
 0x9d7   : > { %v5293_v38 = vsel %vm2280_vm4, 0.0, %v2273_v8 }
 0x9d8   : > { %v2275_v0 = vpop.permute.xlu0 %2274  ;;  %v5311_v11 = vmul.f32 %v5262_v56, %v5293_v38 }
 0x9d9   : > { %v5287_v30 = vsel %vm2280_vm4, %v2273_v8, %v2275_v0  ;;  %v5290_v3 = vsel %vm2280_vm4, %v2275_v0, 0.0 }
 0x9da   : > { %v2277_v24 = vpop.permute.xlu1 %2276  ;;  %v5297_v53 = vpack.i.bf16 %v5290_v3, %v5287_v30  ;;  %v5323_v19 = vmul.f32 %v5268_v46, %v5287_v30 }
 0x9db   : > { %v5300_v5 = vsel %vm2280_vm4, 0.0, %v2277_v24 }
 0x9dc   : > { %3972 = vrot.lane.b32.xlu1 %v5297_v53, %s4416_s29  ;;  %3967 = vrot.lane.b32.xlu0 %v5297_v53, %s4423_s21  ;;  %v2279_v6 = vpop.permute.xlu0 %2278  ;;  %v5315_v12 = vmul.f32 %v5262_v56, %v5300_v5  ;;  %v5319_v55 = vpack.i.bf16 %v5300_v5, %v5293_v38 }
 0x9dd   : > { %v5307_v7 = vsel %vm2280_vm4, %v2277_v24, %v2279_v6  ;;  %v5361_v47 = vsel %vm2280_vm4, %v2279_v6, 0.0 }
 0x9de   : > { %v3943_v13 = vpop.permute.xlu1 %3942  ;;  %v5327_v27 = vmul.f32 %v5268_v46, %v5307_v7  ;;  %v2576_v51 = vpack.c.bf16 %v5315_v12, %v5311_v11  ;;  %v3991_v57 = vpack.i.bf16 %v5361_v47, %v5307_v7 }
 0x9df   : > { %v5329_v14 = vunpack.i.h.bf16 %v3943_v13  ;;  %v5331_v18 = vunpack.i.l.bf16 %v3943_v13 }
 0x9e0   : > { %3977 = vrot.lane.b32.xlu0 %v5319_v55, %s4423_s21  ;;  %v3948_v21 = vpop.permute.xlu0 %3947  ;;  %v2577_v10 = vpack.c.bf16 %v5327_v27, %v5323_v19  ;;  %v4365_v19 = vld [vmem:[%s5906_s14] ss:$8 sps:$4 sm:$0xff]  }
 0x9e1   : > { %v5339_v28 = vunpack.i.h.bf16 %v3948_v21  ;;  %v5341_v29 = vunpack.i.l.bf16 %v3948_v21  ;;  %v5346_v33 = vsel %vm1037_vm8, %v5331_v18, %v5329_v14  ;;  %v2355_v34 = vmul.f32 %v5329_v14, %v5290_v3 }
 0x9e2   : > { %v2354_v15 = vmul.f32 %v5346_v33, %v5287_v30  ;;  %v3953_v58 = vpop.permute.xlu1 %3952  ;;  %v2353_v4 = vmul.f32 %v5331_v18, %v5293_v38  ;;  %v2356_v17 = vmul.f32 %v5331_v18, %v5300_v5  ;;  %v2357_v25 = vmul.f32 %v5346_v33, %v5307_v7 }
 0x9e3   : > { %v5354_v37 = vsel %vm2334_vm5, %v5341_v29, %v5339_v28  ;;  %v2341_v63 = vmul.f32 %v5339_v28, %v5290_v3  ;;  %v2339_v32 = vmul.f32 %v5341_v29, %v5293_v38  ;;  %v2342_v50 = vmul.f32 %v5341_v29, %v5300_v5 }
 0x9e4   : > { %v3981_v40 = vpack.i.bf16 %v2355_v34, %v2354_v15  ;;  %v2340_v16 = vmul.f32 %v5354_v37, %v5287_v30  ;;  %v3958_v52 = vpop.permute.xlu0 %3957  ;;  %v2358_v31 = vmul.f32 %v5329_v14, %v5361_v47  ;;  %v5380_v36 = vunpack.i.h.bf16 %v3953_v58 }
 0x9e5   : > { %v4001_v22 = vpack.i.bf16 %v2342_v50, %v2339_v32  ;;  %v5382_v35 = vunpack.i.l.bf16 %v3953_v58  ;;  %v3996_v62 = vpack.i.bf16 %v2356_v17, %v2353_v4  ;;  %v5385_v44 = vunpack.i.h.bf16 %v3958_v52 }
 0x9e6   : > { %3982 = vrot.lane.b32.xlu1 %v3981_v40, %s4424_s30  ;;  %v3986_v48 = vpack.i.bf16 %v2341_v63, %v2340_v16  ;;  %v5387_v45 = vunpack.i.l.bf16 %v3958_v52  ;;  %v4006_v54 = vpack.i.bf16 %v2358_v31, %v2357_v25  ;;  %vm2303_vm8 = vcmask 15360   ;;  %v3963_v21 = vpop.permute.xlu1 %3962 }
 0x9e7   : > { %v5393_v39 = vsel %vm1524_vm14, %v5382_v35, %v5380_v36  ;;  %v2343_v59 = vmul.f32 %v5354_v37, %v5307_v7  ;;  %v2344_v9 = vmul.f32 %v5339_v28, %v5361_v47  ;;  %v2326_v43 = vmul.f32 %v5380_v36, %v5290_v3 }
 0x9e8   : > { %3987 = vrot.lane.b32.xlu0 %v3986_v48, %s4419_s3  ;;  %v5402_v23 = vsel %vm2303_vm8, %v5387_v45, %v5385_v44  ;;  %v2325_v41 = vmul.f32 %v5393_v39, %v5287_v30  ;;  %v2310_v61 = vmul.f32 %v5385_v44, %v5290_v3  ;;  %v2324_v8 = vmul.f32 %v5382_v35, %v5293_v38 }
 0x9e9   : > { %v4031_v49 = vpack.i.bf16 %v2344_v9, %v2343_v59  ;;  %v2309_v2 = vmul.f32 %v5402_v23, %v5287_v30  ;;  %v2327_v0 = vmul.f32 %v5382_v35, %v5300_v5  ;;  %v2328_v6 = vmul.f32 %v5393_v39, %v5307_v7 }
 0x9ea   : > { %3992 = vrot.lane.b32.xlu1 %v3991_v57, %s4423_s21  ;;  %v4021_v42 = vpack.i.bf16 %v2326_v43, %v2325_v41  ;;  %v2329_v13 = vmul.f32 %v5380_v36, %v5361_v47  ;;  %v2312_v15 = vmul.f32 %v5402_v23, %v5307_v7  ;;  %v2313_v63 = vmul.f32 %v5385_v44, %v5361_v47 }
 0x9eb   : > { %v4036_v24 = vpack.i.bf16 %v2310_v61, %v2309_v2  ;;  %v4026_v34 = vpack.i.bf16 %v2327_v0, %v2324_v8  ;;  %v2308_v16 = vmul.f32 %v5387_v45, %v5293_v38  ;;  %v2311_v48 = vmul.f32 %v5387_v45, %v5300_v5 }
 0x9ec   : > { %4002 = vrot.lane.b32.xlu0 %v4001_v22, %s4419_s3  ;;  %v4041_v40 = vpack.i.bf16 %v2329_v13, %v2328_v6  ;;  %v5435_v32 = vunpack.i.h.bf16 %v3963_v21  ;;  %v5437_v50 = vunpack.i.l.bf16 %v3963_v21  ;;  %v4051_v58 = vpack.i.bf16 %v2313_v63, %v2312_v15 }
 0x9ed   : > { %v4046_v4 = vpack.i.bf16 %v2311_v48, %v2308_v16 }
 0x9ee   : > { %3997 = vrot.lane.b32.xlu1 %v3996_v62, %s4424_s30  ;;  %v5443_v17 = vsel %vm2363_vm6, %v5437_v50, %v5435_v32  ;;  %v2370_v22 = vmul.f32 %v5435_v32, %v5290_v3  ;;  %v2373_v31 = vmul.f32 %v5435_v32, %v5361_v47  ;;  %v4363_v3 = vld [vmem:[%s5906_s14 + $0x4] ss:$8 sps:$4 sm:$0xff]  }
 0x9ef   : > { %v2369_v52 = vmul.f32 %v5443_v17, %v5287_v30  ;;  %v2372_v25 = vmul.f32 %v5443_v17, %v5307_v7  ;;  %v2371_v30 = vmul.f32 %v5437_v50, %v5300_v5  ;;  %3469 = vmatprep.mubr.msk.bf16.mxu1 %vm1524_vm14, %v4363_v3  ;;  %v2267_v5 = vld [vmem:[%s5907_s15 + $0x8] sm:$0xff] }
 0x9f0   : > { %4007 = vrot.lane.b32.xlu0 %v4006_v54, %s4424_s30 }
 0x9f1   : > { %v4071_v62 = vpack.i.bf16 %v2370_v22, %v2369_v52  ;;  %v4076_v7 = vpack.i.bf16 %v2373_v31, %v2372_v25 }
 0x9f2   : > { %4017 = vrot.lane.b32.xlu1 %v5319_v55, %s4416_s29 }
 0x9f4   : > { %4012 = vrot.lane.b32.xlu0 %v3991_v57, %s4416_s29 }
 0x9f6   : > { %4032 = vrot.lane.b32.xlu1 %v4031_v49, %s4419_s3 }
 0x9f8   : > { %4022 = vrot.lane.b32.xlu0 %v4021_v42, %s5934_s17 }
 0x9fa   : > { %4037 = vrot.lane.b32.xlu1 %v4036_v24, %s5959_s20 }
 0x9fc   : > { %4027 = vrot.lane.b32.xlu0 %v4026_v34, %s5934_s17 }
 0x9fe   : > { %4042 = vrot.lane.b32.xlu1 %v4041_v40, %s5934_s17 }
 0xa00   : > { %4052 = vrot.lane.b32.xlu0 %v4051_v58, %s5959_s20 }
 0xa02   : > { %4047 = vrot.lane.b32.xlu1 %v4046_v4, %s5959_s20 }
 0xa04   : > { %4057 = vrot.lane.b32.xlu0 %v5297_v53, %s5960_s18  ;;  %v2368_v53 = vmul.f32 %v5437_v50, %v5293_v38  ;;  %v2266_v38 = vld [vmem:[%s5907_s15] sm:$0xff] }
 0xa06   : > { %4062 = vrot.lane.b32.xlu1 %v3991_v57, %s5960_s18 }
 0xa08   : > { %4067 = vrot.lane.b32.xlu0 %v5319_v55, %s5960_s18  ;;  %v4081_v55 = vpack.i.bf16 %v2371_v30, %v2368_v53 }
 0xa0a   : > { %4072 = vrot.lane.b32.xlu1 %v4071_v62, %s4425_s2 }
 0xa0c   : > { %4077 = vrot.lane.b32.xlu0 %v4076_v7, %s4425_s2 }
 0xa0e   : > { %4082 = vrot.lane.b32.xlu1 %v4081_v55, %s4425_s2 }
 0xa10   : > { %2596 = vperm.xlu0 %3740, %v2266_v38  }
 0xa12   : > { %2601 = vperm.xlu1 %3739, %v2267_v5  }
 0xa4e   : > { %v3968_v47 = vpop.permute.xlu0 %3967  ;;  %v5476_v57 = vpop.permute.xlu1 %3972 }
 0xa4f   : > { %v3970_v41 = vunpack.i.h.bf16 %v3968_v47  ;;  %v3969_v43 = vunpack.i.l.bf16 %v3968_v47 }
 0xa51   : > { %v2542_v13 = vsel %vm2540_vm7, %v3969_v43, %v3970_v41  ;;  %v3975_v41 = vunpack.i.h.bf16 %v5476_v57 }
 0xa52   : > { %v3978_v54 = vpop.permute.xlu0 %3977 }
 0xa53   : > { %v3979_v49 = vunpack.i.l.bf16 %v3978_v54  ;;  %v3980_v61 = vunpack.i.h.bf16 %v3978_v54 }
 0xa55   : > { %v2541_v24 = vsel %vm2540_vm7, %v3979_v49, %v3969_v43  ;;  %v3974_v49 = vunpack.i.l.bf16 %v5476_v57 }
 0xa58   : > { %v3983_v59 = vpop.permute.xlu1 %3982 }
 0xa59   : > { %v3985_v40 = vunpack.i.h.bf16 %v3983_v59  ;;  %v3984_v16 = vunpack.i.l.bf16 %v3983_v59 }
 0xa5a   : > { %v3988_v9 = vpop.permute.xlu0 %3987 }
 0xa5b   : > { %v3990_v25 = vunpack.i.h.bf16 %v3988_v9  ;;  %v2521_v30 = vsel %vm2519_vm9, %v3984_v16, %v3985_v40  ;;  %v3989_v7 = vunpack.i.l.bf16 %v3988_v9 }
 0xa5c   : > { %v3993_v2 = vpop.permute.xlu1 %3992 }
 0xa5d   : > { %v3995_v42 = vunpack.i.h.bf16 %v3993_v2  ;;  %v3994_v8 = vunpack.i.l.bf16 %v3993_v2 }
 0xa5e   : > { %v4003_v0 = vpop.permute.xlu0 %4002 }
 0xa5f   : > { %v2543_v6 = vsel %vm2540_vm7, %v3980_v61, %v3994_v8  ;;  %v2544_v21 = vsel %vm2540_vm7, %v3994_v8, %v3995_v42  ;;  %v4004_v55 = vunpack.i.l.bf16 %v4003_v0  ;;  %v4005_v2 = vunpack.i.h.bf16 %v4003_v0 }
 0xa60   : > { %v2590_v34 = vpack.c.bf16 %v2543_v6, %v2541_v24  ;;  %v3998_v15 = vpop.permute.xlu1 %3997  ;;  %v2591_v63 = vpack.c.bf16 %v2544_v21, %v2542_v13  ;;  %v2494_v6 = vsel %vm2492_vm10, %v3989_v7, %v3990_v25 }
 0xa61   : > { %v3999_v48 = vunpack.i.l.bf16 %v3998_v15  ;;  %v4000_v4 = vunpack.i.h.bf16 %v3998_v15  ;;  %v2493_v8 = vsel %vm2492_vm10, %v4004_v55, %v3989_v7 }
 0xa62   : > { %2616 = vmatprep.subr.bf16.mxu1 %v2591_v63  ;;  %v4008_v58 = vpop.permute.xlu0 %4007 }
 0xa63   : > { %v4010_v52 = vunpack.i.h.bf16 %v4008_v58  ;;  %v4009_v22 = vunpack.i.l.bf16 %v4008_v58  ;;  %2617 = vmatpush1.bf16.msra.mxu1 %v2590_v34  ;;  %v2520_v62 = vsel %vm2519_vm9, %v3999_v48, %v3984_v16  ;;  %v2467_v16 = vsel %vm2465_vm11, %v3974_v49, %v3975_v41 }
 0xa64   : > { %v4018_v31 = vpop.permute.xlu1 %4017 }
 0xa65   : > { %v2522_v53 = vsel %vm2519_vm9, %v4000_v4, %v4009_v22  ;;  %v2523_v3 = vsel %vm2519_vm9, %v4009_v22, %v4010_v52  ;;  %v4020_v9 = vunpack.i.h.bf16 %v4018_v31  ;;  %v4019_v13 = vunpack.i.l.bf16 %v4018_v31 }
 0xa66   : > { %v2588_v38 = vpack.c.bf16 %v2522_v53, %v2520_v62  ;;  %v4013_v5 = vpop.permute.xlu0 %4012  ;;  %v2589_v47 = vpack.c.bf16 %v2523_v3, %v2521_v30 }
 0xa67   : > { %v4015_v54 = vunpack.i.h.bf16 %v4013_v5  ;;  %v4014_v59 = vunpack.i.l.bf16 %v4013_v5  ;;  %v2466_v22 = vsel %vm2465_vm11, %v4019_v13, %v3974_v49 }
 0xa68   : > { %v4033_v43 = vpop.permute.xlu1 %4032  ;;  %2618 = vmatprep.subr.bf16.mxu1 %v2589_v47 }
 0xa69   : > { %v4035_v61 = vunpack.i.h.bf16 %v4033_v43  ;;  %v4034_v42 = vunpack.i.l.bf16 %v4033_v43  ;;  %2619 = vmatpush1.bf16.msra.mxu1 %v2588_v38  ;;  %v2469_v15 = vsel %vm2465_vm11, %v4014_v59, %v4015_v54  ;;  %v2468_v40 = vsel %vm2465_vm11, %v4020_v9, %v4014_v59 }
 0xa6a   : > { %v4023_v24 = vpop.permute.xlu0 %4022  ;;  %v2585_v52 = vpack.c.bf16 %v2469_v15, %v2467_v16  ;;  %v2584_v31 = vpack.c.bf16 %v2468_v40, %v2466_v22 }
 0xa6b   : > { %v2495_v21 = vsel %vm2492_vm10, %v4005_v2, %v4034_v42  ;;  %v2496_v34 = vsel %vm2492_vm10, %v4034_v42, %v4035_v61  ;;  %v4025_v48 = vunpack.i.h.bf16 %v4023_v24  ;;  %v4024_v58 = vunpack.i.l.bf16 %v4023_v24 }
 0xa6c   : > { %v2586_v63 = vpack.c.bf16 %v2495_v21, %v2493_v8  ;;  %v4038_v57 = vpop.permute.xlu1 %4037  ;;  %v2587_v0 = vpack.c.bf16 %v2496_v34, %v2494_v6 }
 0xa6d   : > { %v4040_v62 = vunpack.i.h.bf16 %v4038_v57  ;;  %v4039_v30 = vunpack.i.l.bf16 %v4038_v57  ;;  %v2446_v47 = vsel %vm2444_vm12, %v4024_v58, %v4025_v48 }
 0xa6e   : > { %v4028_v4 = vpop.permute.xlu0 %4027  ;;  %2620 = vmatprep.subr.bf16.mxu1 %v2587_v0 }
 0xa6f   : > { %v4029_v25 = vunpack.i.l.bf16 %v4028_v4  ;;  %2621 = vmatpush1.bf16.msra.mxu1 %v2586_v63  ;;  %v4030_v3 = vunpack.i.h.bf16 %v4028_v4  ;;  %v2419_v9 = vsel %vm2417_vm13, %v4039_v30, %v4040_v62 }
 0xa70   : > { %v4043_v53 = vpop.permute.xlu1 %4042  ;;  %2622 = vmatprep.subr.bf16.mxu1 %v2585_v52 }
 0xa71   : > { %v4045_v7 = vunpack.i.h.bf16 %v4043_v53  ;;  %v4044_v55 = vunpack.i.l.bf16 %v4043_v53  ;;  %v2445_v38 = vsel %vm2444_vm12, %v4029_v25, %v4024_v58 }
 0xa72   : > { %v4053_v5 = vpop.permute.xlu0 %4052 }
 0xa73   : > { %v2447_v54 = vsel %vm2444_vm12, %v4030_v3, %v4044_v55  ;;  %v4055_v59 = vunpack.i.h.bf16 %v4053_v5  ;;  %v4054_v41 = vunpack.i.l.bf16 %v4053_v5  ;;  %2623 = vmatpush1.bf16.msra.mxu1 %v2584_v31  ;;  %v2448_v43 = vsel %vm2444_vm12, %v4044_v55, %v4045_v7 }
 0xa74   : > { %v2582_v49 = vpack.c.bf16 %v2447_v54, %v2445_v38  ;;  %v4048_v2 = vpop.permute.xlu1 %4047  ;;  %v2583_v61 = vpack.c.bf16 %v2448_v43, %v2446_v47 }
 0xa75   : > { %v4050_v42 = vunpack.i.h.bf16 %v4048_v2  ;;  %v4049_v8 = vunpack.i.l.bf16 %v4048_v2  ;;  %v2421_v24 = vsel %vm2417_vm13, %v4054_v41, %v4055_v59 }
 0xa76   : > { %v4058_v6 = vpop.permute.xlu0 %4057  ;;  %2624 = vmatprep.subr.bf16.mxu1 %v2583_v61  ;;  %v2581_v13 = vpack.c.bf16 %v2421_v24, %v2419_v9 }
 0xa77   : > { %v2418_v21 = vsel %vm2417_vm13, %v4049_v8, %v4039_v30  ;;  %v2420_v34 = vsel %vm2417_vm13, %v4050_v42, %v4054_v41  ;;  %v4060_v15 = vunpack.i.h.bf16 %v4058_v6  ;;  %v4059_v63 = vunpack.i.l.bf16 %v4058_v6  ;;  %2625 = vmatpush1.bf16.msra.mxu1 %v2582_v49 }
 0xa78   : > { %v2580_v57 = vpack.c.bf16 %v2420_v34, %v2418_v21  ;;  %v4063_v0 = vpop.permute.xlu1 %4062  ;;  %2626 = vmatprep.subr.bf16.mxu1 %v2581_v13 }
 0xa79   : > { %v4065_v40 = vunpack.i.h.bf16 %v4063_v0  ;;  %v4064_v16 = vunpack.i.l.bf16 %v4063_v0  ;;  %v2392_v52 = vsel %vm2390_vm15, %v4059_v63, %v4060_v15 }
 0xa7a   : > { %v4068_v48 = vpop.permute.xlu0 %4067 }
 0xa7b   : > { %v4070_v58 = vunpack.i.h.bf16 %v4068_v48  ;;  %v4069_v4 = vunpack.i.l.bf16 %v4068_v48  ;;  %2627 = vmatpush1.bf16.msra.mxu1 %v2580_v57  ;;  %v2394_v22 = vsel %vm2390_vm15, %v4064_v16, %v4065_v40 }
 0xa7c   : > { %v4073_v25 = vpop.permute.xlu1 %4072  ;;  %v2579_v31 = vpack.c.bf16 %v2394_v22, %v2392_v52 }
 0xa7d   : > { %v2393_v62 = vsel %vm2390_vm15, %v4070_v58, %v4064_v16  ;;  %v2391_v53 = vsel %vm2390_vm15, %v4069_v4, %v4059_v63  ;;  %v4075_v30 = vunpack.i.h.bf16 %v4073_v25  ;;  %v4074_v3 = vunpack.i.l.bf16 %v4073_v25 }
 0xa7e   : > { %v2578_v7 = vpack.c.bf16 %v2393_v62, %v2391_v53  ;;  %v4078_v55 = vpop.permute.xlu0 %4077  ;;  %2628 = vmatprep.subr.bf16.mxu1 %v2579_v31 }
 0xa7f   : > { %v4080_v38 = vunpack.i.h.bf16 %v4078_v55  ;;  %v4079_v5 = vunpack.i.l.bf16 %v4078_v55  ;;  %v2569_v41 = vsel %vm2567_vm0, %v4074_v3, %v4075_v30 }
 0xa80   : > { %v4083_v47 = vpop.permute.xlu1 %4082  ;;  %2629 = vmatpush1.bf16.msra.mxu1 %v2578_v7 }
 0xa81   : > { %v4085_v54 = vunpack.i.h.bf16 %v4083_v47  ;;  %v4084_v59 = vunpack.i.l.bf16 %v4083_v47  ;;  %2630 = vmatprep.subr.bf16.mxu1 %v2577_v10  ;;  %v2571_v43 = vsel %vm2567_vm0, %v4079_v5, %v4080_v38 }
 0xa82   : > { %v2593_v49 = vpack.c.bf16 %v2571_v43, %v2569_v41 }
 0xa83   : > { %v2568_v2 = vsel %vm2567_vm0, %v4084_v59, %v4074_v3  ;;  %v2570_v61 = vsel %vm2567_vm0, %v4085_v54, %v4079_v5 }
 0xa84   : > { %2631 = vmatpush1.bf16.msra.mxu1 %v2576_v51  ;;  %v2592_v42 = vpack.c.bf16 %v2570_v61, %v2568_v2 }
 0xa85   : > { %2646 = vmatprep.subr.bf16.mxu1 %v2593_v49 }
 0xa88   : > { %2647 = vmatpush2.bf16.msra.mxu1 %v2592_v42 }
 0xa8b   : > { %2649 = vmatmul.mubr.bf16.vlgmr.msra.gmra.mxu1 %v4365_v19  ;;  %v2597_v27 = vpop.permute.xlu0 %2596 }
 0xa8d   : > { %v2602_v13 = vpop.permute.xlu1 %2601 }
 0xb4b   : > { %v2650_v10 = vpop.f32.mrf.mxu1 }
 0xb4c   : > { %v2651_v8 = vadd.f32 %v2650_v10, %v2597_v27 }
 0xb4d   : > { %v2652_v9 = vpop.f32.mrf.mxu1 }
 0xb4e   : > { %vm2659_vm1 = vcmp.gt.f32.partialorder %v2651_v8, 0.0  ;;  %v2663_v24 = vmul.f32 0.2, %v2651_v8  ;;  %v2653_v6 = vadd.f32 %v2652_v9, %v2597_v27 }
 0xb4f   : > { %v2654_v21 = vpop.f32.mrf.mxu1 }
 0xb50   : > { %vm2660_vm2 = vcmp.gt.f32.partialorder %v2653_v6, 0.0  ;;  %v2664_v11 = vmul.f32 0.2, %v2653_v6  ;;  %v2655_v12 = vadd.f32 %v2654_v21, %v2602_v13  ;;  %v2667_v51 = vsel %vm2659_vm1, %v2651_v8, %v2663_v24 }
 0xb51   : > { %v2656_v34 = vpop.f32.mrf.mxu1  ;;  %2679 = vrot.lane.b32.xlu0 %v2667_v51, %s4420_s28 }
 0xb52   : > { %vm2661_vm3 = vcmp.gt.f32.partialorder %v2655_v12, 0.0  ;;  %v2665_v15 = vmul.f32 0.2, %v2655_v12  ;;  %v2657_v63 = vadd.f32 %v2656_v34, %v2602_v13  ;;  %v2668_v57 = vsel %vm2660_vm2, %v2653_v6, %v2664_v11 }
 0xb53   : > { %2681 = vrot.lane.b32.xlu1 %v2668_v57, %s4420_s28 }
 0xb54   : > { %vm2662_vm5 = vcmp.gt.f32.partialorder %v2657_v63, 0.0  ;;  %v2666_v0 = vmul.f32 0.2, %v2657_v63  ;;  %v2669_v40 = vsel %vm2661_vm3, %v2655_v12, %v2665_v15 }
 0xb55   : > { %2683 = vrot.lane.b32.xlu0 %v2669_v40, %s4420_s28 }
 0xb56   : > { %v2670_v16 = vsel %vm2662_vm5, %v2657_v63, %v2666_v0 }
 0xb57   : > { %2685 = vrot.lane.b32.xlu1 %v2670_v16, %s4420_s28 }
 0xbc3   : > { %v2680_v48 = vpop.permute.xlu0 %2679 }
 0xbc4   : > { %v5547_v3 = vsel %vm2280_vm4, 0.0, %v2680_v48 }
 0xbc5   : > { %v2682_v58 = vpop.permute.xlu1 %2681  ;;  %v2715_v2 = vmul.f32 %v5341_v29, %v5547_v3  ;;  %v2721_v61 = vmul.f32 %v5331_v18, %v5547_v3  ;;  %v5583_v24 = vmul.f32 %v5262_v56, %v5547_v3 }
 0xbc6   : > { %v5526_v4 = vsel %vm2280_vm4, %v2680_v48, %v2682_v58  ;;  %v5529_v52 = vsel %vm2280_vm4, %v2682_v58, 0.0 }
 0xbc7   : > { %v2684_v22 = vpop.permute.xlu0 %2683  ;;  %v5533_v25 = vpack.i.bf16 %v5529_v52, %v5526_v4  ;;  %v2722_v31 = vmul.f32 %v5526_v4, %v5346_v33  ;;  %v2723_v62 = vmul.f32 %v5329_v14, %v5529_v52  ;;  %v2716_v38 = vmul.f32 %v5526_v4, %v5354_v37 }
 0xbc8   : > { %v5540_v53 = vsel %vm2280_vm4, 0.0, %v2684_v22  ;;  %v2717_v5 = vmul.f32 %v5339_v28, %v5529_v52  ;;  %v5576_v8 = vmul.f32 %v5268_v46, %v5526_v4  ;;  %v2710_v34 = vmul.f32 %v5526_v4, %v5393_v39 }
 0xbc9   : > { %v2686_v30 = vpop.permute.xlu1 %2685  ;;  %4092 = vrot.lane.b32.xlu1 %v5533_v25, %s4416_s29  ;;  %4087 = vrot.lane.b32.xlu0 %v5533_v25, %s4423_s21  ;;  %v4101_v7 = vpack.i.bf16 %v2723_v62, %v2722_v31  ;;  %v5551_v55 = vpack.i.bf16 %v5540_v53, %v5547_v3  ;;  %v2718_v43 = vmul.f32 %v5341_v29, %v5540_v53 }
 0xbca   : > { %v2688_v47 = vsel %vm2280_vm4, %v2684_v22, %v2686_v30  ;;  %v2698_v54 = vsel %vm2280_vm4, %v2686_v30, 0.0  ;;  %v4106_v59 = vpack.i.bf16 %v2717_v5, %v2716_v38  ;;  %v2724_v49 = vmul.f32 %v5331_v18, %v5540_v53 }
 0xbcb   : > { %v4111_v41 = vpack.i.bf16 %v2698_v54, %v2688_v47  ;;  %v4121_v42 = vpack.i.bf16 %v2718_v43, %v2715_v2  ;;  %v2725_v27 = vmul.f32 %v2688_v47, %v5346_v33  ;;  %v2726_v10 = vmul.f32 %v5329_v14, %v2698_v54 }
 0xbcc   : > { %v4116_v19 = vpack.i.bf16 %v2724_v49, %v2721_v61  ;;  %v5579_v9 = vmul.f32 %v5268_v46, %v2688_v47  ;;  %v5587_v6 = vmul.f32 %v5262_v56, %v5540_v53  ;;  %v2719_v12 = vmul.f32 %v2688_v47, %v5354_v37 }
 0xbcd   : > { %4102 = vrot.lane.b32.xlu1 %v4101_v7, %s4424_s30  ;;  %4097 = vrot.lane.b32.xlu0 %v5551_v55, %s4423_s21  ;;  %v4126_v11 = vpack.i.bf16 %v2726_v10, %v2725_v27  ;;  %v2720_v51 = vmul.f32 %v5339_v28, %v2698_v54  ;;  %v2711_v63 = vmul.f32 %v5380_v36, %v5529_v52 }
 0xbce   : > { %v2928_v13 = vpack.c.bf16 %v5579_v9, %v5576_v8  ;;  %v2927_v21 = vpack.c.bf16 %v5587_v6, %v5583_v24  ;;  %v2704_v57 = vmul.f32 %v5526_v4, %v5402_v23  ;;  %v2705_v0 = vmul.f32 %v5385_v44, %v5529_v52  ;;  %v4368_v8 = vld [vmem:[%s5908_s16] ss:$8 sps:$4 sm:$0xff]  }
 0xbcf   : > { %v4151_v15 = vpack.i.bf16 %v2720_v51, %v2719_v12  ;;  %v2712_v40 = vmul.f32 %v5382_v35, %v5540_v53  ;;  %v4141_v16 = vpack.i.bf16 %v2711_v63, %v2710_v34  ;;  %v2713_v58 = vmul.f32 %v2688_v47, %v5393_v39 }
 0xbd0   : > { %v4156_v48 = vpack.i.bf16 %v2705_v0, %v2704_v57  ;;  %v2714_v22 = vmul.f32 %v5380_v36, %v2698_v54  ;;  %v2709_v31 = vmul.f32 %v5382_v35, %v5547_v3  ;;  %v2706_v62 = vmul.f32 %v5387_v45, %v5540_v53 }
 0xbd1   : > { %4107 = vrot.lane.b32.xlu0 %v4106_v59, %s4419_s3  ;;  %4112 = vrot.lane.b32.xlu1 %v4111_v41, %s4423_s21  ;;  %v2707_v38 = vmul.f32 %v2688_v47, %v5402_v23  ;;  %v2708_v5 = vmul.f32 %v5385_v44, %v2698_v54  ;;  %v2703_v59 = vmul.f32 %v5387_v45, %v5547_v3 }
 0xbd2   : > { %v4146_v30 = vpack.i.bf16 %v2712_v40, %v2709_v31  ;;  %v4161_v7 = vpack.i.bf16 %v2714_v22, %v2713_v58  ;;  %v2728_v2 = vmul.f32 %v5526_v4, %v5443_v17  ;;  %v2729_v61 = vmul.f32 %v5435_v32, %v5529_v52  ;;  %v4366_v52 = vld [vmem:[%s5908_s16 + $0x4] ss:$8 sps:$4 sm:$0xff]  }
 0xbd3   : > { %v4166_v43 = vpack.i.bf16 %v2706_v62, %v2703_v59  ;;  %v4171_v49 = vpack.i.bf16 %v2708_v5, %v2707_v38  ;;  %v2731_v27 = vmul.f32 %v2688_v47, %v5443_v17  ;;  %v2732_v10 = vmul.f32 %v5435_v32, %v2698_v54  ;;  %3472 = vmatprep.mubr.msk.bf16.mxu0 %vm1524_vm14, %v4366_v52 }
 0xbd4   : > { %v2727_v4 = vmul.f32 %v5437_v50, %v5547_v3  ;;  %v2673_v3 = vld [vmem:[%s5961_s24] sm:$0xff] }
 0xbd5   : > { %4122 = vrot.lane.b32.xlu0 %v4121_v42, %s4419_s3  ;;  %4117 = vrot.lane.b32.xlu1 %v4116_v19, %s4424_s30  ;;  %v4191_v42 = vpack.i.bf16 %v2729_v61, %v2728_v2  ;;  %v2730_v19 = vmul.f32 %v5437_v50, %v5540_v53  ;;  %v2674_v53 = vld [vmem:[%s5961_s24 + $0x8] sm:$0xff] }
 0xbd9   : > { %4137 = vrot.lane.b32.xlu1 %v5551_v55, %s4416_s29  ;;  %4127 = vrot.lane.b32.xlu0 %v4126_v11, %s4424_s30 }
 0xbdd   : > { %4132 = vrot.lane.b32.xlu0 %v4111_v41, %s4416_s29  ;;  %4152 = vrot.lane.b32.xlu1 %v4151_v15, %s4419_s3 }
 0xbe1   : > { %4142 = vrot.lane.b32.xlu0 %v4141_v16, %s5934_s17  ;;  %4157 = vrot.lane.b32.xlu1 %v4156_v48, %s5959_s20 }
 0xbe5   : > { %4147 = vrot.lane.b32.xlu0 %v4146_v30, %s5934_s17  ;;  %4162 = vrot.lane.b32.xlu1 %v4161_v7, %s5934_s17 }
 0xbe9   : > { %4167 = vrot.lane.b32.xlu1 %v4166_v43, %s5959_s20  ;;  %4172 = vrot.lane.b32.xlu0 %v4171_v49, %s5959_s20 }
 0xbed   : > { %4182 = vrot.lane.b32.xlu1 %v4111_v41, %s5960_s18  ;;  %4177 = vrot.lane.b32.xlu0 %v5533_v25, %s5960_s18  ;;  %v4201_v25 = vpack.i.bf16 %v2730_v19, %v2727_v4  ;;  %v4196_v41 = vpack.i.bf16 %v2732_v10, %v2731_v27 }
 0xbf1   : > { %4192 = vrot.lane.b32.xlu1 %v4191_v42, %s4425_s2  ;;  %4187 = vrot.lane.b32.xlu0 %v5551_v55, %s5960_s18 }
 0xbf5   : > { %4202 = vrot.lane.b32.xlu1 %v4201_v25, %s4425_s2  ;;  %4197 = vrot.lane.b32.xlu0 %v4196_v41, %s4425_s2 }
 0xbf9   : > { %2952 = vperm.xlu1 %3739, %v2674_v53   ;;  %2947 = vperm.xlu0 %3740, %v2673_v3  }
 0xc3b   : > { %v5656_v55 = vpop.permute.xlu1 %4092  ;;  %v4088_v47 = vpop.permute.xlu0 %4087 }
 0xc3c   : > { %v4090_v12 = vunpack.i.h.bf16 %v4088_v47  ;;  %v4089_v51 = vunpack.i.l.bf16 %v4088_v47  ;;  %v4095_v19 = vunpack.i.h.bf16 %v5656_v55  ;;  %v4094_v3 = vunpack.i.l.bf16 %v5656_v55 }
 0xc3e   : > { %v2894_v58 = vsel %vm2540_vm7, %v4089_v51, %v4090_v12 }
 0xc3f   : > { %v4103_v54 = vpop.permute.xlu1 %4102  ;;  %v4098_v11 = vpop.permute.xlu0 %4097 }
 0xc40   : > { %v4099_v34 = vunpack.i.l.bf16 %v4098_v11  ;;  %v4100_v57 = vunpack.i.h.bf16 %v4098_v11  ;;  %v4105_v38 = vunpack.i.h.bf16 %v4103_v54  ;;  %v4104_v5 = vunpack.i.l.bf16 %v4103_v54 }
 0xc42   : > { %v2893_v16 = vsel %vm2540_vm7, %v4099_v34, %v4089_v51  ;;  %v2874_v41 = vsel %vm2519_vm9, %v4104_v5, %v4105_v38 }
 0xc43   : > { %v4113_v15 = vpop.permute.xlu1 %4112  ;;  %v4108_v63 = vpop.permute.xlu0 %4107 }
 0xc44   : > { %v4115_v0 = vunpack.i.h.bf16 %v4113_v15  ;;  %v4114_v40 = vunpack.i.l.bf16 %v4113_v15  ;;  %v4110_v27 = vunpack.i.h.bf16 %v4108_v63  ;;  %v4109_v10 = vunpack.i.l.bf16 %v4108_v63 }
 0xc46   : > { %v2895_v48 = vsel %vm2540_vm7, %v4100_v57, %v4114_v40  ;;  %v2896_v22 = vsel %vm2540_vm7, %v4114_v40, %v4115_v0 }
 0xc47   : > { %v2941_v31 = vpack.c.bf16 %v2895_v48, %v2893_v16  ;;  %v4118_v62 = vpop.permute.xlu1 %4117  ;;  %v4123_v30 = vpop.permute.xlu0 %4122  ;;  %v2942_v7 = vpack.c.bf16 %v2896_v22, %v2894_v58  ;;  %v2848_v16 = vsel %vm2492_vm10, %v4109_v10, %v4110_v27 }
 0xc48   : > { %v4119_v59 = vunpack.i.l.bf16 %v4118_v62  ;;  %v4120_v2 = vunpack.i.h.bf16 %v4118_v62  ;;  %v4124_v4 = vunpack.i.l.bf16 %v4123_v30  ;;  %v4125_v47 = vunpack.i.h.bf16 %v4123_v30 }
 0xc49   : > { %2967 = vmatprep.subr.bf16.mxu0 %v2942_v7 }
 0xc4a   : > { %2968 = vmatpush1.bf16.msra.mxu0 %v2941_v31  ;;  %v2873_v52 = vsel %vm2519_vm9, %v4119_v59, %v4104_v5  ;;  %v2847_v0 = vsel %vm2492_vm10, %v4124_v4, %v4109_v10  ;;  %v2822_v5 = vsel %vm2465_vm11, %v4094_v3, %v4095_v19 }
 0xc4b   : > { %v4138_v43 = vpop.permute.xlu1 %4137  ;;  %v4128_v49 = vpop.permute.xlu0 %4127 }
 0xc4c   : > { %v4130_v61 = vunpack.i.h.bf16 %v4128_v49  ;;  %v4129_v42 = vunpack.i.l.bf16 %v4128_v49  ;;  %v4140_v40 = vunpack.i.h.bf16 %v4138_v43  ;;  %v4139_v48 = vunpack.i.l.bf16 %v4138_v43 }
 0xc4e   : > { %v2875_v25 = vsel %vm2519_vm9, %v4120_v2, %v4129_v42  ;;  %v2876_v53 = vsel %vm2519_vm9, %v4129_v42, %v4130_v61  ;;  %v2821_v49 = vsel %vm2465_vm11, %v4139_v48, %v4094_v3 }
 0xc4f   : > { %v2939_v54 = vpack.c.bf16 %v2875_v25, %v2873_v52  ;;  %v4153_v11 = vpop.permute.xlu1 %4152  ;;  %v4133_v12 = vpop.permute.xlu0 %4132  ;;  %v2940_v51 = vpack.c.bf16 %v2876_v53, %v2874_v41 }
 0xc50   : > { %v4155_v34 = vunpack.i.h.bf16 %v4153_v11  ;;  %v4154_v15 = vunpack.i.l.bf16 %v4153_v11  ;;  %v4135_v57 = vunpack.i.h.bf16 %v4133_v12  ;;  %v4134_v63 = vunpack.i.l.bf16 %v4133_v12 }
 0xc51   : > { %2969 = vmatprep.subr.bf16.mxu0 %v2940_v51 }
 0xc52   : > { %v2849_v58 = vsel %vm2492_vm10, %v4125_v47, %v4154_v15  ;;  %2970 = vmatpush1.bf16.msra.mxu0 %v2939_v54  ;;  %v2850_v55 = vsel %vm2492_vm10, %v4154_v15, %v4155_v34  ;;  %v2824_v22 = vsel %vm2465_vm11, %v4134_v63, %v4135_v57  ;;  %v2823_v38 = vsel %vm2465_vm11, %v4140_v40, %v4134_v63 }
 0xc53   : > { %v2937_v31 = vpack.c.bf16 %v2849_v58, %v2847_v0  ;;  %v4158_v62 = vpop.permute.xlu1 %4157  ;;  %v4143_v30 = vpop.permute.xlu0 %4142  ;;  %v2938_v7 = vpack.c.bf16 %v2850_v55, %v2848_v16  ;;  %v2936_v59 = vpack.c.bf16 %v2824_v22, %v2822_v5  ;;  %v2935_v61 = vpack.c.bf16 %v2823_v38, %v2821_v49 }
 0xc54   : > { %v4145_v43 = vunpack.i.h.bf16 %v4143_v30  ;;  %v4144_v2 = vunpack.i.l.bf16 %v4143_v30  ;;  %v4160_v41 = vunpack.i.h.bf16 %v4158_v62  ;;  %v4159_v53 = vunpack.i.l.bf16 %v4158_v62 }
 0xc55   : > { %2971 = vmatprep.subr.bf16.mxu0 %v2938_v7 }
 0xc56   : > { %2972 = vmatpush1.bf16.msra.mxu0 %v2937_v31  ;;  %v2802_v3 = vsel %vm2444_vm12, %v4144_v2, %v4145_v43  ;;  %v2776_v48 = vsel %vm2417_vm13, %v4159_v53, %v4160_v41 }
 0xc57   : > { %v4163_v42 = vpop.permute.xlu1 %4162  ;;  %v4148_v27 = vpop.permute.xlu0 %4147  ;;  %2973 = vmatprep.subr.bf16.mxu0 %v2936_v59 }
 0xc58   : > { %v4165_v10 = vunpack.i.h.bf16 %v4163_v42  ;;  %v4164_v4 = vunpack.i.l.bf16 %v4163_v42  ;;  %v4150_v52 = vunpack.i.h.bf16 %v4148_v27  ;;  %v4149_v25 = vunpack.i.l.bf16 %v4148_v27 }
 0xc5a   : > { %v2803_v47 = vsel %vm2444_vm12, %v4150_v52, %v4164_v4  ;;  %v2801_v19 = vsel %vm2444_vm12, %v4149_v25, %v4144_v2  ;;  %2974 = vmatpush1.bf16.msra.mxu0 %v2935_v61  ;;  %v2804_v54 = vsel %vm2444_vm12, %v4164_v4, %v4165_v10 }
 0xc5b   : > { %v2933_v11 = vpack.c.bf16 %v2803_v47, %v2801_v19  ;;  %v4168_v12 = vpop.permute.xlu1 %4167  ;;  %v4173_v51 = vpop.permute.xlu0 %4172  ;;  %v2934_v34 = vpack.c.bf16 %v2804_v54, %v2802_v3 }
 0xc5c   : > { %v4170_v15 = vunpack.i.h.bf16 %v4168_v12  ;;  %v4169_v57 = vunpack.i.l.bf16 %v4168_v12  ;;  %v4175_v63 = vunpack.i.h.bf16 %v4173_v51  ;;  %v4174_v0 = vunpack.i.l.bf16 %v4173_v51 }
 0xc5d   : > { %2975 = vmatprep.subr.bf16.mxu0 %v2934_v34 }
 0xc5e   : > { %v2775_v40 = vsel %vm2417_vm13, %v4169_v57, %v4159_v53  ;;  %v2777_v16 = vsel %vm2417_vm13, %v4170_v15, %v4174_v0  ;;  %2976 = vmatpush1.bf16.msra.mxu0 %v2933_v11  ;;  %v2778_v58 = vsel %vm2417_vm13, %v4174_v0, %v4175_v63 }
 0xc5f   : > { %v2931_v55 = vpack.c.bf16 %v2777_v16, %v2775_v40  ;;  %v4183_v22 = vpop.permute.xlu1 %4182  ;;  %v4178_v31 = vpop.permute.xlu0 %4177  ;;  %v2932_v62 = vpack.c.bf16 %v2778_v58, %v2776_v48 }
 0xc60   : > { %v4185_v30 = vunpack.i.h.bf16 %v4183_v22  ;;  %v4184_v7 = vunpack.i.l.bf16 %v4183_v22  ;;  %v4180_v38 = vunpack.i.h.bf16 %v4178_v31  ;;  %v4179_v5 = vunpack.i.l.bf16 %v4178_v31 }
 0xc61   : > { %2977 = vmatprep.subr.bf16.mxu0 %v2932_v62 }
 0xc62   : > { %2978 = vmatpush1.bf16.msra.mxu0 %v2931_v55  ;;  %v2750_v59 = vsel %vm2390_vm15, %v4179_v5, %v4180_v38  ;;  %v2752_v49 = vsel %vm2390_vm15, %v4184_v7, %v4185_v30 }
 0xc63   : > { %v4193_v43 = vpop.permute.xlu1 %4192  ;;  %v4188_v2 = vpop.permute.xlu0 %4187  ;;  %v2930_v61 = vpack.c.bf16 %v2752_v49, %v2750_v59 }
 0xc64   : > { %v4190_v42 = vunpack.i.h.bf16 %v4188_v2  ;;  %v4189_v27 = vunpack.i.l.bf16 %v4188_v2  ;;  %v4195_v10 = vunpack.i.h.bf16 %v4193_v43  ;;  %v4194_v4 = vunpack.i.l.bf16 %v4193_v43 }
 0xc65   : > { %2979 = vmatprep.subr.bf16.mxu0 %v2930_v61 }
 0xc66   : > { %v2751_v52 = vsel %vm2390_vm15, %v4190_v42, %v4184_v7  ;;  %v2749_v25 = vsel %vm2390_vm15, %v4189_v27, %v4179_v5  ;;  %v2920_v12 = vsel %vm2567_vm0, %v4194_v4, %v4195_v10 }
 0xc67   : > { %v2929_v41 = vpack.c.bf16 %v2751_v52, %v2749_v25  ;;  %v4203_v53 = vpop.permute.xlu1 %4202  ;;  %v4198_v47 = vpop.permute.xlu0 %4197 }
 0xc68   : > { %v4205_v19 = vunpack.i.h.bf16 %v4203_v53  ;;  %v4204_v3 = vunpack.i.l.bf16 %v4203_v53  ;;  %v4200_v54 = vunpack.i.h.bf16 %v4198_v47  ;;  %v4199_v11 = vunpack.i.l.bf16 %v4198_v47 }
 0xc69   : > { %2980 = vmatpush1.bf16.msra.mxu0 %v2929_v41 }
 0xc6a   : > { %2981 = vmatprep.subr.bf16.mxu0 %v2928_v13  ;;  %v2922_v51 = vsel %vm2567_vm0, %v4199_v11, %v4200_v54  ;;  %v2919_v15 = vsel %vm2567_vm0, %v4204_v3, %v4194_v4  ;;  %v2921_v57 = vsel %vm2567_vm0, %v4205_v19, %v4199_v11 }
 0xc6b   : > { %v2944_v34 = vpack.c.bf16 %v2922_v51, %v2920_v12  ;;  %v2943_v63 = vpack.c.bf16 %v2921_v57, %v2919_v15 }
 0xc6d   : > { %2982 = vmatpush1.bf16.msra.mxu0 %v2927_v21 }
 0xc6e   : > { %2997 = vmatprep.subr.bf16.mxu0 %v2944_v34 }
 0xc71   : > { %2998 = vmatpush2.bf16.msra.mxu0 %v2943_v63 }
 0xc74   : > { %3000 = vmatmul.mubr.bf16.vlgmr.msra.gmra.mxu0 %v4368_v8  ;;  %v2948_v9 = vpop.permute.xlu0 %2947  ;;  %v2953_v58 = vpop.permute.xlu1 %2952 }
 0xd34   : > { %v3001_v13 = vpop.f32.mrf.mxu0 }
 0xd35   : > { %v3002_v0 = vadd.f32 %v3001_v13, %v2948_v9 }
 0xd36   : > { %v3003_v40 = vpop.f32.mrf.mxu0 }
 0xd37   : > { %v3010_v16 = vmul.f32 0.1, %v3002_v0  ;;  %v3004_v48 = vadd.f32 %v3003_v40, %v2948_v9 }
 0xd38   : > { %v3005_v55 = vpop.f32.mrf.mxu0 }
 0xd39   : > { %v3014_v22 = vadd.f32 %v3010_v16, %v5249_v20  ;;  %v3011_v24 = vmul.f32 0.1, %v3004_v48  ;;  %v3006_v6 = vadd.f32 %v3005_v55, %v2953_v58 }
 0xd3a   : > { %v3007_v21 = vpop.f32.mrf.mxu0 }
 0xd3b   : > { %v3018_v31 = vmax.f32 %v3014_v22, 0.0  ;;  %v3015_v62 = vadd.f32 %v3011_v24, %v5253_v26  ;;  %v3012_v30 = vmul.f32 0.1, %v3006_v6  ;;  %v3008_v7 = vadd.f32 %v3007_v21, %v2953_v58 }
 0xd3d   : > { %v3019_v38 = vmax.f32 %v3015_v62, 0.0  ;;  %v3016_v5 = vadd.f32 %v3012_v30, %v5259_v1  ;;  %v3013_v59 = vmul.f32 0.1, %v3008_v7  ;;  %3028 = vrot.lane.b32.xlu0 %v3018_v31, %s4420_s28 }
 0xd3f   : > { %v3020_v49 = vmax.f32 %v3016_v5, 0.0  ;;  %v3017_v43 = vadd.f32 %v3013_v59, %v5271_v60  ;;  %3030 = vrot.lane.b32.xlu1 %v3019_v38, %s4420_s28 }
 0xd41   : > { %v3021_v20 = vmax.f32 %v3017_v43, 0.0  ;;  %3032 = vrot.lane.b32.xlu0 %v3020_v49, %s4420_s28 }
 0xd43   : > { %3034 = vrot.lane.b32.xlu1 %v3021_v20, %s4420_s28  ;;  %s5962_s28 = smov 112  }
 0xdaf   : > { %v3029_v2 = vpop.permute.xlu0 %3028 }
 0xdb0   : > { %v5731_v25 = vsel %vm2280_vm4, 0.0, %v3029_v2 }
 0xdb1   : > { %v3031_v26 = vpop.permute.xlu1 %3030  ;;  %v3064_v15 = vmul.f32 %v5341_v29, %v5731_v25  ;;  %v3070_v57 = vmul.f32 %v5331_v18, %v5731_v25  ;;  %v5767_v16 = vmul.f32 %v5262_v56, %v5731_v25  ;;  %v3058_v62 = vmul.f32 %v5382_v35, %v5731_v25 }
 0xdb2   : > { %v5710_v61 = vsel %vm2280_vm4, %v3029_v2, %v3031_v26  ;;  %v5713_v1 = vsel %vm2280_vm4, %v3031_v26, 0.0  ;;  %v3076_v2 = vmul.f32 %v5437_v50, %v5731_v25 }
 0xdb3   : > { %v3033_v42 = vpop.permute.xlu0 %3032  ;;  %v5717_v27 = vpack.i.bf16 %v5713_v1, %v5710_v61  ;;  %v3071_v60 = vmul.f32 %v5710_v61, %v5346_v33  ;;  %v3072_v10 = vmul.f32 %v5329_v14, %v5713_v1  ;;  %v3065_v47 = vmul.f32 %v5710_v61, %v5354_v37 }
 0xdb4   : > { %v5724_v4 = vsel %vm2280_vm4, 0.0, %v3033_v42  ;;  %v3066_v19 = vmul.f32 %v5339_v28, %v5713_v1  ;;  %v5760_v0 = vmul.f32 %v5268_v46, %v5710_v61  ;;  %v3060_v55 = vmul.f32 %v5380_v36, %v5713_v1 }
 0xdb5   : > { %v3035_v52 = vpop.permute.xlu1 %3034  ;;  %4212 = vrot.lane.b32.xlu1 %v5717_v27, %s4416_s29  ;;  %4207 = vrot.lane.b32.xlu0 %v5717_v27, %s4423_s21  ;;  %v4221_v41 = vpack.i.bf16 %v3072_v10, %v3071_v60  ;;  %v5735_v53 = vpack.i.bf16 %v5724_v4, %v5731_v25  ;;  %v3067_v51 = vmul.f32 %v5341_v29, %v5724_v4 }
 0xdb6   : > { %v3037_v3 = vsel %vm2280_vm4, %v3033_v42, %v3035_v52  ;;  %v3047_v54 = vsel %vm2280_vm4, %v3035_v52, 0.0  ;;  %v4226_v11 = vpack.i.bf16 %v3066_v19, %v3065_v47  ;;  %v3073_v34 = vmul.f32 %v5331_v18, %v5724_v4 }
 0xdb7   : > { %v4231_v12 = vpack.i.bf16 %v3047_v54, %v3037_v3  ;;  %v4241_v63 = vpack.i.bf16 %v3067_v51, %v3064_v15  ;;  %v3074_v9 = vmul.f32 %v3037_v3, %v5346_v33  ;;  %v3075_v13 = vmul.f32 %v5329_v14, %v3047_v54 }
 0xdb8   : > { %v4236_v8 = vpack.i.bf16 %v3073_v34, %v3070_v57  ;;  %v5763_v40 = vmul.f32 %v5268_v46, %v3037_v3  ;;  %v5771_v18 = vmul.f32 %v5262_v56, %v5724_v4  ;;  %v3068_v33 = vmul.f32 %v3037_v3, %v5354_v37 }
 0xdb9   : > { %4222 = vrot.lane.b32.xlu1 %v4221_v41, %s4424_s30  ;;  %4217 = vrot.lane.b32.xlu0 %v5735_v53, %s4423_s21  ;;  %v4246_v46 = vpack.i.bf16 %v3075_v13, %v3074_v9  ;;  %v3069_v48 = vmul.f32 %v5339_v28, %v3047_v54  ;;  %v3059_v56 = vmul.f32 %v5710_v61, %v5393_v39 }
 0xdba   : > { %v3277_v14 = vpack.c.bf16 %v5763_v40, %v5760_v0  ;;  %v3276_v29 = vpack.c.bf16 %v5771_v18, %v5767_v16  ;;  %v3053_v22 = vmul.f32 %v5710_v61, %v5402_v23  ;;  %v3054_v37 = vmul.f32 %v5385_v44, %v5713_v1 }
 0xdbb   : > { %v4271_v58 = vpack.i.bf16 %v3069_v48, %v3068_v33  ;;  %v3061_v28 = vmul.f32 %v5382_v35, %v5724_v4  ;;  %v4261_v24 = vpack.i.bf16 %v3060_v55, %v3059_v56  ;;  %v3062_v21 = vmul.f32 %v3037_v3, %v5393_v39 }
 0xdbc   : > { %v4276_v6 = vpack.i.bf16 %v3054_v37, %v3053_v22  ;;  %v3063_v31 = vmul.f32 %v5380_v36, %v3047_v54  ;;  %v3055_v30 = vmul.f32 %v5387_v45, %v5724_v4  ;;  %v3056_v5 = vmul.f32 %v3037_v3, %v5402_v23 }
 0xdbd   : > { %4227 = vrot.lane.b32.xlu0 %v4226_v11, %s4419_s3  ;;  %4232 = vrot.lane.b32.xlu1 %v4231_v12, %s4423_s21  ;;  %v4266_v7 = vpack.i.bf16 %v3061_v28, %v3058_v62  ;;  %v3057_v59 = vmul.f32 %v5385_v44, %v3047_v54  ;;  %v3052_v36 = vmul.f32 %v5387_v45, %v5731_v25  ;;  %s5963_s21 = sld [smem:[#allocation13_spill]] }
 0xdbe   : > { %v4281_v38 = vpack.i.bf16 %v3063_v31, %v3062_v21  ;;  %v3077_v35 = vmul.f32 %v5710_v61, %v5443_v17  ;;  %v3078_v23 = vmul.f32 %v5435_v32, %v5713_v1  ;;  %v3079_v45 = vmul.f32 %v5437_v50, %v5724_v4 }
 0xdbf   : > { %v4286_v39 = vpack.i.bf16 %v3055_v30, %v3052_v36  ;;  %v4291_v49 = vpack.i.bf16 %v3057_v59, %v3056_v5  ;;  %v3080_v43 = vmul.f32 %v3037_v3, %v5443_v17  ;;  %v3081_v20 = vmul.f32 %v5435_v32, %v3047_v54 }
 0xdc0   : > { %v4311_v44 = vpack.i.bf16 %v3078_v23, %v3077_v35  ;;  %v4321_v1 = vpack.i.bf16 %v3079_v45, %v3076_v2 }
 0xdc1   : > { %4242 = vrot.lane.b32.xlu0 %v4241_v63, %s4419_s3  ;;  %4237 = vrot.lane.b32.xlu1 %v4236_v8, %s4424_s30  ;;  %v4316_v17 = vpack.i.bf16 %v3081_v20, %v3080_v43 }
 0xdc3   : > { %v5831_v26 = vld.sshfl [vmem:[%s5963_s21] sm:$0x33 pattern:$0x76325410] }
 0xdc4   : > { %v3307_v61 = vcombine.high %v5831_v26, %v5831_v26 }
 0xdc5   : > { %4257 = vrot.lane.b32.xlu1 %v5735_v53, %s4416_s29  ;;  %4247 = vrot.lane.b32.xlu0 %v4246_v46, %s4424_s30 }
 0xdc6   : > { %3474 = vmatprep.mubr.msk.bf16.mxu1 %vm1524_vm14, %v3307_v61 }
 0xdc9   : > { %4252 = vrot.lane.b32.xlu0 %v4231_v12, %s4416_s29  ;;  %4272 = vrot.lane.b32.xlu1 %v4271_v58, %s4419_s3 }
 0xdcd   : > { %4262 = vrot.lane.b32.xlu0 %v4261_v24, %s5962_s28  ;;  %4277 = vrot.lane.b32.xlu1 %v4276_v6, %s5959_s20 }
 0xdd1   : > { %4267 = vrot.lane.b32.xlu0 %v4266_v7, %s5962_s28  ;;  %4282 = vrot.lane.b32.xlu1 %v4281_v38, %s5962_s28 }
 0xdd5   : > { %4287 = vrot.lane.b32.xlu1 %v4286_v39, %s5959_s20  ;;  %4292 = vrot.lane.b32.xlu0 %v4291_v49, %s5959_s20 }
 0xdd9   : > { %4302 = vrot.lane.b32.xlu1 %v4231_v12, %s5960_s18  ;;  %4297 = vrot.lane.b32.xlu0 %v5717_v27, %s5960_s18 }
 0xddd   : > { %4312 = vrot.lane.b32.xlu1 %v4311_v44, %s4425_s2  ;;  %4307 = vrot.lane.b32.xlu0 %v5735_v53, %s5960_s18  ;;  %s5964_s18 = sld [smem:[#allocation14_spill]] }
 0xde1   : > { %4322 = vrot.lane.b32.xlu1 %v4321_v1, %s4425_s2  ;;  %4317 = vrot.lane.b32.xlu0 %v4316_v17, %s4425_s2  ;;  %s5965_s2 = sld [smem:[#allocation6_spill]] }
 0xde3   : > { %v3023_v32 = vld [vmem:[%s5964_s18] sm:$0x7] }
 0xde5   : > { %3296 = vperm.xlu0 %3740, %v3023_v32  }
 0xde7   : > { %p619_p0 = scmp.lt.s32.totalorder %s5965_s2, 1 }
 0xde9   : > { %s5969_s2 = smov (!%p619_p0, %s5965_s2), 1 }
 0xdea   : > { %s3477_s1 = sshll.u32 %s5969_s2, 3 }
 0xdeb   : > { %s623_s17 = scalar_lea.vmem %s5966_s27, %s3477_s1 }
 0xe27   : > { %v5841_v50 = vpop.permute.xlu1 %4212  ;;  %v4208_v42 = vpop.permute.xlu0 %4207 }
 0xe28   : > { %v4210_v10 = vunpack.i.h.bf16 %v4208_v42  ;;  %v4209_v4 = vunpack.i.l.bf16 %v4208_v42  ;;  %v4215_v58 = vunpack.i.h.bf16 %v5841_v50  ;;  %v4214_v31 = vunpack.i.l.bf16 %v5841_v50 }
 0xe2a   : > { %v3243_v11 = vsel %vm2540_vm7, %v4209_v4, %v4210_v10  ;;  %v3171_v42 = vsel %vm2465_vm11, %v4214_v31, %v4215_v58 }
 0xe2b   : > { %v4223_v27 = vpop.permute.xlu1 %4222  ;;  %v4218_v60 = vpop.permute.xlu0 %4217 }
 0xe2c   : > { %v4219_v52 = vunpack.i.l.bf16 %v4218_v60  ;;  %v4220_v53 = vunpack.i.h.bf16 %v4218_v60  ;;  %v4225_v63 = vunpack.i.h.bf16 %v4223_v27  ;;  %v4224_v8 = vunpack.i.l.bf16 %v4223_v27 }
 0xe2e   : > { %v3242_v3 = vsel %vm2540_vm7, %v4219_v52, %v4209_v4  ;;  %v3223_v6 = vsel %vm2519_vm9, %v4224_v8, %v4225_v63 }
 0xe2f   : > { %v4233_v25 = vpop.permute.xlu1 %4232  ;;  %v4228_v41 = vpop.permute.xlu0 %4227 }
 0xe30   : > { %v4235_v47 = vunpack.i.h.bf16 %v4233_v25  ;;  %v4234_v19 = vunpack.i.l.bf16 %v4233_v25  ;;  %v4230_v55 = vunpack.i.h.bf16 %v4228_v41  ;;  %v4229_v22 = vunpack.i.l.bf16 %v4228_v41 }
 0xe32   : > { %v3244_v54 = vsel %vm2540_vm7, %v4220_v53, %v4234_v19  ;;  %v3245_v12 = vsel %vm2540_vm7, %v4234_v19, %v4235_v47  ;;  %v3197_v44 = vsel %vm2492_vm10, %v4229_v22, %v4230_v55 }
 0xe33   : > { %v3290_v51 = vpack.c.bf16 %v3244_v54, %v3242_v3  ;;  %v4238_v34 = vpop.permute.xlu1 %4237  ;;  %v4243_v15 = vpop.permute.xlu0 %4242  ;;  %v3291_v57 = vpack.c.bf16 %v3245_v12, %v3243_v11 }
 0xe34   : > { %v4239_v9 = vunpack.i.l.bf16 %v4238_v34  ;;  %v4240_v33 = vunpack.i.h.bf16 %v4238_v34  ;;  %v4244_v37 = vunpack.i.l.bf16 %v4243_v15  ;;  %v4245_v62 = vunpack.i.h.bf16 %v4243_v15 }
 0xe35   : > { %3312 = vmatprep.subr.bf16.mxu1 %v3291_v57 }
 0xe36   : > { %3313 = vmatpush1.bf16.msra.mxu1 %v3290_v51  ;;  %v3222_v28 = vsel %vm2519_vm9, %v4239_v9, %v4224_v8  ;;  %v3196_v35 = vsel %vm2492_vm10, %v4244_v37, %v4229_v22 }
 0xe37   : > { %v4258_v13 = vpop.permute.xlu1 %4257  ;;  %v4248_v46 = vpop.permute.xlu0 %4247 }
 0xe38   : > { %v4250_v48 = vunpack.i.h.bf16 %v4248_v46  ;;  %v4249_v56 = vunpack.i.l.bf16 %v4248_v46  ;;  %v4260_v23 = vunpack.i.h.bf16 %v4258_v13  ;;  %v4259_v45 = vunpack.i.l.bf16 %v4258_v13 }
 0xe3a   : > { %v3224_v24 = vsel %vm2519_vm9, %v4240_v33, %v4249_v56  ;;  %v3225_v21 = vsel %vm2519_vm9, %v4249_v56, %v4250_v48  ;;  %v3170_v60 = vsel %vm2465_vm11, %v4259_v45, %v4214_v31 }
 0xe3b   : > { %v3288_v30 = vpack.c.bf16 %v3224_v24, %v3222_v28  ;;  %v4273_v7 = vpop.permute.xlu1 %4272  ;;  %v4253_v38 = vpop.permute.xlu0 %4252  ;;  %v3289_v5 = vpack.c.bf16 %v3225_v21, %v3223_v6 }
 0xe3c   : > { %v4275_v59 = vunpack.i.h.bf16 %v4273_v7  ;;  %v4274_v36 = vunpack.i.l.bf16 %v4273_v7  ;;  %v4255_v39 = vunpack.i.h.bf16 %v4253_v38  ;;  %v4254_v49 = vunpack.i.l.bf16 %v4253_v38 }
 0xe3d   : > { %3314 = vmatprep.subr.bf16.mxu1 %v3289_v5 }
 0xe3e   : > { %v3198_v43 = vsel %vm2492_vm10, %v4245_v62, %v4274_v36  ;;  %3315 = vmatpush1.bf16.msra.mxu1 %v3288_v30  ;;  %v3199_v20 = vsel %vm2492_vm10, %v4274_v36, %v4275_v59  ;;  %v3173_v2 = vsel %vm2465_vm11, %v4254_v49, %v4255_v39  ;;  %v3172_v50 = vsel %vm2465_vm11, %v4260_v23, %v4254_v49 }
 0xe3f   : > { %v3286_v61 = vpack.c.bf16 %v3198_v43, %v3196_v35  ;;  %v4278_v1 = vpop.permute.xlu1 %4277  ;;  %v4263_v17 = vpop.permute.xlu0 %4262  ;;  %v3287_v32 = vpack.c.bf16 %v3199_v20, %v3197_v44  ;;  %v3285_v27 = vpack.c.bf16 %v3173_v2, %v3171_v42  ;;  %v3284_v52 = vpack.c.bf16 %v3172_v50, %v3170_v60 }
 0xe40   : > { %v4265_v10 = vunpack.i.h.bf16 %v4263_v17  ;;  %v4264_v4 = vunpack.i.l.bf16 %v4263_v17  ;;  %v4280_v54 = vunpack.i.h.bf16 %v4278_v1  ;;  %v4279_v11 = vunpack.i.l.bf16 %v4278_v1 }
 0xe41   : > { %3316 = vmatprep.subr.bf16.mxu1 %v3287_v32 }
 0xe42   : > { %3317 = vmatpush1.bf16.msra.mxu1 %v3286_v61  ;;  %v3151_v34 = vsel %vm2444_vm12, %v4264_v4, %v4265_v10  ;;  %v3125_v55 = vsel %vm2417_vm13, %v4279_v11, %v4280_v54 }
 0xe43   : > { %v4283_v25 = vpop.permute.xlu1 %4282  ;;  %v4268_v41 = vpop.permute.xlu0 %4267  ;;  %3318 = vmatprep.subr.bf16.mxu1 %v3285_v27 }
 0xe44   : > { %v4285_v53 = vunpack.i.h.bf16 %v4283_v25  ;;  %v4284_v47 = vunpack.i.l.bf16 %v4283_v25  ;;  %v4270_v19 = vunpack.i.h.bf16 %v4268_v41  ;;  %v4269_v3 = vunpack.i.l.bf16 %v4268_v41 }
 0xe46   : > { %v3152_v12 = vsel %vm2444_vm12, %v4270_v19, %v4284_v47  ;;  %v3150_v51 = vsel %vm2444_vm12, %v4269_v3, %v4264_v4  ;;  %3319 = vmatpush1.bf16.msra.mxu1 %v3284_v52  ;;  %v3153_v15 = vsel %vm2444_vm12, %v4284_v47, %v4285_v53 }
 0xe47   : > { %v3282_v57 = vpack.c.bf16 %v3152_v12, %v3150_v51  ;;  %v4288_v63 = vpop.permute.xlu1 %4287  ;;  %v4293_v8 = vpop.permute.xlu0 %4292  ;;  %v3283_v9 = vpack.c.bf16 %v3153_v15, %v3151_v34 }
 0xe48   : > { %v4290_v13 = vunpack.i.h.bf16 %v4288_v63  ;;  %v4289_v46 = vunpack.i.l.bf16 %v4288_v63  ;;  %v4295_v33 = vunpack.i.h.bf16 %v4293_v8  ;;  %v4294_v48 = vunpack.i.l.bf16 %v4293_v8 }
 0xe49   : > { %3320 = vmatprep.subr.bf16.mxu1 %v3283_v9 }
 0xe4a   : > { %v3124_v56 = vsel %vm2417_vm13, %v4289_v46, %v4279_v11  ;;  %v3126_v58 = vsel %vm2417_vm13, %v4290_v13, %v4294_v48  ;;  %3321 = vmatpush1.bf16.msra.mxu1 %v3282_v57  ;;  %v3127_v22 = vsel %vm2417_vm13, %v4294_v48, %v4295_v33 }
 0xe4b   : > { %v3280_v37 = vpack.c.bf16 %v3126_v58, %v3124_v56  ;;  %v4303_v28 = vpop.permute.xlu1 %4302  ;;  %v4298_v24 = vpop.permute.xlu0 %4297  ;;  %v3281_v6 = vpack.c.bf16 %v3127_v22, %v3125_v55 }
 0xe4c   : > { %v4305_v21 = vunpack.i.h.bf16 %v4303_v28  ;;  %v4304_v31 = vunpack.i.l.bf16 %v4303_v28  ;;  %v4300_v62 = vunpack.i.h.bf16 %v4298_v24  ;;  %v4299_v30 = vunpack.i.l.bf16 %v4298_v24 }
 0xe4d   : > { %3322 = vmatprep.subr.bf16.mxu1 %v3281_v6 }
 0xe4e   : > { %3323 = vmatpush1.bf16.msra.mxu1 %v3280_v37  ;;  %v3099_v7 = vsel %vm2390_vm15, %v4299_v30, %v4300_v62  ;;  %v3101_v38 = vsel %vm2390_vm15, %v4304_v31, %v4305_v21 }
 0xe4f   : > { %v4313_v5 = vpop.permute.xlu1 %4312  ;;  %v4308_v59 = vpop.permute.xlu0 %4307  ;;  %v3279_v36 = vpack.c.bf16 %v3101_v38, %v3099_v7 }
 0xe50   : > { %v4310_v39 = vunpack.i.h.bf16 %v4308_v59  ;;  %v4309_v49 = vunpack.i.l.bf16 %v4308_v59  ;;  %v4315_v35 = vunpack.i.h.bf16 %v4313_v5  ;;  %v4314_v23 = vunpack.i.l.bf16 %v4313_v5 }
 0xe51   : > { %3324 = vmatprep.subr.bf16.mxu1 %v3279_v36 }
 0xe52   : > { %v3100_v44 = vsel %vm2390_vm15, %v4310_v39, %v4304_v31  ;;  %v3098_v45 = vsel %vm2390_vm15, %v4309_v49, %v4299_v30  ;;  %v3269_v50 = vsel %vm2567_vm0, %v4314_v23, %v4315_v35 }
 0xe53   : > { %v3278_v43 = vpack.c.bf16 %v3100_v44, %v3098_v45  ;;  %v4323_v20 = vpop.permute.xlu1 %4322  ;;  %v4318_v2 = vpop.permute.xlu0 %4317 }
 0xe54   : > { %v4325_v61 = vunpack.i.h.bf16 %v4323_v20  ;;  %v4324_v1 = vunpack.i.l.bf16 %v4323_v20  ;;  %v4320_v17 = vunpack.i.h.bf16 %v4318_v2  ;;  %v4319_v32 = vunpack.i.l.bf16 %v4318_v2 }
 0xe55   : > { %3325 = vmatpush1.bf16.msra.mxu1 %v3278_v43 }
 0xe56   : > { %3326 = vmatprep.subr.bf16.mxu1 %v3277_v14  ;;  %v3271_v42 = vsel %vm2567_vm0, %v4319_v32, %v4320_v17  ;;  %v3268_v60 = vsel %vm2567_vm0, %v4324_v1, %v4314_v23  ;;  %v3270_v10 = vsel %vm2567_vm0, %v4325_v61, %v4319_v32 }
 0xe57   : > { %v3293_v27 = vpack.c.bf16 %v3271_v42, %v3269_v50  ;;  %v3292_v4 = vpack.c.bf16 %v3270_v10, %v3268_v60 }
 0xe59   : > { %3327 = vmatpush1.bf16.msra.mxu1 %v3276_v29 }
 0xe5a   : > { %3342 = vmatprep.subr.bf16.mxu1 %v3293_v27 }
 0xe5d   : > { %3343 = vmatpush2.bf16.msra.mxu1 %v3292_v4 }
 0xe60   : > { %3345 = vmatmul.mubr.bf16.vlgmr.msra.gmra.mxu1 %v5831_v26  ;;  %v3297_v40 = vpop.permute.xlu0 %3296 }
 0xf20   : > { %v3346_v0 = vpop.f32.mrf.mxu1 }
 0xf21   : > { %v3347_v52 = vadd.f32 %v3346_v0, %v3297_v40 }
 0xf22   : > { %v3348_v14 = vpop.f32.mrf.mxu1 }
 0xf23   : > { %v3349_v25 = vadd.f32 %v3348_v14, %v3297_v40 }
 0xf24   : > { %v3350_v41 = vpop.f32.mrf.mxu1 }
 0xf25   : > { %v3355_v16 = vcombine.low %v3347_v52, %v3349_v25 }
 0xf26   : > { %v3351_v18 = vpop.f32.mrf.mxu1 }
 0xf27   : > { %3357 = vst [vmem:[%s623_s17] sm:$0x77] %v3355_v16 }
 0xf28 PF: > { %s5967_s0 = sld [smem:[#allocation5_spill]] }
 0xf2e   : > { %s31_s1 = sadd.s32 1, %s5967_s0  }
 0xf2f   : > { %p28_p1 = scmp.ge.s32.totalorder %s31_s1, 4  }
 0xf31   :  { %30 = sbr.rel (!%p28_p1) target bundleno = 11 (0xb), region = 132 }
 0xf36   :  { %3379 = vsyncpa [#allocation3], 1 }
 0xf37   :  { %3381 = vsyncpa [#allocation3 + $0x1], 1 }

</bundles_post_ra>
